<compile_context>
chip_gen: v6e
topology: v6e:2x2x1
jax: 0.10.0
libtpu: 0.0.40
codegen_flags: <defaults>
</compile_context>

<pallas_src>
import functools

import jax
import jax.numpy as jnp
from jax.experimental import pallas as pl
from jax.experimental.pallas import tpu as pltpu


# ----------------------------------------------------------------------------
# Fused Pallas kernel: 3x3 conv (all heads) -> ReLU -> 1x1 conv (all heads)
#                      -> heatmap sigmoid + 3x3 max-pool pseudo-NMS
# ----------------------------------------------------------------------------
def fused_head_kernel(x_ref, w1_ref, b1_ref, w2_ref, b2_ref, o_ref,
                      xpad_ref, col_ref, spad_ref, *, H, W, C_HM, PAD_L):
    # x_ref    : (1, H, W, Cin)           bf16 input tile (one batch element)
    # w1_ref   : (9*Cin, 3*Cmid)          bf16 fused 3x3 weights, tap-major rows
    # b1_ref   : (1, 3*Cmid)              f32
    # w2_ref   : (3*Cmid, 128)            bf16 block-diagonal 1x1 weights, 0-pad
    # b2_ref   : (1, 128)                 f32 fused bias, 0-padded
    # o_ref    : (1, H*W, 128)            f32 lane-dense fused output slab
    # xpad_ref : (H+2, W+2*PAD_L, Cin)    f32 scratch — zero halo for the conv
    # col_ref  : (H*W, 9*Cin)             bf16 scratch — im2col matrix
    # spad_ref : (H+2, W+2*PAD_L, 128)    f32 scratch — zero halo for max-pool
    cin = x_ref.shape[-1]
    lanes = o_ref.shape[-1]

    # ---- zero the halos once; interiors are fully rewritten every step -----
    @pl.when(pl.program_id(0) == 0)
    def _():
        xpad_ref[...] = jnp.zeros_like(xpad_ref)
        spad_ref[...] = jnp.zeros_like(spad_ref)

    # ---- zero-padded conv input built in VMEM (no HBM pad pass) ------------
    xpad_ref[1:1 + H, PAD_L:PAD_L + W, :] = x_ref[0].astype(xpad_ref.dtype)

    # ---- im2col: stage (H*W, 9*Cin) in VMEM, one tap at a time -------------
    for ky in range(3):
        for kx in range(3):
            tap = ky * 3 + kx
            patch = xpad_ref[ky:ky + H,
                             PAD_L - 1 + kx:PAD_L - 1 + kx + W, :]
            col_ref[:, tap * cin:(tap + 1) * cin] = (
                patch.reshape(H * W, cin).astype(col_ref.dtype))

    # ---- one wide-K bf16 matmul (3x3 conv, all three heads), f32 acc -------
    hidden = jnp.dot(col_ref[...], w1_ref[...],
                     preferred_element_type=jnp.float32) + b1_ref[...]
    hidden = jnp.maximum(hidden, 0.0)

    # ---- block-diagonal 1x1 conv for all heads, 128-lane-dense -------------
    raw = jnp.dot(hidden.astype(jnp.bfloat16), w2_ref[...],
                  preferred_element_type=jnp.float32) + b2_ref[...]

    # ---- sigmoid + 3x3 max-pool peak keep on the full 128-lane slab --------
    # (same vreg count as C_HM lanes; extra lanes are discarded by the final
    #  lane-select, and sigmoid > 0 keeps the zero halo neutral for max).
    s = jax.nn.sigmoid(raw)                     # (H*W, 128) f32
    s_hw = s.reshape(H, W, lanes)
    spad_ref[1:1 + H, PAD_L:PAD_L + W, :] = s_hw
    hmax = s_hw
    for ky in range(3):
        for kx in range(3):
            hmax = jnp.maximum(
                hmax,
                spad_ref[ky:ky + H, PAD_L - 1 + kx:PAD_L - 1 + kx + W, :])
    keep = (hmax <= s_hw).reshape(H * W, lanes)

    # ---- single lane-dense output store -------------------------------------
    lane = jax.lax.broadcasted_iota(jnp.int32, (H * W, lanes), 1)
    peaks = jnp.where(keep, s, 0.0)
    o_ref[0] = jnp.where(lane < C_HM, peaks, raw).astype(o_ref.dtype)


def fused_centernet_head(x_nhwc, w1cat, b1cat, w2blk, b2cat, c_hm):
    """One pallas_call computing all three heads + heatmap NMS."""
    N, H, W, Cin = x_nhwc.shape
    Kdim, Cmid3 = w1cat.shape          # (9*Cin, 3*Cmid)
    Cout = w2blk.shape[1]              # 128 (lane-dense)
    PAD_L = 8                          # sublane-aligned interior for f32 scratch

    kern = functools.partial(fused_head_kernel, H=H, W=W, C_HM=c_hm,
                             PAD_L=PAD_L)
    return pl.pallas_call(
        kern,
        out_shape=jax.ShapeDtypeStruct((N, H * W, Cout), jnp.float32),
        grid_spec=pltpu.PrefetchScalarGridSpec(
            num_scalar_prefetch=0,
            grid=(N,),
            in_specs=[
                pl.BlockSpec((1, H, W, Cin), lambda n: (n, 0, 0, 0)),
                pl.BlockSpec((Kdim, Cmid3), lambda n: (0, 0)),
                pl.BlockSpec((1, Cmid3), lambda n: (0, 0)),
                pl.BlockSpec((Cmid3, Cout), lambda n: (0, 0)),
                pl.BlockSpec((1, Cout), lambda n: (0, 0)),
            ],
            out_specs=pl.BlockSpec((1, H * W, Cout), lambda n: (n, 0, 0)),
            scratch_shapes=[
                pltpu.VMEM((H + 2, W + 2 * PAD_L, Cin), jnp.float32),
                pltpu.VMEM((H * W, Kdim), jnp.bfloat16),
                pltpu.VMEM((H + 2, W + 2 * PAD_L, Cout), jnp.float32),
            ],
        ),
        compiler_params=pltpu.CompilerParams(
            dimension_semantics=("parallel",)),
    )(x_nhwc.astype(jnp.bfloat16), w1cat, b1cat, w2blk, b2cat)


# ----------------------------------------------------------------------------
# Weight fusion (done once in the wrapper, fuses into the surrounding jit)
# ----------------------------------------------------------------------------
def build_fused_weights(params, c_hm, cout_pad=128):
    w1_hm, b1_hm, w2_hm, b2_hm = params["hm"]
    w1_wh, b1_wh, w2_wh, b2_wh = params["wh"]
    w1_rg, b1_rg, w2_rg, b2_rg = params["reg"]
    cin, cmid = w1_hm.shape[2], w1_hm.shape[3]
    assert c_hm + 4 <= cout_pad

    # First layer: concat along Cmid, tap-major rows (ky*3+kx)*Cin + c.
    w1cat = jnp.concatenate([w1_hm, w1_wh, w1_rg], axis=-1)        # (3,3,Cin,3M)
    w1cat = w1cat.reshape(9 * cin, 3 * cmid).astype(jnp.bfloat16)
    b1cat = jnp.concatenate([b1_hm, b1_wh, b1_rg], axis=0).reshape(1, 3 * cmid)
    b1cat = b1cat.astype(jnp.float32)

    # Second layer: block-diagonal, zero-padded to 128 output lanes.
    w2blk = jnp.zeros((3 * cmid, cout_pad), jnp.float32)
    w2blk = w2blk.at[0 * cmid:1 * cmid, 0:c_hm].set(w2_hm)
    w2blk = w2blk.at[1 * cmid:2 * cmid, c_hm:c_hm + 2].set(w2_wh)
    w2blk = w2blk.at[2 * cmid:3 * cmid, c_hm + 2:c_hm + 4].set(w2_rg)
    w2blk = w2blk.astype(jnp.bfloat16)

    b2cat = jnp.zeros((1, cout_pad), jnp.float32)
    b2cat = b2cat.at[0, 0:c_hm].set(b2_hm)
    b2cat = b2cat.at[0, c_hm:c_hm + 2].set(b2_wh)
    b2cat = b2cat.at[0, c_hm + 2:c_hm + 4].set(b2_rg)
    return w1cat, b1cat, w2blk, b2cat


# ----------------------------------------------------------------------------
# Plain-JAX glue: top-K peak extraction, box decode, scale to image size
# ----------------------------------------------------------------------------
def decode_detections(fused, H, W, c_hm, k, image_size):
    """(x1,y1,x2,y2,score,cls) in image coords from the fused head slab."""
    N = fused.shape[0]
    if isinstance(image_size, (tuple, list)):
        img_h, img_w = image_size
    else:
        img_h = img_w = image_size

    peaks = fused[:, :, :c_hm]                        # (N, H*W, C)
    scores_flat = peaks.reshape(N, H * W * c_hm)      # NHWC-major; no transpose
    topk_scores, topk_inds = jax.lax.top_k(scores_flat, k)
    topk_clses = (topk_inds % c_hm).astype(jnp.float32)
    pix = topk_inds // c_hm
    ys = (pix // W).astype(jnp.float32)
    xs = (pix % W).astype(jnp.float32)

    b_idx = jnp.arange(N)[:, None]
    whreg = fused[:, :, c_hm:c_hm + 4][b_idx, pix]    # (N, K, 4) = wh(2), reg(2)
    wh_g, reg_g = whreg[..., 0:2], whreg[..., 2:4]

    xs = xs + reg_g[..., 0]
    ys = ys + reg_g[..., 1]
    x1 = xs - wh_g[..., 0] * 0.5
    y1 = ys - wh_g[..., 1] * 0.5
    x2 = xs + wh_g[..., 0] * 0.5
    y2 = ys + wh_g[..., 1] * 0.5

    # centernet_post_process: per-axis scaling (handles H != W correctly)
    sx = jnp.float32(img_w) / jnp.float32(W)
    sy = jnp.float32(img_h) / jnp.float32(H)
    detections = jnp.stack(
        [x1 * sx, y1 * sy, x2 * sx, y2 * sy, topk_scores, topk_clses],
        axis=-1)                                      # (N, K, 6)
    return detections


def centernet_head_forward(x_nchw, params, *, k, image_size):
    """Inference forward of CenterNetHead (training loss branch not modeled)."""
    x = jnp.transpose(x_nchw, (0, 2, 3, 1))           # NCHW -> NHWC
    N, H, W, _ = x.shape
    c_hm = params["hm"][2].shape[-1]

    w1cat, b1cat, w2blk, b2cat = build_fused_weights(params, c_hm)
    fused = fused_centernet_head(x, w1cat, b1cat, w2blk, b2cat, c_hm)
    detections = decode_detections(fused, H, W, c_hm, k, image_size)
    return detections, {}


# ----------------------------------------------------------------------------
# Deterministic parameter construction (shapes per CenterNetHeadPredictor)
# ----------------------------------------------------------------------------
def make_head_params(key, cin, cmid, cout, final_bias=0.0):
    k1, k2 = jax.random.split(key)
    w1 = jax.random.normal(k1, (3, 3, cin, cmid), jnp.float32) * 0.05
    b1 = jnp.zeros((cmid,), jnp.float32)
    w2 = jax.random.normal(k2, (cmid, cout), jnp.float32) * 0.05
    b2 = jnp.full((cout,), final_bias, jnp.float32)
    return (w1, b1, w2, b2)


if __name__ == "__main__":
    # cfg-like constants (small, consistent with the module)
    N, C_IN, H, W = 2, 32, 16, 16
    HEAD_CONV = 32
    NUM_CLASSES = 8
    TOP_K = 16
    IMAGE_SIZE = 128

    root = jax.random.PRNGKey(0)
    kx, khm, kwh, kreg = jax.random.split(root, 4)

    # features[0] from the backbone, PyTorch NCHW layout
    x = jax.random.normal(kx, (N, C_IN, H, W), jnp.float32)

    params = {
        # hm head final bias = -2.19 (standard CenterNet init, sigmoid ~ 0.1)
        "hm": make_head_params(khm, C_IN, HEAD_CONV, NUM_CLASSES,
                               final_bias=-2.19),
        "wh": make_head_params(kwh, C_IN, HEAD_CONV, 2),
        "reg": make_head_params(kreg, C_IN, HEAD_CONV, 2),
    }

    fwd = jax.jit(functools.partial(centernet_head_forward,
                                    k=TOP_K, image_size=IMAGE_SIZE))
    detections, loss_stats = fwd(x, params)
    detections = jax.block_until_ready(detections)

    assert detections.shape == (N, TOP_K, 6)
    assert bool(jnp.all(jnp.isfinite(detections)))
    scores = detections[..., 4]
    assert bool(jnp.all((scores >= 0.0) & (scores <= 1.0)))
    print("KERNEL_OK")
</pallas_src>

<mosaic_0001>
module attributes {stable_mosaic.version = 11 : i64} {
  func.func @fused_head_kernel(%arg0: i32, %arg1: memref<1x16x16x32xbf16, #tpu.memory_space<vmem>>, %arg2: memref<288x96xbf16, #tpu.memory_space<vmem>>, %arg3: memref<1x96xf32, #tpu.memory_space<vmem>>, %arg4: memref<96x128xbf16, #tpu.memory_space<vmem>>, %arg5: memref<1x128xf32, #tpu.memory_space<vmem>>, %arg6: memref<1x256x128xf32, #tpu.memory_space<vmem>>, %arg7: memref<18x32x32xf32, #tpu.memory_space<vmem>>, %arg8: memref<256x288xbf16, #tpu.memory_space<vmem>>, %arg9: memref<18x32x128xf32, #tpu.memory_space<vmem>>) attributes {dimension_semantics = [#tpu.dimension_semantics<parallel>], iteration_bounds = array<i64: 2>, scalar_prefetch = 0 : i64, scratch_operands = 3 : i64, tpu.core_type = #tpu.core_type<tc>, window_params = [{transform_indices = @transform_0, window_bounds = array<i64: 1, 16, 16, 32>}, {pipeline_mode = #tpu.pipeline_mode<synchronous>, transform_indices = @transform_1, window_bounds = array<i64: 288, 96>}, {pipeline_mode = #tpu.pipeline_mode<synchronous>, transform_indices = @transform_2, window_bounds = array<i64: 1, 96>}, {pipeline_mode = #tpu.pipeline_mode<synchronous>, transform_indices = @transform_3, window_bounds = array<i64: 96, 128>}, {pipeline_mode = #tpu.pipeline_mode<synchronous>, transform_indices = @transform_4, window_bounds = array<i64: 1, 128>}, {transform_indices = @transform_5, window_bounds = array<i64: 1, 256, 128>}]} {
    %c0_i32 = arith.constant 0 : i32
    %0 = arith.cmpi eq, %arg0, %c0_i32 : i32
    %1 = arith.extui %0 : i1 to i32
    %c0_i32_0 = arith.constant 0 : i32
    %2 = arith.cmpi ne, %1, %c0_i32_0 : i32
    scf.if %2 {
      %cst_86 = arith.constant 0.000000e+00 : f32
      %93 = vector.broadcast %cst_86 : f32 to vector<18x32x32xf32>
      %c0_87 = arith.constant 0 : index
      %c0_88 = arith.constant 0 : index
      %c0_89 = arith.constant 0 : index
      %94 = vector.load %arg7[%c0_87, %c0_88, %c0_89] : memref<18x32x32xf32, #tpu.memory_space<vmem>>, vector<18x32x32xf32>
      tpu.vector_store %arg7[%c0_87, %c0_88, %c0_89], %93 {strides = array<i32>} : memref<18x32x32xf32, #tpu.memory_space<vmem>>, vector<18x32x32xf32>,
      %cst_90 = arith.constant 0.000000e+00 : f32
      %95 = vector.broadcast %cst_90 : f32 to vector<18x32x128xf32>
      %c0_91 = arith.constant 0 : index
      %c0_92 = arith.constant 0 : index
      %c0_93 = arith.constant 0 : index
      %96 = vector.load %arg9[%c0_91, %c0_92, %c0_93] : memref<18x32x128xf32, #tpu.memory_space<vmem>>, vector<18x32x128xf32>
      tpu.vector_store %arg9[%c0_91, %c0_92, %c0_93], %95 {strides = array<i32>} : memref<18x32x128xf32, #tpu.memory_space<vmem>>, vector<18x32x128xf32>,
    } else {
    }
    %c0 = arith.constant 0 : index
    %c0_1 = arith.constant 0 : index
    %c0_2 = arith.constant 0 : index
    %c0_3 = arith.constant 0 : index
    %3 = vector.load %arg1[%c0, %c0_1, %c0_2, %c0_3] : memref<1x16x16x32xbf16, #tpu.memory_space<vmem>>, vector<1x16x16x32xbf16>
    %4 = vector.shape_cast %3 : vector<1x16x16x32xbf16> to vector<16x16x32xbf16>
    %5 = arith.extf %4 : vector<16x16x32xbf16> to vector<16x16x32xf32>
    %c1 = arith.constant 1 : index
    %c8 = arith.constant 8 : index
    %c0_4 = arith.constant 0 : index
    %6 = vector.load %arg7[%c1, %c8, %c0_4] : memref<18x32x32xf32, #tpu.memory_space<vmem>>, vector<16x16x32xf32>
    tpu.vector_store %arg7[%c1, %c8, %c0_4], %5 {strides = array<i32>} : memref<18x32x32xf32, #tpu.memory_space<vmem>>, vector<16x16x32xf32>,
    %c0_5 = arith.constant 0 : index
    %c7 = arith.constant 7 : index
    %c0_6 = arith.constant 0 : index
    %7 = vector.load %arg7[%c0_5, %c7, %c0_6] : memref<18x32x32xf32, #tpu.memory_space<vmem>>, vector<16x16x32xf32>
    %8 = vector.shape_cast %7 : vector<16x16x32xf32> to vector<256x32xf32>
    %9 = arith.truncf %8 : vector<256x32xf32> to vector<256x32xbf16>
    %c0_7 = arith.constant 0 : index
    %c0_8 = arith.constant 0 : index
    %10 = vector.load %arg8[%c0_7, %c0_8] : memref<256x288xbf16, #tpu.memory_space<vmem>>, vector<256x32xbf16>
    tpu.vector_store %arg8[%c0_7, %c0_8], %9 {strides = array<i32>} : memref<256x288xbf16, #tpu.memory_space<vmem>>, vector<256x32xbf16>,
    %c0_9 = arith.constant 0 : index
    %c8_10 = arith.constant 8 : index
    %c0_11 = arith.constant 0 : index
    %11 = vector.load %arg7[%c0_9, %c8_10, %c0_11] : memref<18x32x32xf32, #tpu.memory_space<vmem>>, vector<16x16x32xf32>
    %12 = vector.shape_cast %11 : vector<16x16x32xf32> to vector<256x32xf32>
    %13 = arith.truncf %12 : vector<256x32xf32> to vector<256x32xbf16>
    %c0_12 = arith.constant 0 : index
    %c32 = arith.constant 32 : index
    %14 = vector.load %arg8[%c0_12, %c32] : memref<256x288xbf16, #tpu.memory_space<vmem>>, vector<256x32xbf16>
    tpu.vector_store %arg8[%c0_12, %c32], %13 {strides = array<i32>} : memref<256x288xbf16, #tpu.memory_space<vmem>>, vector<256x32xbf16>,
    %c0_13 = arith.constant 0 : index
    %c9 = arith.constant 9 : index
    %c0_14 = arith.constant 0 : index
    %15 = vector.load %arg7[%c0_13, %c9, %c0_14] : memref<18x32x32xf32, #tpu.memory_space<vmem>>, vector<16x16x32xf32>
    %16 = vector.shape_cast %15 : vector<16x16x32xf32> to vector<256x32xf32>
    %17 = arith.truncf %16 : vector<256x32xf32> to vector<256x32xbf16>
    %c0_15 = arith.constant 0 : index
    %c64 = arith.constant 64 : index
    %18 = vector.load %arg8[%c0_15, %c64] : memref<256x288xbf16, #tpu.memory_space<vmem>>, vector<256x32xbf16>
    tpu.vector_store %arg8[%c0_15, %c64], %17 {strides = array<i32>} : memref<256x288xbf16, #tpu.memory_space<vmem>>, vector<256x32xbf16>,
    %c1_16 = arith.constant 1 : index
    %c7_17 = arith.constant 7 : index
    %c0_18 = arith.constant 0 : index
    %19 = vector.load %arg7[%c1_16, %c7_17, %c0_18] : memref<18x32x32xf32, #tpu.memory_space<vmem>>, vector<16x16x32xf32>
    %20 = vector.shape_cast %19 : vector<16x16x32xf32> to vector<256x32xf32>
    %21 = arith.truncf %20 : vector<256x32xf32> to vector<256x32xbf16>
    %c0_19 = arith.constant 0 : index
    %c96 = arith.constant 96 : index
    %22 = vector.load %arg8[%c0_19, %c96] : memref<256x288xbf16, #tpu.memory_space<vmem>>, vector<256x32xbf16>
    tpu.vector_store %arg8[%c0_19, %c96], %21 {strides = array<i32>} : memref<256x288xbf16, #tpu.memory_space<vmem>>, vector<256x32xbf16>,
    %c1_20 = arith.constant 1 : index
    %c8_21 = arith.constant 8 : index
    %c0_22 = arith.constant 0 : index
    %23 = vector.load %arg7[%c1_20, %c8_21, %c0_22] : memref<18x32x32xf32, #tpu.memory_space<vmem>>, vector<16x16x32xf32>
    %24 = vector.shape_cast %23 : vector<16x16x32xf32> to vector<256x32xf32>
    %25 = arith.truncf %24 : vector<256x32xf32> to vector<256x32xbf16>
    %c0_23 = arith.constant 0 : index
    %c128 = arith.constant 128 : index
    %26 = vector.load %arg8[%c0_23, %c128] : memref<256x288xbf16, #tpu.memory_space<vmem>>, vector<256x32xbf16>
    tpu.vector_store %arg8[%c0_23, %c128], %25 {strides = array<i32>} : memref<256x288xbf16, #tpu.memory_space<vmem>>, vector<256x32xbf16>,
    %c1_24 = arith.constant 1 : index
    %c9_25 = arith.constant 9 : index
    %c0_26 = arith.constant 0 : index
    %27 = vector.load %arg7[%c1_24, %c9_25, %c0_26] : memref<18x32x32xf32, #tpu.memory_space<vmem>>, vector<16x16x32xf32>
    %28 = vector.shape_cast %27 : vector<16x16x32xf32> to vector<256x32xf32>
    %29 = arith.truncf %28 : vector<256x32xf32> to vector<256x32xbf16>
    %c0_27 = arith.constant 0 : index
    %c160 = arith.constant 160 : index
    %30 = vector.load %arg8[%c0_27, %c160] : memref<256x288xbf16, #tpu.memory_space<vmem>>, vector<256x32xbf16>
    tpu.vector_store %arg8[%c0_27, %c160], %29 {strides = array<i32>} : memref<256x288xbf16, #tpu.memory_space<vmem>>, vector<256x32xbf16>,
    %c2 = arith.constant 2 : index
    %c7_28 = arith.constant 7 : index
    %c0_29 = arith.constant 0 : index
    %31 = vector.load %arg7[%c2, %c7_28, %c0_29] : memref<18x32x32xf32, #tpu.memory_space<vmem>>, vector<16x16x32xf32>
    %32 = vector.shape_cast %31 : vector<16x16x32xf32> to vector<256x32xf32>
    %33 = arith.truncf %32 : vector<256x32xf32> to vector<256x32xbf16>
    %c0_30 = arith.constant 0 : index
    %c192 = arith.constant 192 : index
    %34 = vector.load %arg8[%c0_30, %c192] : memref<256x288xbf16, #tpu.memory_space<vmem>>, vector<256x32xbf16>
    tpu.vector_store %arg8[%c0_30, %c192], %33 {strides = array<i32>} : memref<256x288xbf16, #tpu.memory_space<vmem>>, vector<256x32xbf16>,
    %c2_31 = arith.constant 2 : index
    %c8_32 = arith.constant 8 : index
    %c0_33 = arith.constant 0 : index
    %35 = vector.load %arg7[%c2_31, %c8_32, %c0_33] : memref<18x32x32xf32, #tpu.memory_space<vmem>>, vector<16x16x32xf32>
    %36 = vector.shape_cast %35 : vector<16x16x32xf32> to vector<256x32xf32>
    %37 = arith.truncf %36 : vector<256x32xf32> to vector<256x32xbf16>
    %c0_34 = arith.constant 0 : index
    %c224 = arith.constant 224 : index
    %38 = vector.load %arg8[%c0_34, %c224] : memref<256x288xbf16, #tpu.memory_space<vmem>>, vector<256x32xbf16>
    tpu.vector_store %arg8[%c0_34, %c224], %37 {strides = array<i32>} : memref<256x288xbf16, #tpu.memory_space<vmem>>, vector<256x32xbf16>,
    %c2_35 = arith.constant 2 : index
    %c9_36 = arith.constant 9 : index
    %c0_37 = arith.constant 0 : index
    %39 = vector.load %arg7[%c2_35, %c9_36, %c0_37] : memref<18x32x32xf32, #tpu.memory_space<vmem>>, vector<16x16x32xf32>
    %40 = vector.shape_cast %39 : vector<16x16x32xf32> to vector<256x32xf32>
    %41 = arith.truncf %40 : vector<256x32xf32> to vector<256x32xbf16>
    %c0_38 = arith.constant 0 : index
    %c256 = arith.constant 256 : index
    %42 = vector.load %arg8[%c0_38, %c256] : memref<256x288xbf16, #tpu.memory_space<vmem>>, vector<256x32xbf16>
    tpu.vector_store %arg8[%c0_38, %c256], %41 {strides = array<i32>} : memref<256x288xbf16, #tpu.memory_space<vmem>>, vector<256x32xbf16>,
    %c0_39 = arith.constant 0 : index
    %c0_40 = arith.constant 0 : index
    %43 = vector.load %arg8[%c0_39, %c0_40] : memref<256x288xbf16, #tpu.memory_space<vmem>>, vector<256x288xbf16>
    %c0_41 = arith.constant 0 : index
    %c0_42 = arith.constant 0 : index
    %44 = vector.load %arg2[%c0_41, %c0_42] : memref<288x96xbf16, #tpu.memory_space<vmem>>, vector<288x96xbf16>
    %cst = arith.constant dense<0.000000e+00> : vector<256x96xf32>
    %45 = tpu.matmul %43, %44, %cst {dimension_numbers = #tpu.dot_dimension_numbers<[1], [0], [0], [1], [0, 0, 1, 1], [], []>} : vector<256x288xbf16>, vector<288x96xbf16>, vector<256x96xf32> -> vector<256x96xf32>
    %c0_43 = arith.constant 0 : index
    %c0_44 = arith.constant 0 : index
    %46 = vector.load %arg3[%c0_43, %c0_44] : memref<1x96xf32, #tpu.memory_space<vmem>>, vector<1x96xf32>
    %47 = vector.broadcast %46 : vector<1x96xf32> to vector<256x96xf32>
    %48 = arith.addf %45, %47 : vector<256x96xf32>
    %cst_45 = arith.constant 0.000000e+00 : f32
    %49 = vector.broadcast %cst_45 : f32 to vector<256x96xf32>
    %50 = arith.maximumf %48, %49 : vector<256x96xf32>
    %51 = arith.truncf %50 : vector<256x96xf32> to vector<256x96xbf16>
    %c0_46 = arith.constant 0 : index
    %c0_47 = arith.constant 0 : index
    %52 = vector.load %arg4[%c0_46, %c0_47] : memref<96x128xbf16, #tpu.memory_space<vmem>>, vector<96x128xbf16>
    %cst_48 = arith.constant dense<0.000000e+00> : vector<256x128xf32>
    %53 = tpu.matmul %51, %52, %cst_48 {dimension_numbers = #tpu.dot_dimension_numbers<[1], [0], [0], [1], [0, 0, 1, 1], [], []>} : vector<256x96xbf16>, vector<96x128xbf16>, vector<256x128xf32> -> vector<256x128xf32>
    %c0_49 = arith.constant 0 : index
    %c0_50 = arith.constant 0 : index
    %54 = vector.load %arg5[%c0_49, %c0_50] : memref<1x128xf32, #tpu.memory_space<vmem>>, vector<1x128xf32>
    %55 = vector.broadcast %54 : vector<1x128xf32> to vector<256x128xf32>
    %56 = arith.addf %53, %55 : vector<256x128xf32>
    %57 = arith.negf %56 : vector<256x128xf32>
    %58 = math.exp %57 : vector<256x128xf32>
    %cst_51 = arith.constant 1.000000e+00 : f32
    %59 = vector.broadcast %cst_51 : f32 to vector<256x128xf32>
    %60 = arith.addf %59, %58 : vector<256x128xf32>
    %61 = arith.divf %59, %60 : vector<256x128xf32>
    %62 = vector.shape_cast %61 : vector<256x128xf32> to vector<16x16x128xf32>
    %c1_52 = arith.constant 1 : index
    %c8_53 = arith.constant 8 : index
    %c0_54 = arith.constant 0 : index
    %63 = vector.load %arg9[%c1_52, %c8_53, %c0_54] : memref<18x32x128xf32, #tpu.memory_space<vmem>>, vector<16x16x128xf32>
    tpu.vector_store %arg9[%c1_52, %c8_53, %c0_54], %62 {strides = array<i32>} : memref<18x32x128xf32, #tpu.memory_space<vmem>>, vector<16x16x128xf32>,
    %c0_55 = arith.constant 0 : index
    %c7_56 = arith.constant 7 : index
    %c0_57 = arith.constant 0 : index
    %64 = vector.load %arg9[%c0_55, %c7_56, %c0_57] : memref<18x32x128xf32, #tpu.memory_space<vmem>>, vector<16x16x128xf32>
    %65 = arith.maximumf %62, %64 : vector<16x16x128xf32>
    %c0_58 = arith.constant 0 : index
    %c8_59 = arith.constant 8 : index
    %c0_60 = arith.constant 0 : index
    %66 = vector.load %arg9[%c0_58, %c8_59, %c0_60] : memref<18x32x128xf32, #tpu.memory_space<vmem>>, vector<16x16x128xf32>
    %67 = arith.maximumf %65, %66 : vector<16x16x128xf32>
    %c0_61 = arith.constant 0 : index
    %c9_62 = arith.constant 9 : index
    %c0_63 = arith.constant 0 : index
    %68 = vector.load %arg9[%c0_61, %c9_62, %c0_63] : memref<18x32x128xf32, #tpu.memory_space<vmem>>, vector<16x16x128xf32>
    %69 = arith.maximumf %67, %68 : vector<16x16x128xf32>
    %c1_64 = arith.constant 1 : index
    %c7_65 = arith.constant 7 : index
    %c0_66 = arith.constant 0 : index
    %70 = vector.load %arg9[%c1_64, %c7_65, %c0_66] : memref<18x32x128xf32, #tpu.memory_space<vmem>>, vector<16x16x128xf32>
    %71 = arith.maximumf %69, %70 : vector<16x16x128xf32>
    %c1_67 = arith.constant 1 : index
    %c8_68 = arith.constant 8 : index
    %c0_69 = arith.constant 0 : index
    %72 = vector.load %arg9[%c1_67, %c8_68, %c0_69] : memref<18x32x128xf32, #tpu.memory_space<vmem>>, vector<16x16x128xf32>
    %73 = arith.maximumf %71, %72 : vector<16x16x128xf32>
    %c1_70 = arith.constant 1 : index
    %c9_71 = arith.constant 9 : index
    %c0_72 = arith.constant 0 : index
    %74 = vector.load %arg9[%c1_70, %c9_71, %c0_72] : memref<18x32x128xf32, #tpu.memory_space<vmem>>, vector<16x16x128xf32>
    %75 = arith.maximumf %73, %74 : vector<16x16x128xf32>
    %c2_73 = arith.constant 2 : index
    %c7_74 = arith.constant 7 : index
    %c0_75 = arith.constant 0 : index
    %76 = vector.load %arg9[%c2_73, %c7_74, %c0_75] : memref<18x32x128xf32, #tpu.memory_space<vmem>>, vector<16x16x128xf32>
    %77 = arith.maximumf %75, %76 : vector<16x16x128xf32>
    %c2_76 = arith.constant 2 : index
    %c8_77 = arith.constant 8 : index
    %c0_78 = arith.constant 0 : index
    %78 = vector.load %arg9[%c2_76, %c8_77, %c0_78] : memref<18x32x128xf32, #tpu.memory_space<vmem>>, vector<16x16x128xf32>
    %79 = arith.maximumf %77, %78 : vector<16x16x128xf32>
    %c2_79 = arith.constant 2 : index
    %c9_80 = arith.constant 9 : index
    %c0_81 = arith.constant 0 : index
    %80 = vector.load %arg9[%c2_79, %c9_80, %c0_81] : memref<18x32x128xf32, #tpu.memory_space<vmem>>, vector<16x16x128xf32>
    %81 = arith.maximumf %79, %80 : vector<16x16x128xf32>
    %82 = arith.cmpf ole, %81, %62 : vector<16x16x128xf32>
    %83 = vector.shape_cast %82 : vector<16x16x128xi1> to vector<256x128xi1>
    %84 = tpu.iota {dimensions = array<i32: 1>} : vector<256x128xi32>
    %cst_82 = arith.constant 0.000000e+00 : f32
    %85 = vector.broadcast %cst_82 : f32 to vector<256x128xf32>
    %86 = arith.select %83, %61, %85 : vector<256x128xi1>, vector<256x128xf32>
    %c8_i32 = arith.constant 8 : i32
    %87 = vector.broadcast %c8_i32 : i32 to vector<256x128xi32>
    %88 = arith.cmpi slt, %84, %87 : vector<256x128xi32>
    %89 = arith.select %88, %86, %56 : vector<256x128xi1>, vector<256x128xf32>
    %c0_83 = arith.constant 0 : index
    %c0_84 = arith.constant 0 : index
    %c0_85 = arith.constant 0 : index
    %90 = vector.load %arg6[%c0_83, %c0_84, %c0_85] : memref<1x256x128xf32, #tpu.memory_space<vmem>>, vector<1x256x128xf32>
    %91 = vector.shape_cast %90 : vector<1x256x128xf32> to vector<256x128xf32>
    %92 = vector.shape_cast %89 : vector<256x128xf32> to vector<1x256x128xf32>
    tpu.vector_store %arg6[%c0_83, %c0_84, %c0_85], %92 {strides = array<i32>} : memref<1x256x128xf32, #tpu.memory_space<vmem>>, vector<1x256x128xf32>,
    return
  }
  func.func @transform_0(%arg0: i32) -> (i32, i32, i32, i32) {
    %c0_i32 = arith.constant 0 : i32
    %c0_i32_0 = arith.constant 0 : i32
    %c0_i32_1 = arith.constant 0 : i32
    %c0_i32_2 = arith.constant 0 : i32
    return %arg0, %c0_i32, %c0_i32_0, %c0_i32_1 : i32, i32, i32, i32
  }
  func.func @transform_1(%arg0: i32) -> (i32, i32) {
    %c0_i32 = arith.constant 0 : i32
    %c0_i32_0 = arith.constant 0 : i32
    %c0_i32_1 = arith.constant 0 : i32
    return %c0_i32, %c0_i32_0 : i32, i32
  }
  func.func @transform_2(%arg0: i32) -> (i32, i32) {
    %c0_i32 = arith.constant 0 : i32
    %c0_i32_0 = arith.constant 0 : i32
    %c0_i32_1 = arith.constant 0 : i32
    return %c0_i32, %c0_i32_0 : i32, i32
  }
  func.func @transform_3(%arg0: i32) -> (i32, i32) {
    %c0_i32 = arith.constant 0 : i32
    %c0_i32_0 = arith.constant 0 : i32
    %c0_i32_1 = arith.constant 0 : i32
    return %c0_i32, %c0_i32_0 : i32, i32
  }
  func.func @transform_4(%arg0: i32) -> (i32, i32) {
    %c0_i32 = arith.constant 0 : i32
    %c0_i32_0 = arith.constant 0 : i32
    %c0_i32_1 = arith.constant 0 : i32
    return %c0_i32, %c0_i32_0 : i32, i32
  }
  func.func @transform_5(%arg0: i32) -> (i32, i32, i32) {
    %c0_i32 = arith.constant 0 : i32
    %c0_i32_0 = arith.constant 0 : i32
    %c0_i32_1 = arith.constant 0 : i32
    return %arg0, %c0_i32, %c0_i32_0 : i32, i32, i32
  }
}

</mosaic_0001>

<bundles_post_ra>
// kernel: custom-call
= control target key start
LH: loop header
LB: loop body
LE: loop exit
PB: predicated region body
PF: predicated region fallthrough
CT: control target
= control target key end

     0   :  { %v1593_v0 = vmov 2147483648   ;;  %v1594_v1 = vmov 2147483647   ;;  %s1864_s0 = inlined_call_operand.vmem [shape: f32[2,2048], index: 0, kind: input, shape index: {}]   ;;  %s1865_s1 = inlined_call_operand.vmem [shape: f32[2,16], index: 1, kind: output, shape index: {0}]   ;;  %s1866_s2 = inlined_call_operand.vmem [shape: s32[2,16], index: 2, kind: output, shape index: {1}]  }
   0x1   :  { %6 = vst [vmem:[#allocation11] sm:$0xff] %v1593_v0  ;;  %8 = vst [vmem:[#allocation11 + $0x8] sm:$0xff] %v1593_v0 }
   0x2   :  { %9 = vst [vmem:[#allocation13 + $0x8] sm:$0xff] %v1594_v1  ;;  %11 = vst [vmem:[#allocation13] sm:$0xff] %v1594_v1 }
   0x3   :  { %v41_v2 = vlaneseq  ;;  %v28_v3 = vld [vmem:[%s1864_s0] sm:$0xff]  ;;  %v1595_v4 = vmov 2147483648   ;;  %v1596_v5 = vmov 2147483647   ;;  %v30_v6 = vld [vmem:[%s1864_s0 + $0x8] sm:$0xff]  ;;  %v32_v7 = vld [vmem:[%s1864_s0 + $0x10] sm:$0xff] }
   0x4   :  { %106 = vst [vmem:[#allocation12] sm:$0xff] %v1595_v4  ;;  %108 = vst [vmem:[#allocation12 + $0x8] sm:$0xff] %v1595_v4  ;;  %v34_v8 = vld [vmem:[%s1864_s0 + $0x18] sm:$0xff]  ;;  %vm51_vm0 = vcmp.lt.s32.totalorder %v28_v3, 0  ;;  %v52_v12 = vsub.s32 2147483647, %v28_v3 }
   0x5   :  { %109 = vst [vmem:[#allocation14] sm:$0xff] %v1596_v5  ;;  %111 = vst [vmem:[#allocation14 + $0x8] sm:$0xff] %v1596_v5  ;;  %v1630_v9 = vshrl.u32 %v41_v2, 7  ;;  %v42_v10 = vand.u32 127, %v41_v2  ;;  %v61_v13 = vsub.s32 2147483647, %v30_v6 }
   0x6   :  { %v70_v14 = vsub.s32 2147483647, %v32_v7  ;;  %v79_v15 = vsub.s32 2147483647, %v34_v8  ;;  %vm60_vm1 = vcmp.lt.s32.totalorder %v30_v6, 0  ;;  %vm69_vm2 = vcmp.lt.s32.totalorder %v32_v7, 0 }
   0x7   :  { %v45_v11 = vshrl.u32 %v1630_v9, 1  ;;  %vm78_vm3 = vcmp.lt.s32.totalorder %v34_v8, 0  ;;  %v53_v18 = vsel %vm51_vm0, %v52_v12, %v28_v3  ;;  %v62_v19 = vsel %vm60_vm1, %v61_v13, %v30_v6  ;;  %s1634_s0 = smov 0  }
   0x8   :  { %v71_v20 = vsel %vm69_vm2, %v70_v14, %v32_v7  ;;  %v80_v21 = vsel %vm78_vm3, %v79_v15, %v34_v8 }
   0x9   :  { %v47_v16 = vmul.u32 128, %v45_v11 }
   0xb   :  { %v48_v17 = vadd.s32 %v47_v16, %v42_v10 }
   0xd   :  { %vm55_vm4 = vcmp.lt.s32.totalorder %v48_v17, 2048  ;;  %v63_v22 = vadd.s32 512, %v48_v17  ;;  %v72_v23 = vadd.s32 1024, %v48_v17  ;;  %v81_v24 = vadd.s32 1536, %v48_v17  ;;  %95 = vst [vmem:[#allocation16] sm:$0xff] %v48_v17 }
   0xe   :  { %v56_v25 = vsel %vm55_vm4, %v53_v18, 2147483648 }
   0xf   :  { %57 = vst [vmem:[#allocation15] sm:$0xff] %v56_v25  ;;  %vm64_vm5 = vcmp.lt.s32.totalorder %v63_v22, 2048  ;;  %vm73_vm6 = vcmp.lt.s32.totalorder %v72_v23, 2048  ;;  %vm82_vm7 = vcmp.lt.s32.totalorder %v81_v24, 2048  ;;  %98 = vst [vmem:[#allocation16 + $0x8] sm:$0xff] %v63_v22 }
  0x10   :  { %101 = vst [vmem:[#allocation16 + $0x10] sm:$0xff] %v72_v23  ;;  %104 = vst [vmem:[#allocation16 + $0x18] sm:$0xff] %v81_v24  ;;  %v65_v26 = vsel %vm64_vm5, %v62_v19, 2147483648  ;;  %v74_v27 = vsel %vm73_vm6, %v71_v20, 2147483648  ;;  %v83_v28 = vsel %vm82_vm7, %v80_v21, 2147483648 }
  0x11   :  { %66 = vst [vmem:[#allocation15 + $0x8] sm:$0xff] %v65_v26  ;;  %75 = vst [vmem:[#allocation15 + $0x10] sm:$0xff] %v74_v27 }
  0x12   :  { %84 = vst [vmem:[#allocation15 + $0x18] sm:$0xff] %v83_v28 }
  0x13 LB: > { %s471_s17 = scalar_lea.vmem [#allocation12], %s1591_s0  ;;  %s473_s18 = scalar_lea.vmem [#allocation14], %s1591_s0  ;;  %s1591_s0 = sphi %s1634_s0, %s118_s0  }
  0x14   : > { %v120_v30 = vld [vmem:[#allocation16] sm:$0xff]  ;;  %s118_s0 = sadd.s32 1, %s1591_s0  }
  0x15   : > { %p115_p2 = scmp.ge.s32.totalorder %s118_s0, 16  }
  0x16   : > { %v119_v29 = vld [vmem:[#allocation15] sm:$0xff]  ;;  %v125_v32 = vld [vmem:[#allocation16 + $0x8] sm:$0xff] }
  0x17   : > { %vm129_vm10 = vcmp.lt.s32.totalorder %v125_v32, %v120_v30  ;;  %v138_v34 = vld [vmem:[#allocation16 + $0x10] sm:$0xff]  ;;  %v151_v38 = vld [vmem:[#allocation16 + $0x18] sm:$0xff] }
  0x18   : > { %v123_v31 = vld [vmem:[#allocation15 + $0x8] sm:$0xff]  ;;  %v136_v33 = vld [vmem:[#allocation15 + $0x10] sm:$0xff] }
  0x19   : > { %vm127_vm8 = vcmp.gt.s32.totalorder %v123_v31, %v119_v29  ;;  %vm128_vm9 = vcmp.eq.s32.totalorder %v123_v31, %v119_v29  ;;  %v149_v37 = vld [vmem:[#allocation15 + $0x18] sm:$0xff] }
  0x1a   : > { %vm130_vm11 = vmand %vm128_vm9, %vm129_vm10 }
  0x1b   : > { %vm131_vm12 = vmor %vm127_vm8, %vm130_vm11 }
  0x1c   : > { %v132_v35 = vsel %vm131_vm12, %v123_v31, %v119_v29  ;;  %v133_v36 = vsel %vm131_vm12, %v125_v32, %v120_v30 }
  0x1d   : > { %vm140_vm13 = vcmp.gt.s32.totalorder %v136_v33, %v132_v35  ;;  %vm141_vm14 = vcmp.eq.s32.totalorder %v136_v33, %v132_v35  ;;  %vm142_vm15 = vcmp.lt.s32.totalorder %v138_v34, %v133_v36 }
  0x1e   : > { %vm143_vm0 = vmand %vm141_vm14, %vm142_vm15 }
  0x1f   : > { %vm144_vm1 = vmor %vm140_vm13, %vm143_vm0 }
  0x20   : > { %v145_v39 = vsel %vm144_vm1, %v136_v33, %v132_v35  ;;  %v146_v40 = vsel %vm144_vm1, %v138_v34, %v133_v36 }
  0x21   : > { %vm153_vm2 = vcmp.gt.s32.totalorder %v149_v37, %v145_v39  ;;  %vm154_vm3 = vcmp.eq.s32.totalorder %v149_v37, %v145_v39  ;;  %vm155_vm4 = vcmp.lt.s32.totalorder %v151_v38, %v146_v40 }
  0x22   : > { %vm156_vm5 = vmand %vm154_vm3, %vm155_vm4 }
  0x23   : > { %vm157_vm6 = vmor %vm153_vm2, %vm156_vm5 }
  0x24   : > { %v158_v41 = vsel %vm157_vm6, %v149_v37, %v145_v39  ;;  %v159_v42 = vsel %vm157_vm6, %v151_v38, %v146_v40 }
  0x25   : > { %v161_v43 = vrot.slane %v158_v41, 2  ;;  %v162_v44 = vrot.slane %v159_v42, 2 }
  0x27   : > { %vm164_vm7 = vcmp.gt.s32.totalorder %v161_v43, %v158_v41  ;;  %vm165_vm8 = vcmp.eq.s32.totalorder %v161_v43, %v158_v41  ;;  %vm166_vm9 = vcmp.lt.s32.totalorder %v162_v44, %v159_v42 }
  0x28   : > { %vm167_vm10 = vmand %vm165_vm8, %vm166_vm9 }
  0x29   : > { %vm168_vm11 = vmor %vm164_vm7, %vm167_vm10 }
  0x2a   : > { %v169_v45 = vsel %vm168_vm11, %v161_v43, %v158_v41  ;;  %v170_v46 = vsel %vm168_vm11, %v162_v44, %v159_v42 }
  0x2b   : > { %v172_v47 = vrot.slane %v169_v45, 2  ;;  %v173_v48 = vrot.slane %v170_v46, 2 }
  0x2d   : > { %vm175_vm12 = vcmp.gt.s32.totalorder %v172_v47, %v169_v45  ;;  %vm176_vm13 = vcmp.eq.s32.totalorder %v172_v47, %v169_v45  ;;  %vm177_vm14 = vcmp.lt.s32.totalorder %v173_v48, %v170_v46 }
  0x2e   : > { %vm178_vm15 = vmand %vm176_vm13, %vm177_vm14 }
  0x2f   : > { %vm179_vm0 = vmor %vm175_vm12, %vm178_vm15 }
  0x30   : > { %v180_v49 = vsel %vm179_vm0, %v172_v47, %v169_v45  ;;  %v181_v50 = vsel %vm179_vm0, %v173_v48, %v170_v46 }
  0x31   : > { %v183_v51 = vrot.slane %v180_v49, 2  ;;  %v184_v52 = vrot.slane %v181_v50, 2 }
  0x33   : > { %vm186_vm1 = vcmp.gt.s32.totalorder %v183_v51, %v180_v49  ;;  %vm187_vm2 = vcmp.eq.s32.totalorder %v183_v51, %v180_v49  ;;  %vm188_vm3 = vcmp.lt.s32.totalorder %v184_v52, %v181_v50 }
  0x34   : > { %vm189_vm4 = vmand %vm187_vm2, %vm188_vm3 }
  0x35   : > { %vm190_vm5 = vmor %vm186_vm1, %vm189_vm4 }
  0x36   : > { %v192_v53 = vsel %vm190_vm5, %v184_v52, %v181_v50  ;;  %v191_v54 = vsel %vm190_vm5, %v183_v51, %v180_v49 }
  0x37   : > { %226 = vxpose.xlu1.b32.start [1/16] %v192_v53, 128  ;;  %194 = vxpose.xlu0.b32.start [1/16] %v191_v54, 128 }
  0x3b   : > { %227 = vxpose.xlu1.b32.cont [2/16] %v192_v53, 128  ;;  %195 = vxpose.xlu0.b32.cont [2/16] %v191_v54, 128 }
  0x3f   : > { %228 = vxpose.xlu1.b32.cont [3/16] %v192_v53, 128  ;;  %196 = vxpose.xlu0.b32.cont [3/16] %v191_v54, 128 }
  0x43   : > { %229 = vxpose.xlu1.b32.cont [4/16] %v192_v53, 128  ;;  %197 = vxpose.xlu0.b32.cont [4/16] %v191_v54, 128 }
  0x47   : > { %230 = vxpose.xlu1.b32.cont [5/16] %v192_v53, 128  ;;  %198 = vxpose.xlu0.b32.cont [5/16] %v191_v54, 128 }
  0x4b   : > { %231 = vxpose.xlu1.b32.cont [6/16] %v192_v53, 128  ;;  %199 = vxpose.xlu0.b32.cont [6/16] %v191_v54, 128 }
  0x4f   : > { %232 = vxpose.xlu1.b32.cont [7/16] %v192_v53, 128  ;;  %200 = vxpose.xlu0.b32.cont [7/16] %v191_v54, 128 }
  0x53   : > { %233 = vxpose.xlu1.b32.cont [8/16] %v192_v53, 128  ;;  %201 = vxpose.xlu0.b32.cont [8/16] %v191_v54, 128 }
  0x57   : > { %234 = vxpose.xlu1.b32.cont [9/16] %v192_v53, 128  ;;  %202 = vxpose.xlu0.b32.cont [9/16] %v191_v54, 128 }
  0x5b   : > { %235 = vxpose.xlu1.b32.cont [10/16] %v192_v53, 128  ;;  %203 = vxpose.xlu0.b32.cont [10/16] %v191_v54, 128 }
  0x5f   : > { %236 = vxpose.xlu1.b32.cont [11/16] %v192_v53, 128  ;;  %204 = vxpose.xlu0.b32.cont [11/16] %v191_v54, 128 }
  0x63   : > { %237 = vxpose.xlu1.b32.cont [12/16] %v192_v53, 128  ;;  %205 = vxpose.xlu0.b32.cont [12/16] %v191_v54, 128 }
  0x67   : > { %238 = vxpose.xlu1.b32.cont [13/16] %v192_v53, 128  ;;  %206 = vxpose.xlu0.b32.cont [13/16] %v191_v54, 128 }
  0x6b   : > { %239 = vxpose.xlu1.b32.cont [14/16] %v192_v53, 128  ;;  %207 = vxpose.xlu0.b32.cont [14/16] %v191_v54, 128 }
  0x6f   : > { %240 = vxpose.xlu1.b32.cont [15/16] %v192_v53, 128  ;;  %208 = vxpose.xlu0.b32.cont [15/16] %v191_v54, 128 }
  0x73   : > { %241 = vxpose.xlu1.b32.end [16/16] %v192_v53, 128  ;;  %209 = vxpose.xlu0.b32.end [16/16] %v191_v54, 128 }
  0xb3   : > { %v242_v55 = vpop.trf.xlu1  ;;  %v210_v56 = vpop.trf.xlu0 }
  0xb7   : > { %v243_v57 = vpop.trf.xlu1  ;;  %v211_v58 = vpop.trf.xlu0 }
  0xb8   : > { %vm262_vm6 = vcmp.lt.s32.totalorder %v243_v57, %v242_v55  ;;  %vm260_vm7 = vcmp.gt.s32.totalorder %v211_v58, %v210_v56  ;;  %vm261_vm8 = vcmp.eq.s32.totalorder %v211_v58, %v210_v56 }
  0xb9   : > { %vm263_vm9 = vmand %vm261_vm8, %vm262_vm6 }
  0xba   : > { %vm264_vm10 = vmor %vm260_vm7, %vm263_vm9 }
  0xbb   : > { %v265_v59 = vsel %vm264_vm10, %v211_v58, %v210_v56  ;;  %v244_v60 = vpop.trf.xlu1  ;;  %v266_v61 = vsel %vm264_vm10, %v243_v57, %v242_v55  ;;  %v212_v62 = vpop.trf.xlu0 }
  0xbc   : > { %vm271_vm11 = vcmp.lt.s32.totalorder %v244_v60, %v266_v61  ;;  %vm269_vm12 = vcmp.gt.s32.totalorder %v212_v62, %v265_v59  ;;  %vm270_vm13 = vcmp.eq.s32.totalorder %v212_v62, %v265_v59 }
  0xbd   : > { %vm272_vm14 = vmand %vm270_vm13, %vm271_vm11 }
  0xbe   : > { %vm273_vm15 = vmor %vm269_vm12, %vm272_vm14 }
  0xbf   : > { %v274_v63 = vsel %vm273_vm15, %v212_v62, %v265_v59  ;;  %v245_v0 = vpop.trf.xlu1  ;;  %v275_v1 = vsel %vm273_vm15, %v244_v60, %v266_v61  ;;  %v213_v3 = vpop.trf.xlu0 }
  0xc0   : > { %vm280_vm0 = vcmp.lt.s32.totalorder %v245_v0, %v275_v1  ;;  %vm278_vm1 = vcmp.gt.s32.totalorder %v213_v3, %v274_v63  ;;  %vm279_vm2 = vcmp.eq.s32.totalorder %v213_v3, %v274_v63 }
  0xc1   : > { %vm281_vm3 = vmand %vm279_vm2, %vm280_vm0 }
  0xc2   : > { %vm282_vm4 = vmor %vm278_vm1, %vm281_vm3 }
  0xc3   : > { %v283_v4 = vsel %vm282_vm4, %v213_v3, %v274_v63  ;;  %v246_v5 = vpop.trf.xlu1  ;;  %v284_v6 = vsel %vm282_vm4, %v245_v0, %v275_v1  ;;  %v214_v7 = vpop.trf.xlu0 }
  0xc4   : > { %vm289_vm5 = vcmp.lt.s32.totalorder %v246_v5, %v284_v6  ;;  %vm287_vm6 = vcmp.gt.s32.totalorder %v214_v7, %v283_v4  ;;  %vm288_vm7 = vcmp.eq.s32.totalorder %v214_v7, %v283_v4 }
  0xc5   : > { %vm290_vm8 = vmand %vm288_vm7, %vm289_vm5 }
  0xc6   : > { %vm291_vm9 = vmor %vm287_vm6, %vm290_vm8 }
  0xc7   : > { %v292_v8 = vsel %vm291_vm9, %v214_v7, %v283_v4  ;;  %v247_v10 = vpop.trf.xlu1  ;;  %v293_v11 = vsel %vm291_vm9, %v246_v5, %v284_v6  ;;  %v215_v12 = vpop.trf.xlu0 }
  0xc8   : > { %vm298_vm10 = vcmp.lt.s32.totalorder %v247_v10, %v293_v11  ;;  %vm296_vm11 = vcmp.gt.s32.totalorder %v215_v12, %v292_v8  ;;  %vm297_vm12 = vcmp.eq.s32.totalorder %v215_v12, %v292_v8 }
  0xc9   : > { %vm299_vm13 = vmand %vm297_vm12, %vm298_vm10 }
  0xca   : > { %vm300_vm14 = vmor %vm296_vm11, %vm299_vm13 }
  0xcb   : > { %v301_v13 = vsel %vm300_vm14, %v215_v12, %v292_v8  ;;  %v248_v14 = vpop.trf.xlu1  ;;  %v302_v15 = vsel %vm300_vm14, %v247_v10, %v293_v11  ;;  %v216_v16 = vpop.trf.xlu0 }
  0xcc   : > { %vm307_vm15 = vcmp.lt.s32.totalorder %v248_v14, %v302_v15  ;;  %vm305_vm0 = vcmp.gt.s32.totalorder %v216_v16, %v301_v13  ;;  %vm306_vm1 = vcmp.eq.s32.totalorder %v216_v16, %v301_v13 }
  0xcd   : > { %vm308_vm2 = vmand %vm306_vm1, %vm307_vm15 }
  0xce   : > { %vm309_vm3 = vmor %vm305_vm0, %vm308_vm2 }
  0xcf   : > { %v310_v17 = vsel %vm309_vm3, %v216_v16, %v301_v13  ;;  %v249_v18 = vpop.trf.xlu1  ;;  %v311_v19 = vsel %vm309_vm3, %v248_v14, %v302_v15  ;;  %v217_v20 = vpop.trf.xlu0 }
  0xd0   : > { %vm316_vm4 = vcmp.lt.s32.totalorder %v249_v18, %v311_v19  ;;  %vm314_vm5 = vcmp.gt.s32.totalorder %v217_v20, %v310_v17  ;;  %vm315_vm6 = vcmp.eq.s32.totalorder %v217_v20, %v310_v17 }
  0xd1   : > { %vm317_vm7 = vmand %vm315_vm6, %vm316_vm4 }
  0xd2   : > { %vm318_vm8 = vmor %vm314_vm5, %vm317_vm7 }
  0xd3   : > { %v319_v21 = vsel %vm318_vm8, %v217_v20, %v310_v17  ;;  %v250_v22 = vpop.trf.xlu1  ;;  %v320_v23 = vsel %vm318_vm8, %v249_v18, %v311_v19  ;;  %v218_v24 = vpop.trf.xlu0 }
  0xd4   : > { %vm325_vm9 = vcmp.lt.s32.totalorder %v250_v22, %v320_v23  ;;  %vm323_vm10 = vcmp.gt.s32.totalorder %v218_v24, %v319_v21  ;;  %vm324_vm11 = vcmp.eq.s32.totalorder %v218_v24, %v319_v21 }
  0xd5   : > { %vm326_vm12 = vmand %vm324_vm11, %vm325_vm9 }
  0xd6   : > { %vm327_vm13 = vmor %vm323_vm10, %vm326_vm12 }
  0xd7   : > { %v328_v25 = vsel %vm327_vm13, %v218_v24, %v319_v21  ;;  %v251_v26 = vpop.trf.xlu1  ;;  %v329_v27 = vsel %vm327_vm13, %v250_v22, %v320_v23  ;;  %v219_v28 = vpop.trf.xlu0  ;;  %v1597_v24 = vmov 2147483648  }
  0xd8   : > { %vm334_vm14 = vcmp.lt.s32.totalorder %v251_v26, %v329_v27  ;;  %vm332_vm15 = vcmp.gt.s32.totalorder %v219_v28, %v328_v25  ;;  %vm333_vm0 = vcmp.eq.s32.totalorder %v219_v28, %v328_v25 }
  0xd9   : > { %vm335_vm1 = vmand %vm333_vm0, %vm334_vm14 }
  0xda   : > { %vm336_vm2 = vmor %vm332_vm15, %vm335_vm1 }
  0xdb   : > { %v337_v29 = vsel %vm336_vm2, %v219_v28, %v328_v25  ;;  %v252_v30 = vpop.trf.xlu1  ;;  %v338_v31 = vsel %vm336_vm2, %v251_v26, %v329_v27  ;;  %v220_v32 = vpop.trf.xlu0  ;;  %v1598_v25 = vmov 2147483647  }
  0xdc   : > { %vm343_vm3 = vcmp.lt.s32.totalorder %v252_v30, %v338_v31  ;;  %vm341_vm4 = vcmp.gt.s32.totalorder %v220_v32, %v337_v29  ;;  %vm342_vm5 = vcmp.eq.s32.totalorder %v220_v32, %v337_v29 }
  0xdd   : > { %vm344_vm6 = vmand %vm342_vm5, %vm343_vm3 }
  0xde   : > { %vm345_vm7 = vmor %vm341_vm4, %vm344_vm6 }
  0xdf   : > { %v346_v33 = vsel %vm345_vm7, %v220_v32, %v337_v29  ;;  %v253_v34 = vpop.trf.xlu1  ;;  %v347_v35 = vsel %vm345_vm7, %v252_v30, %v338_v31  ;;  %v221_v36 = vpop.trf.xlu0  ;;  %v571_v32 = vld [vmem:[#allocation11] sm:$0xff] (%p115_p2) }
  0xe0   : > { %vm352_vm8 = vcmp.lt.s32.totalorder %v253_v34, %v347_v35  ;;  %vm350_vm9 = vcmp.gt.s32.totalorder %v221_v36, %v346_v33  ;;  %vm351_vm10 = vcmp.eq.s32.totalorder %v221_v36, %v346_v33 }
  0xe1   : > { %vm353_vm11 = vmand %vm351_vm10, %vm352_vm8 }
  0xe2   : > { %vm354_vm12 = vmor %vm350_vm9, %vm353_vm11 }
  0xe3   : > { %v355_v37 = vsel %vm354_vm12, %v221_v36, %v346_v33  ;;  %v254_v38 = vpop.trf.xlu1  ;;  %v356_v39 = vsel %vm354_vm12, %v253_v34, %v347_v35  ;;  %v222_v40 = vpop.trf.xlu0  ;;  %v572_v33 = vld [vmem:[#allocation13 + $0x8] sm:$0xff] (%p115_p2)  ;;  %v594_v35 = vld [vmem:[#allocation13] sm:$0xff] (%p115_p2)  ;;  %v1599_v36 = vmov (%p115_p2), 839939668  }
  0xe4   : > { %vm361_vm13 = vcmp.lt.s32.totalorder %v254_v38, %v356_v39  ;;  %vm359_vm14 = vcmp.gt.s32.totalorder %v222_v40, %v355_v37  ;;  %vm360_vm15 = vcmp.eq.s32.totalorder %v222_v40, %v355_v37  ;;  %v592_v34 = vld [vmem:[#allocation11 + $0x8] sm:$0xff] (%p115_p2) }
  0xe5   : > { %vm362_vm0 = vmand %vm360_vm15, %vm361_vm13 }
  0xe6   : > { %vm363_vm1 = vmor %vm359_vm14, %vm362_vm0 }
  0xe7   : > { %v364_v41 = vsel %vm363_vm1, %v222_v40, %v355_v37  ;;  %v255_v42 = vpop.trf.xlu1  ;;  %v365_v43 = vsel %vm363_vm1, %v254_v38, %v356_v39  ;;  %v223_v44 = vpop.trf.xlu0  ;;  %v647_v37 = vunpack.c.l.s4 (%p115_p2), %v1599_v36 }
  0xe8   : > { %vm370_vm2 = vcmp.lt.s32.totalorder %v255_v42, %v365_v43  ;;  %vm368_vm3 = vcmp.gt.s32.totalorder %v223_v44, %v364_v41  ;;  %vm369_vm4 = vcmp.eq.s32.totalorder %v223_v44, %v364_v41 }
  0xe9   : > { %vm371_vm5 = vmand %vm369_vm4, %vm370_vm2  ;;  %v648_v38 = vunpack.c.0.s8 (%p115_p2), %v647_v37 }
  0xea   : > { %vm372_vm6 = vmor %vm368_vm3, %vm371_vm5 }
  0xeb   : > { %v373_v45 = vsel %vm372_vm6, %v223_v44, %v364_v41  ;;  %v256_v46 = vpop.trf.xlu1  ;;  %v374_v47 = vsel %vm372_vm6, %v255_v42, %v365_v43  ;;  %v224_v48 = vpop.trf.xlu0  ;;  %v1600_v42 = vmov (%p115_p2), 1417023538  }
  0xec   : > { %vm379_vm7 = vcmp.lt.s32.totalorder %v256_v46, %v374_v47  ;;  %vm377_vm8 = vcmp.gt.s32.totalorder %v224_v48, %v373_v45  ;;  %vm378_vm9 = vcmp.eq.s32.totalorder %v224_v48, %v373_v45  ;;  %v675_v43 = vunpack.c.l.s4 (%p115_p2), %v1600_v42 }
  0xed   : > { %vm380_vm10 = vmand %vm378_vm9, %vm379_vm7 }
  0xee   : > { %vm381_vm11 = vmor %vm377_vm8, %vm380_vm10 }
  0xef   : > { %v382_v49 = vsel %vm381_vm11, %v224_v48, %v373_v45  ;;  %v257_v50 = vpop.trf.xlu1  ;;  %v383_v51 = vsel %vm381_vm11, %v256_v46, %v374_v47  ;;  %v225_v52 = vpop.trf.xlu0  ;;  %v1655_v48 = vsub.s32 (%p115_p2), %v648_v38, %v1630_v9 }
  0xf0   : > { %vm388_vm12 = vcmp.lt.s32.totalorder %v257_v50, %v383_v51  ;;  %vm386_vm13 = vcmp.gt.s32.totalorder %v225_v52, %v382_v49  ;;  %vm387_vm14 = vcmp.eq.s32.totalorder %v225_v52, %v382_v49 }
  0xf1   : > { %vm389_vm15 = vmand %vm387_vm14, %vm388_vm12 }
  0xf2   : > { %vm390_vm0 = vmor %vm386_vm13, %vm389_vm15 }
  0xf3   : > { %v391_v53 = vsel %vm390_vm0, %v225_v52, %v382_v49  ;;  %v392_v54 = vsel %vm390_vm0, %v257_v50, %v383_v51  ;;  %v668_v49 = vand.u32 (%p115_p2), 4, %v1630_v9  ;;  %v676_v50 = vunpack.c.0.s8 (%p115_p2), %v675_v43 }
  0xf4   : > { %v394_v55 = vrot.slane %v391_v53, 1  ;;  %v395_v56 = vrot.slane %v392_v54, 1 }
  0xf6   : > { %vm397_vm1 = vcmp.gt.s32.totalorder %v394_v55, %v391_v53  ;;  %vm398_vm2 = vcmp.eq.s32.totalorder %v394_v55, %v391_v53  ;;  %vm399_vm3 = vcmp.lt.s32.totalorder %v395_v56, %v392_v54 }
  0xf7   : > { %vm400_vm4 = vmand %vm398_vm2, %vm399_vm3 }
  0xf8   : > { %vm401_vm5 = vmor %vm397_vm1, %vm400_vm4 }
  0xf9   : > { %v402_v57 = vsel %vm401_vm5, %v394_v55, %v391_v53  ;;  %v403_v58 = vsel %vm401_vm5, %v395_v56, %v392_v54 }
  0xfa   : > { %v405_v59 = vrot.slane %v402_v57, 1  ;;  %v406_v60 = vrot.slane %v403_v58, 1 }
  0xfc   : > { %vm408_vm6 = vcmp.gt.s32.totalorder %v405_v59, %v402_v57  ;;  %vm409_vm7 = vcmp.eq.s32.totalorder %v405_v59, %v402_v57  ;;  %vm410_vm8 = vcmp.lt.s32.totalorder %v406_v60, %v403_v58 }
  0xfd   : > { %vm411_vm9 = vmand %vm409_vm7, %vm410_vm8 }
  0xfe   : > { %vm412_vm10 = vmor %vm408_vm6, %vm411_vm9 }
  0xff   : > { %v413_v61 = vsel %vm412_vm10, %v405_v59, %v402_v57  ;;  %v414_v62 = vsel %vm412_vm10, %v406_v60, %v403_v58  ;;  %v1875_v58 = vmov (%p115_p2), 0 }
 0x100   : > { %v416_v63 = vrot.slane %v413_v61, 1  ;;  %v417_v0 = vrot.slane %v414_v62, 1 }
 0x102   : > { %vm421_vm11 = vcmp.lt.s32.totalorder %v417_v0, %v414_v62  ;;  %vm419_vm12 = vcmp.gt.s32.totalorder %v416_v63, %v413_v61  ;;  %vm420_vm13 = vcmp.eq.s32.totalorder %v416_v63, %v413_v61 }
 0x103   : > { %vm422_vm14 = vmand %vm420_vm13, %vm421_vm11 }
 0x104   : > { %vm423_vm15 = vmor %vm419_vm12, %vm422_vm14 }
 0x105   : > { %v424_v1 = vsel %vm423_vm15, %v416_v63, %v413_v61  ;;  %v425_v3 = vsel %vm423_vm15, %v417_v0, %v414_v62  ;;  %v1601_v62 = vmov (%p115_p2), 1732584193   ;;  %v1683_v0 = vsub.s32 (%p115_p2), %v676_v50, %v1630_v9 }
 0x106   : > { %v427_v4 = vrot.slane %v424_v1, 1  ;;  %v428_v5 = vrot.slane %v425_v3, 1  ;;  %v703_v63 = vunpack.c.l.s4 (%p115_p2), %v1601_v62 }
 0x108   : > { %vm430_vm0 = vcmp.gt.s32.totalorder %v427_v4, %v424_v1  ;;  %vm431_vm1 = vcmp.eq.s32.totalorder %v427_v4, %v424_v1  ;;  %vm432_vm2 = vcmp.lt.s32.totalorder %v428_v5, %v425_v3 }
 0x109   : > { %vm433_vm3 = vmand %vm431_vm1, %vm432_vm2 }
 0x10a   : > { %vm434_vm4 = vmor %vm430_vm0, %vm433_vm3 }
 0x10b   : > { %v435_v6 = vsel %vm434_vm4, %v427_v4, %v424_v1  ;;  %v436_v7 = vsel %vm434_vm4, %v428_v5, %v425_v3  ;;  %v696_v3 = vand.u32 (%p115_p2), 2, %v1630_v9 }
 0x10c   : > { %v438_v8 = vrot.slane %v435_v6, 1  ;;  %v439_v10 = vrot.slane %v436_v7, 1 }
 0x10e   : > { %vm441_vm5 = vcmp.gt.s32.totalorder %v438_v8, %v435_v6  ;;  %vm442_vm6 = vcmp.eq.s32.totalorder %v438_v8, %v435_v6  ;;  %vm443_vm7 = vcmp.lt.s32.totalorder %v439_v10, %v436_v7 }
 0x10f   : > { %vm444_vm8 = vmand %vm442_vm6, %vm443_vm7 }
 0x110   : > { %vm445_vm9 = vmor %vm441_vm5, %vm444_vm8 }
 0x111   : > { %v446_v11 = vsel %vm445_vm9, %v438_v8, %v435_v6  ;;  %v447_v12 = vsel %vm445_vm9, %v439_v10, %v436_v7  ;;  %v704_v8 = vunpack.c.0.s8 (%p115_p2), %v703_v63 }
 0x112   : > { %v449_v13 = vrot.slane %v446_v11, 1  ;;  %v450_v14 = vrot.slane %v447_v12, 1 }
 0x114   : > { %vm452_vm10 = vcmp.gt.s32.totalorder %v449_v13, %v446_v11  ;;  %vm453_vm11 = vcmp.eq.s32.totalorder %v449_v13, %v446_v11  ;;  %vm454_vm12 = vcmp.lt.s32.totalorder %v450_v14, %v447_v12 }
 0x115   : > { %vm455_vm13 = vmand %vm453_vm11, %vm454_vm12 }
 0x116   : > { %vm456_vm14 = vmor %vm452_vm10, %vm455_vm13 }
 0x117   : > { %v457_v15 = vsel %vm456_vm14, %v449_v13, %v446_v11  ;;  %v458_v16 = vsel %vm456_vm14, %v450_v14, %v447_v12  ;;  %v1877_v12 = vmov (%p115_p2), 0 }
 0x118   : > { %v460_v17 = vrot.slane %v457_v15, 1  ;;  %v461_v18 = vrot.slane %v458_v16, 1 }
 0x11a   : > { %vm463_vm15 = vcmp.gt.s32.totalorder %v460_v17, %v457_v15  ;;  %vm464_vm0 = vcmp.eq.s32.totalorder %v460_v17, %v457_v15  ;;  %vm465_vm1 = vcmp.lt.s32.totalorder %v461_v18, %v458_v16 }
 0x11b   : > { %vm466_vm2 = vmand %vm464_vm0, %vm465_vm1 }
 0x11c   : > { %vm467_vm3 = vmor %vm463_vm15, %vm466_vm2 }
 0x11d   : > { %v469_v19 = vsel %vm467_vm3, %v461_v18, %v458_v16  ;;  %v468_v20 = vsel %vm467_vm3, %v460_v17, %v457_v15  ;;  %v1713_v15 = vsub.s32 (%p115_p2), %v704_v8, %v1630_v9 }
 0x11e   : > { %476 = vxpose.xlu0.b32.start.end [1/1] (short) (narrow) %v469_v19, 8  ;;  %472 = vst [vmem:[%s471_s17] sm:$0x1] %v468_v20  ;;  %474 = vst [vmem:[%s473_s18] sm:$0x1] %v469_v19  ;;  %v724_v19 = vand.u32 (%p115_p2), 1, %v1630_v9  ;;  %v1883_v9 = vmov (%p115_p2), 0 }
 0x125   :  { %v558_v28 = vld [vmem:[#allocation12 + $0x7] ss:$-1 sm:$0xff] (%p115_p2)  ;;  %v560_v29 = vld [vmem:[#allocation12 + $0xf] ss:$-1 sm:$0xff] (%p115_p2) }
 0x126   :  { %v565_v30 = vld [vmem:[#allocation14 + $0x7] ss:$-1 sm:$0xff] (%p115_p2)  ;;  %v567_v31 = vld [vmem:[#allocation14 + $0xf] ss:$-1 sm:$0xff] (%p115_p2)  ;;  %vm577_vm6 = vcmp.gt.s32.totalorder (%p115_p2), %v571_v32, %v560_v29  ;;  %vm578_vm7 = vcmp.eq.s32.totalorder (%p115_p2), %v571_v32, %v560_v29  ;;  %vm601_vm10 = vcmp.gt.s32.totalorder (%p115_p2), %v592_v34, %v558_v28  ;;  %vm602_vm11 = vcmp.eq.s32.totalorder (%p115_p2), %v592_v34, %v558_v28 }
 0x127   :  { %vm579_vm8 = vcmp.lt.s32.totalorder (%p115_p2), %v572_v33, %v567_v31  ;;  %vm603_vm12 = vcmp.lt.s32.totalorder (%p115_p2), %v594_v35, %v565_v30 }
 0x128   :  { %vm580_vm9 = vmand (%p115_p2), %vm578_vm7, %vm579_vm8 }
 0x129   :  { %vm581_vm13 = vmor (%p115_p2), %vm577_vm6, %vm580_vm9 }
 0x12a   :  { %v582_v39 = vsel (%p115_p2), %vm581_vm13, %v571_v32, %v560_v29  ;;  %vm604_vm14 = vmand (%p115_p2), %vm602_vm11, %vm603_vm12  ;;  %v1646_v40 = vsel (%p115_p2), %vm581_vm13, %v560_v29, %v571_v32  ;;  %v1648_v41 = vsel (%p115_p2), %vm581_vm13, %v567_v31, %v572_v33 }
 0x12b   :  { %vm605_vm15 = vmor (%p115_p2), %vm601_vm10, %vm604_vm14  ;;  %vm1670_vm10 = vcmp.ne.s32.totalorder (%p115_p2), %v668_v49, 0 }
 0x12c   :  { %v607_v44 = vsel (%p115_p2), %vm605_vm15, %v592_v34, %v558_v28  ;;  %v1650_v45 = vsel (%p115_p2), %vm605_vm15, %v558_v28, %v592_v34  ;;  %v613_v46 = vsel (%p115_p2), %vm605_vm15, %v594_v35, %v565_v30  ;;  %v1652_v47 = vsel (%p115_p2), %vm605_vm15, %v565_v30, %v594_v35 }
 0x12d   :  { %vm628_vm0 = vcmp.gt.s32.totalorder (%p115_p2), %v582_v39, %v607_v44  ;;  %vm629_vm1 = vcmp.eq.s32.totalorder (%p115_p2), %v582_v39, %v607_v44  ;;  %vm1015_vm7 = vcmp.lt.s32.totalorder (%p115_p2), %v1648_v41, %v1652_v47  ;;  %v1876_v58 = vsel (%p115_p2), %vm1670_vm10, 4294967295, %v1875_v58 }
 0x19a   : > { %v492_v21 = vpop.trf.xlu0 }
 0x19b   : > { %v531_v22 = vrot.slane %v492_v21, 1  ;;  %1563 = vpush %v492_v21 }
 0x19d   : > { %1565 = vpush %v531_v22 }
 0x1cc   : > { %s1564_s19 = spop %1563 }
 0x1cd   : > { %s509_s20 = sshrl.u32 %s1564_s19, 9  ;;  %s511_s21 = ssub.s32 0, %s1564_s19 }
 0x1ce   : > { %p510_p0 = scmp.lt.s32.totalorder %s1564_s19, 0  ;;  %s1555_s22 = smin.u32 %s1564_s19, %s511_s21 }
 0x1cf   : > { %s513_s23 = sand.u32 511, %s1555_s22   ;;  %s1557_s24 = sshll.u32 %s509_s20, 3 }
 0x1d0   : > { %s514_s25 = ssub.s32 0, %s513_s23  ;;  %s1566_s26 = spop %1565 }
 0x1d1   : > { %s1894_s25 = smov (!%p510_p0, %s514_s25), %s513_s23  ;;  %s535_s30 = ssub.s32 0, %s1566_s26 }
 0x1d2   : > { %s516_s27 = sshrl.u32 %s1894_s25, 7  ;;  %s518_s28 = sand.u32 127, %s1894_s25  }
 0x1d3   : > { %s1556_s29 = sshll.u32 %s516_s27, 8  ;;  %s1559_s4 = smin.u32 %s1566_s26, %s535_s30 }
 0x1d4   : > { %s519_s3 = sadd.s32 %s1556_s29, %s518_s28  ;;  %p534_p1 = scmp.lt.s32.totalorder %s1566_s26, 0 }
 0x1d5   : > { %v521_v23 = vstv %s519_s3  ;;  %s537_s5 = sand.u32 511, %s1559_s4   ;;  %s525_s7 = scalar_lea.vmem [#allocation15], %s1557_s24 }
 0x1d6   : > { %vm523_vm4 = vcmp.eq.s32.totalorder %v41_v2, %v521_v23  ;;  %s538_s6 = ssub.s32 0, %s537_s5  ;;  %s528_s8 = scalar_lea.vmem [#allocation16], %s1557_s24 }
 0x1d7   : > { %526 = vst.msk [vmem:[%s525_s7] sm:$0xff] %vm523_vm4, %v1597_v24  ;;  %529 = vst.msk [vmem:[%s528_s8] sm:$0xff] %vm523_vm4, %v1598_v25  ;;  %s1896_s6 = smov (!%p534_p1, %s538_s6), %s537_s5  ;;  %s533_s9 = sshrl.u32 %s1566_s26, 9  ;;  %vm1013_vm4 = vcmp.gt.s32.totalorder (%p115_p2), %v1646_v40, %v1650_v45 }
 0x1d8   : > { %s540_s10 = sshrl.u32 %s1896_s6, 7  ;;  %s542_s11 = sand.u32 127, %s1896_s6  }
 0x1d9   : > { %s1560_s12 = sshll.u32 %s540_s10, 8  ;;  %s1561_s14 = sshll.u32 %s533_s9, 3 }
 0x1da   : > { %s543_s13 = sadd.s32 %s1560_s12, %s542_s11  ;;  %s549_s15 = scalar_lea.vmem [#allocation15], %s1561_s14 }
 0x1db   : > { %v545_v26 = vstv %s543_s13  ;;  %s552_s16 = scalar_lea.vmem [#allocation16], %s1561_s14  ;;  %117 = sbr.rel (!%p115_p2) target bundleno = 19 (0x13), region = 161 }
 0x1dc   : > { %v546_v27 = vadd.s32 128, %v545_v26 }
 0x1de   : > { %vm547_vm5 = vcmp.eq.s32.totalorder %v41_v2, %v546_v27  ;;  %v586_v2 = vsel (%p115_p2), %vm581_vm13, %v572_v33, %v567_v31 }
 0x1df   : > { %550 = vst.msk [vmem:[%s549_s15] sm:$0xff] %vm547_vm5, %v1597_v24  ;;  %553 = vst.msk [vmem:[%s552_s16] sm:$0xff] %vm547_vm5, %v1598_v25  ;;  %vm630_vm2 = vcmp.lt.s32.totalorder (%p115_p2), %v586_v2, %v613_v46  ;;  %vm1014_vm5 = vcmp.eq.s32.totalorder (%p115_p2), %v1646_v40, %v1650_v45 }
 0x1e0   :  { %vm631_vm3 = vmand %vm629_vm1, %vm630_vm2 }
 0x1e1   :  { %vm632_vm6 = vmor %vm628_vm0, %vm631_vm3 }
 0x1e2   :  { %v633_v51 = vsel %vm632_vm6, %v582_v39, %v607_v44  ;;  %v635_v52 = vsel %vm632_vm6, %v607_v44, %v582_v39  ;;  %v637_v53 = vsel %vm632_vm6, %v586_v2, %v613_v46  ;;  %v639_v54 = vsel %vm632_vm6, %v613_v46, %v586_v2  ;;  %vm1016_vm8 = vmand %vm1014_vm5, %vm1015_vm7 }
 0x1e3   :  { %v652_v55 = vrot.slane %v633_v51, %v1655_v48  ;;  %v659_v56 = vrot.slane %v637_v53, %v1655_v48  ;;  %vm1666_vm9 = vmor %vm1013_vm4, %vm1016_vm8  ;;  %v833_v59 = vrot.slane %v635_v52, %v1655_v48  ;;  %v840_v60 = vrot.slane %v639_v54, %v1655_v48 }
 0x1e4   :  { %v1680_v61 = vsel %vm1666_vm9, %v1646_v40, %v1650_v45  ;;  %v1689_v1 = vsel %vm1666_vm9, %v1648_v41, %v1652_v47  ;;  %vm1702_vm8 = vcmp.ne.s32.totalorder %v696_v3, 0  ;;  %v1757_v38 = vsel %vm1666_vm9, %v1650_v45, %v1646_v40 }
 0x1e5   :  { %vm661_vm11 = vcmp.gt.s32.totalorder %v633_v51, %v652_v55  ;;  %vm662_vm12 = vcmp.eq.s32.totalorder %v633_v51, %v652_v55  ;;  %vm663_vm13 = vcmp.lt.s32.totalorder %v637_v53, %v659_v56  ;;  %vm843_vm15 = vcmp.eq.s32.totalorder %v635_v52, %v833_v59 }
 0x1e6   :  { %vm664_vm14 = vmand %vm662_vm12, %vm663_vm13  ;;  %vm844_vm0 = vcmp.lt.s32.totalorder %v639_v54, %v840_v60  ;;  %vm842_vm2 = vcmp.gt.s32.totalorder %v635_v52, %v833_v59  ;;  %v1037_v4 = vrot.slane %v1680_v61, %v1655_v48  ;;  %v1044_v5 = vrot.slane %v1689_v1, %v1655_v48 }
 0x1e7   :  { %vm665_vm1 = vmor %vm661_vm11, %vm664_vm14  ;;  %v1878_v12 = vsel %vm1702_vm8, 4294967295, %v1877_v12  ;;  %v1763_v39 = vsel %vm1666_vm9, %v1652_v47, %v1648_v41  ;;  %v1773_v40 = vrot.slane %v1757_v38, %v1655_v48 }
 0x1e8   :  { %vm670_vm3 = vmxor %vm665_vm1, %vm1670_vm10  ;;  %vm1047_vm5 = vcmp.eq.s32.totalorder %v1680_v61, %v1037_v4  ;;  %vm1048_vm7 = vcmp.lt.s32.totalorder %v1689_v1, %v1044_v5  ;;  %vm1046_vm1 = vcmp.gt.s32.totalorder %v1680_v61, %v1037_v4  ;;  %v1777_v41 = vrot.slane %v1763_v39, %v1655_v48 }
 0x1e9   :  { %v671_v6 = vsel %vm670_vm3, %v633_v51, %v652_v55  ;;  %v672_v7 = vsel %vm670_vm3, %v637_v53, %v659_v56  ;;  %vm845_vm4 = vmand %vm843_vm15, %vm844_vm0 }
 0x1ea   :  { %v680_v10 = vrot.slane %v671_v6, %v1683_v0  ;;  %v687_v11 = vrot.slane %v672_v7, %v1683_v0  ;;  %vm846_vm6 = vmor %vm842_vm2, %vm845_vm4 }
 0x1eb   :  { %vm851_vm11 = vmxor %vm846_vm6, %vm1670_vm10 }
 0x1ec   :  { %vm689_vm12 = vcmp.gt.s32.totalorder %v671_v6, %v680_v10  ;;  %vm690_vm13 = vcmp.eq.s32.totalorder %v671_v6, %v680_v10  ;;  %vm691_vm14 = vcmp.lt.s32.totalorder %v672_v7, %v687_v11  ;;  %v852_v13 = vsel %vm851_vm11, %v635_v52, %v833_v59  ;;  %vm1708_vm15 = vmand %vm1047_vm5, %vm1048_vm7 }
 0x1ed   :  { %vm692_vm0 = vmand %vm690_vm13, %vm691_vm14  ;;  %v853_v16 = vsel %vm851_vm11, %v639_v54, %v840_v60  ;;  %v861_v17 = vrot.slane %v852_v13, %v1683_v0  ;;  %v1887_v59 = vmov 0 }
 0x1ee   :  { %vm693_vm2 = vmor %vm689_vm12, %vm692_vm0  ;;  %v868_v18 = vrot.slane %v853_v16, %v1683_v0 }
 0x1ef   :  { %vm698_vm3 = vmxor %vm693_vm2, %vm1702_vm8  ;;  %vm870_vm4 = vcmp.gt.s32.totalorder %v852_v13, %v861_v17  ;;  %vm871_vm5 = vcmp.eq.s32.totalorder %v852_v13, %v861_v17  ;;  %vm1729_vm2 = vcmp.ne.s32.totalorder %v724_v19, 0 }
 0x1f0   :  { %v699_v20 = vsel %vm698_vm3, %v671_v6, %v680_v10  ;;  %v700_v21 = vsel %vm698_vm3, %v672_v7, %v687_v11  ;;  %vm872_vm6 = vcmp.lt.s32.totalorder %v853_v16, %v868_v18  ;;  %vm1723_vm7 = vmor %vm1046_vm1, %vm1708_vm15  ;;  %v1884_v9 = vsel %vm1729_vm2, 4294967295, %v1883_v9 }
 0x1f1   :  { %v708_v23 = vrot.slane %v699_v20, %v1713_v15  ;;  %v715_v24 = vrot.slane %v700_v21, %v1713_v15  ;;  %vm873_vm11 = vmand %vm871_vm5, %vm872_vm6 }
 0x1f2   :  { %vm874_vm12 = vmor %vm870_vm4, %vm873_vm11 }
 0x1f3   :  { %vm717_vm13 = vcmp.gt.s32.totalorder %v699_v20, %v708_v23  ;;  %vm718_vm14 = vcmp.eq.s32.totalorder %v699_v20, %v708_v23  ;;  %vm719_vm0 = vcmp.lt.s32.totalorder %v700_v21, %v715_v24  ;;  %vm879_vm3 = vmxor %vm874_vm12, %vm1702_vm8 }
 0x1f4   :  { %vm720_vm15 = vmand %vm718_vm14, %vm719_vm0  ;;  %v880_v25 = vsel %vm879_vm3, %v852_v13, %v861_v17  ;;  %v881_v26 = vsel %vm879_vm3, %v853_v16, %v868_v18 }
 0x1f5   :  { %vm721_vm1 = vmor %vm717_vm13, %vm720_vm15  ;;  %v889_v27 = vrot.slane %v880_v25, %v1713_v15  ;;  %v896_v28 = vrot.slane %v881_v26, %v1713_v15 }
 0x1f6   :  { %vm726_vm4 = vmxor %vm721_vm1, %vm1729_vm2 }
 0x1f7   :  { %v727_v29 = vsel %vm726_vm4, %v699_v20, %v708_v23  ;;  %v728_v30 = vsel %vm726_vm4, %v700_v21, %v715_v24  ;;  %vm898_vm5 = vcmp.gt.s32.totalorder %v880_v25, %v889_v27  ;;  %vm899_vm6 = vcmp.eq.s32.totalorder %v880_v25, %v889_v27  ;;  %vm1055_vm11 = vmxor %vm1723_vm7, %vm1670_vm10 }
 0x1f8   :  { %v742_v31 = vrot.slane %v727_v29, %v1655_v48  ;;  %v749_v32 = vrot.slane %v728_v30, %v1655_v48  ;;  %vm900_vm12 = vcmp.lt.s32.totalorder %v881_v26, %v896_v28  ;;  %v1056_v33 = vsel %vm1055_vm11, %v1680_v61, %v1037_v4 }
 0x1f9   :  { %vm901_vm13 = vmand %vm899_vm6, %vm900_vm12  ;;  %v1057_v34 = vsel %vm1055_vm11, %v1689_v1, %v1044_v5  ;;  %v1065_v35 = vrot.slane %v1056_v33, %v1683_v0 }
 0x1fa   :  { %vm751_vm14 = vcmp.gt.s32.totalorder %v727_v29, %v742_v31  ;;  %vm752_vm0 = vcmp.eq.s32.totalorder %v727_v29, %v742_v31  ;;  %vm753_vm3 = vcmp.lt.s32.totalorder %v728_v30, %v749_v32  ;;  %vm1748_vm15 = vmor %vm898_vm5, %vm901_vm13  ;;  %v1072_v37 = vrot.slane %v1057_v34, %v1683_v0 }
 0x1fb   :  { %vm754_vm7 = vmand %vm752_vm0, %vm753_vm3  ;;  %vm1075_vm4 = vcmp.eq.s32.totalorder %v1056_v33, %v1065_v35  ;;  %vm1074_vm11 = vcmp.gt.s32.totalorder %v1056_v33, %v1065_v35 }
 0x1fc   :  { %vm755_vm1 = vmor %vm751_vm14, %vm754_vm7  ;;  %vm1076_vm5 = vcmp.lt.s32.totalorder %v1057_v34, %v1072_v37 }
 0x1fd   :  { %vm760_vm6 = vmxor %vm755_vm1, %vm1670_vm10 }
 0x1fe   :  { %v761_v2 = vsel %vm760_vm6, %v727_v29, %v742_v31  ;;  %v762_v42 = vsel %vm760_vm6, %v728_v30, %v749_v32  ;;  %vm907_vm12 = vmxor %vm1748_vm15, %vm1729_vm2  ;;  %vm1228_vm2 = vcmp.eq.s32.totalorder %v1757_v38, %v1773_v40 }
 0x1ff   :  { %v770_v43 = vrot.slane %v761_v2, %v1683_v0  ;;  %v777_v44 = vrot.slane %v762_v42, %v1683_v0  ;;  %v908_v45 = vsel %vm907_vm12, %v880_v25, %v889_v27  ;;  %v909_v46 = vsel %vm907_vm12, %v881_v26, %v896_v28  ;;  %vm1077_vm9 = vmand %vm1075_vm4, %vm1076_vm5 }
 0x200   :  { %v923_v47 = vrot.slane %v908_v45, %v1655_v48  ;;  %v930_v49 = vrot.slane %v909_v46, %v1655_v48  ;;  %vm1078_vm13 = vmor %vm1074_vm11, %vm1077_vm9  ;;  %vm1229_vm5 = vcmp.lt.s32.totalorder %v1763_v39, %v1777_v41 }
 0x201   :  { %vm779_vm14 = vcmp.gt.s32.totalorder %v761_v2, %v770_v43  ;;  %vm780_vm0 = vcmp.eq.s32.totalorder %v761_v2, %v770_v43  ;;  %vm781_vm3 = vcmp.lt.s32.totalorder %v762_v42, %v777_v44  ;;  %vm1083_vm15 = vmxor %vm1078_vm13, %vm1702_vm8 }
 0x202   :  { %vm782_vm7 = vmand %vm780_vm0, %vm781_vm3  ;;  %vm933_vm1 = vcmp.eq.s32.totalorder %v908_v45, %v923_v47  ;;  %vm934_vm6 = vcmp.lt.s32.totalorder %v909_v46, %v930_v49  ;;  %v1084_v50 = vsel %vm1083_vm15, %v1056_v33, %v1065_v35  ;;  %vm932_vm4 = vcmp.gt.s32.totalorder %v908_v45, %v923_v47 }
 0x203   :  { %vm783_vm12 = vmor %vm779_vm14, %vm782_vm7  ;;  %v1085_v51 = vsel %vm1083_vm15, %v1057_v34, %v1072_v37  ;;  %v1093_v52 = vrot.slane %v1084_v50, %v1713_v15 }
 0x204   :  { %vm788_vm11 = vmxor %vm783_vm12, %vm1702_vm8  ;;  %v1100_v53 = vrot.slane %v1085_v51, %v1713_v15 }
 0x205   :  { %v789_v54 = vsel %vm788_vm11, %v761_v2, %v770_v43  ;;  %v790_v55 = vsel %vm788_vm11, %v762_v42, %v777_v44  ;;  %vm935_vm9 = vmand %vm933_vm1, %vm934_vm6  ;;  %vm1103_vm13 = vcmp.eq.s32.totalorder %v1084_v50, %v1093_v52 }
 0x206   :  { %v798_v56 = vrot.slane %v789_v54, %v1713_v15  ;;  %v805_v57 = vrot.slane %v790_v55, %v1713_v15  ;;  %vm936_vm14 = vmor %vm932_vm4, %vm935_vm9  ;;  %vm1104_vm0 = vcmp.lt.s32.totalorder %v1085_v51, %v1100_v53  ;;  %vm1102_vm4 = vcmp.gt.s32.totalorder %v1084_v50, %v1093_v52 }
 0x207   :  { %vm1798_vm3 = vmand %vm1228_vm2, %vm1229_vm5  ;;  %vm1889_vm2 = vnez %v1884_v9 }
 0x208   :  { %v1888_v59 = vsel %vm1798_vm3, 4294967295, %v1887_v59  ;;  %vm941_vm15 = vmxor %vm936_vm14, %vm1670_vm10  ;;  %vm807_vm7 = vcmp.gt.s32.totalorder %v789_v54, %v798_v56  ;;  %vm808_vm12 = vcmp.eq.s32.totalorder %v789_v54, %v798_v56  ;;  %vm809_vm1 = vcmp.lt.s32.totalorder %v790_v55, %v805_v57 }
 0x209   :  { %v942_v60 = vsel %vm941_vm15, %v908_v45, %v923_v47  ;;  %vm1105_vm6 = vmand %vm1103_vm13, %vm1104_vm0  ;;  %v943_v61 = vsel %vm941_vm15, %v909_v46, %v930_v49  ;;  %vm1227_vm15 = vcmp.gt.s32.totalorder %v1757_v38, %v1773_v40 }
 0x20a   :  { %vm810_vm11 = vmand %vm808_vm12, %vm809_vm1  ;;  %v951_v62 = vrot.slane %v942_v60, %v1683_v0  ;;  %v958_v63 = vrot.slane %v943_v61, %v1683_v0 }
 0x20b   :  { %vm811_vm9 = vmor %vm807_vm7, %vm810_vm11  ;;  %vm1890_vm7 = vnez %v1878_v12 }
 0x20c   :  { %vm816_vm5 = vmxor %vm811_vm9, %vm1889_vm2  ;;  %vm960_vm3 = vcmp.gt.s32.totalorder %v942_v60, %v951_v62  ;;  %vm961_vm8 = vcmp.eq.s32.totalorder %v942_v60, %v951_v62  ;;  %vm962_vm14 = vcmp.lt.s32.totalorder %v943_v61, %v958_v63 }
 0x20d   :  { %v817_v1 = vsel %vm816_vm5, %v789_v54, %v798_v56  ;;  %v818_v3 = vsel %vm816_vm5, %v790_v55, %v805_v57  ;;  %vm1106_vm10 = vmor %vm1102_vm4, %vm1105_vm6  ;;  %vm1892_vm6 = vnez %v1876_v58 }
 0x20e   :  { %820 = vst [vmem:[#allocation11] sm:$0xff] %v817_v1  ;;  %821 = vst [vmem:[#allocation13 + $0x8] sm:$0xff] %v818_v3 }
 0x20f   :  { %vm963_vm13 = vmand %vm961_vm8, %vm962_vm14  ;;  %vm1891_vm8 = vnez %v1888_v59 }
 0x210   :  { %vm964_vm0 = vmor %vm960_vm3, %vm963_vm13 }
 0x211   :  { %vm969_vm12 = vmxor %vm964_vm0, %vm1890_vm7 }
 0x212   :  { %v970_v4 = vsel %vm969_vm12, %v942_v60, %v951_v62  ;;  %v971_v5 = vsel %vm969_vm12, %v943_v61, %v958_v63  ;;  %vm1111_vm1 = vmxor %vm1106_vm10, %vm1889_vm2 }
 0x213   :  { %v979_v6 = vrot.slane %v970_v4, %v1713_v15  ;;  %v986_v7 = vrot.slane %v971_v5, %v1713_v15  ;;  %v1112_v8 = vsel %vm1111_vm1, %v1084_v50, %v1093_v52  ;;  %v1113_v10 = vsel %vm1111_vm1, %v1085_v51, %v1100_v53  ;;  %vm1231_vm3 = vmor %vm1227_vm15, %vm1891_vm8 }
 0x214   :  { %v1127_v11 = vrot.slane %v1112_v8, %v1655_v48  ;;  %v1134_v13 = vrot.slane %v1113_v10, %v1655_v48  ;;  %vm1236_vm11 = vmxor %vm1231_vm3, %vm1892_vm6 }
 0x215   :  { %vm988_vm4 = vcmp.gt.s32.totalorder %v970_v4, %v979_v6  ;;  %vm989_vm9 = vcmp.eq.s32.totalorder %v970_v4, %v979_v6  ;;  %vm990_vm5 = vcmp.lt.s32.totalorder %v971_v5, %v986_v7  ;;  %v1237_v14 = vsel %vm1236_vm11, %v1757_v38, %v1773_v40  ;;  %v1422_v12 = vld [vmem:[#allocation13 + $0x8] sm:$0xff]  ;;  %v1389_v45 = vld [vmem:[#allocation11] sm:$0xff] }
 0x216   :  { %vm991_vm10 = vmand %vm989_vm9, %vm990_vm5  ;;  %vm1137_vm14 = vcmp.eq.s32.totalorder %v1112_v8, %v1127_v11  ;;  %vm1138_vm13 = vcmp.lt.s32.totalorder %v1113_v10, %v1134_v13  ;;  %v1238_v16 = vsel %vm1236_vm11, %v1763_v39, %v1777_v41  ;;  %vm1136_vm15 = vcmp.gt.s32.totalorder %v1112_v8, %v1127_v11  ;;  %1425 = vxpose.xlu1.b32.start [1/2] (short) (narrow) %v1422_v12, 8 }
 0x217   :  { %vm992_vm0 = vmor %vm988_vm4, %vm991_vm10  ;;  %v1246_v17 = vrot.slane %v1237_v14, %v1683_v0  ;;  %v1253_v18 = vrot.slane %v1238_v16, %v1683_v0  ;;  %v1391_v46 = vsub.s32 2147483647, %v1389_v45 }
 0x218   :  { %vm997_vm12 = vmxor %vm992_vm0, %vm1889_vm2 }
 0x219   :  { %v998_v19 = vsel %vm997_vm12, %v970_v4, %v979_v6  ;;  %v999_v20 = vsel %vm997_vm12, %v971_v5, %v986_v7  ;;  %vm1139_vm1 = vmand %vm1137_vm14, %vm1138_vm13  ;;  %vm1256_vm8 = vcmp.eq.s32.totalorder %v1237_v14, %v1246_v17  ;;  %vm1255_vm9 = vcmp.gt.s32.totalorder %v1237_v14, %v1246_v17 }
 0x21a   :  { %1001 = vst [vmem:[#allocation11 + $0x8] sm:$0xff] %v998_v19  ;;  %1002 = vst [vmem:[#allocation13] sm:$0xff] %v999_v20  ;;  %vm1257_vm5 = vcmp.lt.s32.totalorder %v1238_v16, %v1253_v18 }
 0x21b   :  { %vm1140_vm3 = vmor %vm1136_vm15, %vm1139_vm1 }
 0x21c   :  { %vm1145_vm11 = vmxor %vm1140_vm3, %vm1892_vm6 }
 0x21d   :  { %v1146_v21 = vsel %vm1145_vm11, %v1112_v8, %v1127_v11  ;;  %v1147_v22 = vsel %vm1145_vm11, %v1113_v10, %v1134_v13  ;;  %vm1258_vm4 = vmand %vm1256_vm8, %vm1257_vm5 }
 0x21e   :  { %v1155_v23 = vrot.slane %v1146_v21, %v1683_v0  ;;  %v1162_v24 = vrot.slane %v1147_v22, %v1683_v0  ;;  %vm1259_vm10 = vmor %vm1255_vm9, %vm1258_vm4 }
 0x21f   :  { %vm1264_vm14 = vmxor %vm1259_vm10, %vm1890_vm7 }
 0x220   :  { %vm1164_vm13 = vcmp.gt.s32.totalorder %v1146_v21, %v1155_v23  ;;  %vm1165_vm0 = vcmp.eq.s32.totalorder %v1146_v21, %v1155_v23  ;;  %vm1166_vm12 = vcmp.lt.s32.totalorder %v1147_v22, %v1162_v24  ;;  %v1265_v25 = vsel %vm1264_vm14, %v1237_v14, %v1246_v17 }
 0x221   :  { %vm1167_vm15 = vmand %vm1165_vm0, %vm1166_vm12  ;;  %v1266_v26 = vsel %vm1264_vm14, %v1238_v16, %v1253_v18  ;;  %v1274_v27 = vrot.slane %v1265_v25, %v1713_v15  ;;  %v1395_v47 = vld [vmem:[#allocation11 + $0x8] sm:$0xff]  ;;  %v1424_v49 = vld [vmem:[#allocation13] sm:$0xff] }
 0x222   :  { %vm1168_vm1 = vmor %vm1164_vm13, %vm1167_vm15  ;;  %v1281_v28 = vrot.slane %v1266_v26, %v1713_v15  ;;  %1426 = vxpose.xlu1.b32.end [2/2] (short) (narrow) %v1424_v49, 8 }
 0x223   :  { %vm1173_vm8 = vmxor %vm1168_vm1, %vm1890_vm7  ;;  %vm1283_vm3 = vcmp.gt.s32.totalorder %v1265_v25, %v1274_v27  ;;  %vm1284_vm5 = vcmp.eq.s32.totalorder %v1265_v25, %v1274_v27 }
 0x224   :  { %v1174_v29 = vsel %vm1173_vm8, %v1146_v21, %v1155_v23  ;;  %v1175_v30 = vsel %vm1173_vm8, %v1147_v22, %v1162_v24  ;;  %vm1285_vm9 = vcmp.lt.s32.totalorder %v1266_v26, %v1281_v28 }
 0x225   :  { %v1183_v31 = vrot.slane %v1174_v29, %v1713_v15  ;;  %v1190_v32 = vrot.slane %v1175_v30, %v1713_v15  ;;  %vm1286_vm11 = vmand %vm1284_vm5, %vm1285_vm9 }
 0x226   :  { %vm1287_vm4 = vmor %vm1283_vm3, %vm1286_vm11 }
 0x227   :  { %vm1192_vm10 = vcmp.gt.s32.totalorder %v1174_v29, %v1183_v31  ;;  %vm1193_vm14 = vcmp.eq.s32.totalorder %v1174_v29, %v1183_v31  ;;  %vm1194_vm0 = vcmp.lt.s32.totalorder %v1175_v30, %v1190_v32  ;;  %vm1292_vm13 = vmxor %vm1287_vm4, %vm1889_vm2 }
 0x228   :  { %vm1195_vm12 = vmand %vm1193_vm14, %vm1194_vm0  ;;  %v1293_v33 = vsel %vm1292_vm13, %v1265_v25, %v1274_v27  ;;  %v1294_v34 = vsel %vm1292_vm13, %v1266_v26, %v1281_v28 }
 0x229   :  { %vm1196_vm15 = vmor %vm1192_vm10, %vm1195_vm12  ;;  %v1308_v35 = vrot.slane %v1293_v33, %v1655_v48  ;;  %v1315_v36 = vrot.slane %v1294_v34, %v1655_v48 }
 0x22a   :  { %vm1201_vm1 = vmxor %vm1196_vm15, %vm1889_vm2 }
 0x22b   :  { %v1202_v37 = vsel %vm1201_vm1, %v1174_v29, %v1183_v31  ;;  %v1203_v38 = vsel %vm1201_vm1, %v1175_v30, %v1190_v32  ;;  %vm1317_vm8 = vcmp.gt.s32.totalorder %v1293_v33, %v1308_v35  ;;  %vm1318_vm3 = vcmp.eq.s32.totalorder %v1293_v33, %v1308_v35 }
 0x22c   :  { %1205 = vst [vmem:[#allocation12] sm:$0xff] %v1202_v37  ;;  %1206 = vst [vmem:[#allocation14] sm:$0xff] %v1203_v38  ;;  %vm1319_vm5 = vcmp.lt.s32.totalorder %v1294_v34, %v1315_v36 }
 0x22d   :  { %vm1320_vm9 = vmand %vm1318_vm3, %vm1319_vm5 }
 0x22e   :  { %vm1321_vm11 = vmor %vm1317_vm8, %vm1320_vm9 }
 0x22f   :  { %vm1326_vm4 = vmxor %vm1321_vm11, %vm1892_vm6  ;;  %vm1396_vm11 = vcmp.lt.s32.totalorder %v1395_v47, 0 }
 0x230   :  { %v1327_v39 = vsel %vm1326_vm4, %v1293_v33, %v1308_v35  ;;  %v1328_v2 = vsel %vm1326_vm4, %v1294_v34, %v1315_v36 }
 0x231   :  { %v1336_v42 = vrot.slane %v1327_v39, %v1683_v0  ;;  %v1343_v48 = vrot.slane %v1328_v2, %v1683_v0 }
 0x233   :  { %vm1345_vm10 = vcmp.gt.s32.totalorder %v1327_v39, %v1336_v42  ;;  %vm1346_vm14 = vcmp.eq.s32.totalorder %v1327_v39, %v1336_v42  ;;  %vm1347_vm0 = vcmp.lt.s32.totalorder %v1328_v2, %v1343_v48 }
 0x234   :  { %vm1348_vm13 = vmand %vm1346_vm14, %vm1347_vm0 }
 0x235   :  { %vm1349_vm12 = vmor %vm1345_vm10, %vm1348_vm13 }
 0x236   :  { %vm1354_vm15 = vmxor %vm1349_vm12, %vm1890_vm7  ;;  %vm1390_vm7 = vcmp.lt.s32.totalorder %v1389_v45, 0 }
 0x237   :  { %v1355_v40 = vsel %vm1354_vm15, %v1327_v39, %v1336_v42  ;;  %v1356_v41 = vsel %vm1354_vm15, %v1328_v2, %v1343_v48  ;;  %v1392_v50 = vsel %vm1390_vm7, %v1391_v46, %v1389_v45 }
 0x238   :  { %v1364_v43 = vrot.slane %v1355_v40, %v1713_v15  ;;  %v1371_v58 = vrot.slane %v1356_v41, %v1713_v15  ;;  %v1397_v15 = vsub.s32 2147483647, %v1395_v47  ;;  %1393 = vst [vmem:[#allocation11] sm:$0xff] %v1392_v50  ;;  %1403 = vxpose.xlu0.b32.start [1/2] (short) (narrow) %v1392_v50, 8 }
 0x23a   :  { %vm1373_vm6 = vcmp.gt.s32.totalorder %v1355_v40, %v1364_v43  ;;  %vm1374_vm1 = vcmp.eq.s32.totalorder %v1355_v40, %v1364_v43  ;;  %vm1375_vm8 = vcmp.lt.s32.totalorder %v1356_v41, %v1371_v58  ;;  %v1398_v51 = vsel %vm1396_vm11, %v1397_v15, %v1395_v47 }
 0x23b   :  { %vm1376_vm3 = vmand %vm1374_vm1, %vm1375_vm8  ;;  %1399 = vst [vmem:[#allocation11 + $0x8] sm:$0xff] %v1398_v51 }
 0x23c   :  { %vm1377_vm5 = vmor %vm1373_vm6, %vm1376_vm3  ;;  %1404 = vxpose.xlu0.b32.end [2/2] (short) (narrow) %v1398_v51, 8 }
 0x23d   :  { %vm1382_vm9 = vmxor %vm1377_vm5, %vm1889_vm2 }
 0x23e   :  { %v1383_v0 = vsel %vm1382_vm9, %v1355_v40, %v1364_v43  ;;  %v1384_v44 = vsel %vm1382_vm9, %v1356_v41, %v1371_v58 }
 0x23f   :  { %1386 = vst [vmem:[#allocation12 + $0x8] sm:$0xff] %v1383_v0  ;;  %1387 = vst [vmem:[#allocation14 + $0x8] sm:$0xff] %v1384_v44 }
 0x29a   :  { %v1427_v9 = vpop.trf.xlu1 }
 0x29b   :  { %1443 = vst [vmem:[#allocation9] sm:$0xff] %v1427_v9 }
 0x2a2   :  { %v1456_v53 = vld [vmem:[#allocation9] sm:$0x3] }
 0x2a3   :  { %1459 = vst [vmem:[#allocation10] sm:$0x3] %v1456_v53 }
 0x2aa   :  { %v1509_v55 = vld [vmem:[#allocation10] sm:$0x3] }
 0x2ab   :  { %1510 = vst [vmem:[%s1866_s2] sm:$0x3] %v1509_v55 }
 0x2b4   :  { %v1405_v52 = vpop.trf.xlu0 }
 0x2b5   :  { %1421 = vst [vmem:[#allocation7] sm:$0xff] %v1405_v52 }
 0x2bc   :  { %v1448_v54 = vld [vmem:[#allocation7] sm:$0x3] }
 0x2bd   :  { %1451 = vst [vmem:[#allocation8] sm:$0x3] %v1448_v54 }
 0x2c4   :  { %v1476_v56 = vld [vmem:[#allocation8] sm:$0x3] }
 0x2c5   :  { %1477 = vst [vmem:[%s1865_s1] sm:$0x3] %v1476_v56 }

// kernel: centernet_head_forward.1
= control target key start
LH: loop header
LB: loop body
LE: loop exit
PB: predicated region body
PF: predicated region fallthrough
CT: control target
= control target key end

     0   :  { %s6013_s18 = smov 0   ;;  %s8241_s0 = inlined_call_operand.vmem [shape: bf16[2,16,16,32], index: 0, kind: input, shape index: {}]   ;;  %s8242_s1 = inlined_call_operand.vmem [shape: bf16[288,96], index: 1, kind: input, shape index: {}]   ;;  %s8243_s2 = inlined_call_operand.vmem [shape: f32[1,96], index: 2, kind: input, shape index: {}]   ;;  %s8244_s3 = inlined_call_operand.vmem [shape: bf16[96,128], index: 3, kind: input, shape index: {}]   ;;  %s8245_s4 = inlined_call_operand.vmem [shape: f32[1,128], index: 4, kind: input, shape index: {}]   ;;  %s8246_s5 = inlined_call_operand.vmem [shape: f32[2,256,128], index: 5, kind: output, shape index: {}]  }
   0x1 LB: > { %s4716_s19 = sadd.s32 4294967295, %s5977_s18   ;;  %p4720_p0 = scmp.ge.s32.totalorder %s5977_s18, 1  ;;  %s5977_s18 = sphi %s6013_s18, %s15_s18  }
   0x2   : > { %p187_p1 = scmp.lt.s32.totalorder %s5977_s18, 3 }
   0x4   : > { %p188_p2 = pnand %p4720_p0, %p187_p1 }
   0x5   : > { %p215_p3 = scmp.lt.s32.totalorder (!%p188_p2), %s4716_s19, 1  ;;  %p4725_p4 = scmp.ne.s32.totalorder (!%p188_p2), %s4716_s19, 0 }
   0x6   : > { %191 = sbr.rel (%p188_p2) target bundleno = 1075 (0x433), region = 40 }
   0xb   : > { %s216_s20 = scalar_select %p215_p3, %s4716_s19, 1 }
   0xc   : > { %229 = sbr.rel (%p4725_p4) target bundleno = 90 (0x5a), region = 44 }
   0xd   : > { %s5154_s21 = sshll.u32 %s216_s20, 7  ;;  %s5155_s22 = sshll.u32 %s216_s20, 8 }
   0xe   : > { %s6024_s25 = scalar_lea.vmem %s8241_s0, %s5154_s21  ;;  %s6029_s28 = scalar_lea.vmem %s8246_s5, %s5155_s22 }
  0x11   : > { %vm230_vm0 = vcmask 261120   ;;  %v5979_v0 = vmov 0.0  }
  0x12   : > { %231 = vst.msk [vmem:[#allocation2] sm:$0xff] %vm230_vm0, %v5979_v0  ;;  %232 = vst.msk [vmem:[#allocation2 + $0x8] sm:$0xff] %vm230_vm0, %v5979_v0 }
  0x13   : > { %233 = vst.msk [vmem:[#allocation2 + $0x10] sm:$0xff] %vm230_vm0, %v5979_v0  ;;  %234 = vst.msk [vmem:[#allocation2 + $0x18] sm:$0xff] %vm230_vm0, %v5979_v0 }
  0x14   : > { %235 = vst.msk [vmem:[#allocation2 + $0x20] sm:$0xff] %vm230_vm0, %v5979_v0  ;;  %236 = vst.msk [vmem:[#allocation2 + $0x28] sm:$0xff] %vm230_vm0, %v5979_v0 }
  0x15   : > { %237 = vst.msk [vmem:[#allocation2 + $0x30] sm:$0xff] %vm230_vm0, %v5979_v0  ;;  %238 = vst.msk [vmem:[#allocation2 + $0x38] sm:$0xff] %vm230_vm0, %v5979_v0 }
  0x16   : > { %239 = vst.msk [vmem:[#allocation2 + $0x40] sm:$0xff] %vm230_vm0, %v5979_v0  ;;  %240 = vst.msk [vmem:[#allocation2 + $0x48] sm:$0xff] %vm230_vm0, %v5979_v0 }
  0x17   : > { %241 = vst.msk [vmem:[#allocation2 + $0x50] sm:$0xff] %vm230_vm0, %v5979_v0  ;;  %242 = vst.msk [vmem:[#allocation2 + $0x58] sm:$0xff] %vm230_vm0, %v5979_v0 }
  0x18   : > { %243 = vst.msk [vmem:[#allocation2 + $0x60] sm:$0xff] %vm230_vm0, %v5979_v0  ;;  %244 = vst.msk [vmem:[#allocation2 + $0x68] sm:$0xff] %vm230_vm0, %v5979_v0 }
  0x19   : > { %245 = vst.msk [vmem:[#allocation2 + $0x70] sm:$0xff] %vm230_vm0, %v5979_v0  ;;  %246 = vst.msk [vmem:[#allocation2 + $0x78] sm:$0xff] %vm230_vm0, %v5979_v0 }
  0x1a   : > { %247 = vst.msk [vmem:[#allocation2 + $0x80] sm:$0xff] %vm230_vm0, %v5979_v0  ;;  %248 = vst.msk [vmem:[#allocation2 + $0x88] sm:$0xff] %vm230_vm0, %v5979_v0 }
  0x1b   : > { %249 = vst.msk [vmem:[#allocation2 + $0x90] sm:$0xff] %vm230_vm0, %v5979_v0  ;;  %250 = vst.msk [vmem:[#allocation2 + $0x98] sm:$0xff] %vm230_vm0, %v5979_v0 }
  0x1c   : > { %251 = vst.msk [vmem:[#allocation2 + $0xa0] sm:$0xff] %vm230_vm0, %v5979_v0  ;;  %252 = vst.msk [vmem:[#allocation2 + $0xa8] sm:$0xff] %vm230_vm0, %v5979_v0 }
  0x1d   : > { %253 = vst.msk [vmem:[#allocation2 + $0xb0] sm:$0xff] %vm230_vm0, %v5979_v0  ;;  %254 = vst.msk [vmem:[#allocation2 + $0xb8] sm:$0xff] %vm230_vm0, %v5979_v0 }
  0x1e   : > { %255 = vst.msk [vmem:[#allocation2 + $0xc0] sm:$0xff] %vm230_vm0, %v5979_v0  ;;  %256 = vst.msk [vmem:[#allocation2 + $0xc8] sm:$0xff] %vm230_vm0, %v5979_v0 }
  0x1f   : > { %257 = vst.msk [vmem:[#allocation2 + $0xd0] sm:$0xff] %vm230_vm0, %v5979_v0  ;;  %258 = vst.msk [vmem:[#allocation2 + $0xd8] sm:$0xff] %vm230_vm0, %v5979_v0 }
  0x20   : > { %259 = vst.msk [vmem:[#allocation2 + $0xe0] sm:$0xff] %vm230_vm0, %v5979_v0  ;;  %260 = vst.msk [vmem:[#allocation2 + $0xe8] sm:$0xff] %vm230_vm0, %v5979_v0 }
  0x21   : > { %261 = vst.msk [vmem:[#allocation2 + $0xf0] sm:$0xff] %vm230_vm0, %v5979_v0  ;;  %262 = vst.msk [vmem:[#allocation2 + $0xf8] sm:$0xff] %vm230_vm0, %v5979_v0 }
  0x22   : > { %263 = vst.msk [vmem:[#allocation2 + $0x100] sm:$0xff] %vm230_vm0, %v5979_v0  ;;  %264 = vst.msk [vmem:[#allocation2 + $0x108] sm:$0xff] %vm230_vm0, %v5979_v0 }
  0x23   : > { %265 = vst.msk [vmem:[#allocation2 + $0x110] sm:$0xff] %vm230_vm0, %v5979_v0  ;;  %266 = vst.msk [vmem:[#allocation2 + $0x118] sm:$0xff] %vm230_vm0, %v5979_v0 }
  0x24   : > { %267 = vst.msk [vmem:[#allocation2 + $0x120] sm:$0xff] %vm230_vm0, %v5979_v0  ;;  %268 = vst.msk [vmem:[#allocation2 + $0x128] sm:$0xff] %vm230_vm0, %v5979_v0 }
  0x25   : > { %269 = vst.msk [vmem:[#allocation2 + $0x130] sm:$0xff] %vm230_vm0, %v5979_v0  ;;  %270 = vst.msk [vmem:[#allocation2 + $0x138] sm:$0xff] %vm230_vm0, %v5979_v0 }
  0x26   : > { %271 = vst.msk [vmem:[#allocation2 + $0x140] sm:$0xff] %vm230_vm0, %v5979_v0  ;;  %272 = vst.msk [vmem:[#allocation2 + $0x148] sm:$0xff] %vm230_vm0, %v5979_v0 }
  0x27   : > { %273 = vst.msk [vmem:[#allocation2 + $0x150] sm:$0xff] %vm230_vm0, %v5979_v0  ;;  %274 = vst.msk [vmem:[#allocation2 + $0x158] sm:$0xff] %vm230_vm0, %v5979_v0 }
  0x28   : > { %275 = vst.msk [vmem:[#allocation2 + $0x160] sm:$0xff] %vm230_vm0, %v5979_v0  ;;  %276 = vst.msk [vmem:[#allocation2 + $0x168] sm:$0xff] %vm230_vm0, %v5979_v0 }
  0x29   : > { %277 = vst.msk [vmem:[#allocation2 + $0x170] sm:$0xff] %vm230_vm0, %v5979_v0  ;;  %278 = vst.msk [vmem:[#allocation2 + $0x178] sm:$0xff] %vm230_vm0, %v5979_v0 }
  0x2a   : > { %279 = vst.msk [vmem:[#allocation2 + $0x180] sm:$0xff] %vm230_vm0, %v5979_v0  ;;  %280 = vst.msk [vmem:[#allocation2 + $0x188] sm:$0xff] %vm230_vm0, %v5979_v0 }
  0x2b   : > { %281 = vst.msk [vmem:[#allocation2 + $0x190] sm:$0xff] %vm230_vm0, %v5979_v0  ;;  %282 = vst.msk [vmem:[#allocation2 + $0x198] sm:$0xff] %vm230_vm0, %v5979_v0 }
  0x2c   : > { %283 = vst.msk [vmem:[#allocation2 + $0x1a0] sm:$0xff] %vm230_vm0, %v5979_v0  ;;  %284 = vst.msk [vmem:[#allocation2 + $0x1a8] sm:$0xff] %vm230_vm0, %v5979_v0 }
  0x2d   : > { %285 = vst.msk [vmem:[#allocation2 + $0x1b0] sm:$0xff] %vm230_vm0, %v5979_v0  ;;  %286 = vst.msk [vmem:[#allocation2 + $0x1b8] sm:$0xff] %vm230_vm0, %v5979_v0 }
  0x2e   : > { %287 = vst.msk [vmem:[#allocation2 + $0x1c0] sm:$0xff] %vm230_vm0, %v5979_v0  ;;  %288 = vst.msk [vmem:[#allocation2 + $0x1c8] sm:$0xff] %vm230_vm0, %v5979_v0 }
  0x2f   : > { %289 = vst.msk [vmem:[#allocation2 + $0x1d0] sm:$0xff] %vm230_vm0, %v5979_v0  ;;  %290 = vst.msk [vmem:[#allocation2 + $0x1d8] sm:$0xff] %vm230_vm0, %v5979_v0 }
  0x30   : > { %291 = vst.msk [vmem:[#allocation2 + $0x1e0] sm:$0xff] %vm230_vm0, %v5979_v0  ;;  %292 = vst.msk [vmem:[#allocation2 + $0x1e8] sm:$0xff] %vm230_vm0, %v5979_v0 }
  0x31   : > { %293 = vst.msk [vmem:[#allocation2 + $0x1f0] sm:$0xff] %vm230_vm0, %v5979_v0  ;;  %294 = vst.msk [vmem:[#allocation2 + $0x1f8] sm:$0xff] %vm230_vm0, %v5979_v0 }
  0x32   : > { %295 = vst.msk [vmem:[#allocation2 + $0x200] sm:$0xff] %vm230_vm0, %v5979_v0  ;;  %296 = vst.msk [vmem:[#allocation2 + $0x208] sm:$0xff] %vm230_vm0, %v5979_v0 }
  0x33   : > { %297 = vst.msk [vmem:[#allocation2 + $0x210] sm:$0xff] %vm230_vm0, %v5979_v0  ;;  %298 = vst.msk [vmem:[#allocation2 + $0x218] sm:$0xff] %vm230_vm0, %v5979_v0 }
  0x34   : > { %299 = vst.msk [vmem:[#allocation2 + $0x220] sm:$0xff] %vm230_vm0, %v5979_v0  ;;  %300 = vst.msk [vmem:[#allocation2 + $0x228] sm:$0xff] %vm230_vm0, %v5979_v0 }
  0x35   : > { %301 = vst.msk [vmem:[#allocation2 + $0x230] sm:$0xff] %vm230_vm0, %v5979_v0  ;;  %302 = vst.msk [vmem:[#allocation2 + $0x238] sm:$0xff] %vm230_vm0, %v5979_v0 }
  0x36   : > { %303 = vst [vmem:[#allocation4] sm:$0xff] %v5979_v0  ;;  %304 = vst [vmem:[#allocation4 + $0x8] sm:$0xff] %v5979_v0 }
  0x37   : > { %305 = vst [vmem:[#allocation4 + $0x10] sm:$0xff] %v5979_v0  ;;  %306 = vst [vmem:[#allocation4 + $0x18] sm:$0xff] %v5979_v0 }
  0x38   : > { %307 = vst [vmem:[#allocation4 + $0x20] sm:$0xff] %v5979_v0  ;;  %308 = vst [vmem:[#allocation4 + $0x28] sm:$0xff] %v5979_v0 }
  0x39   : > { %309 = vst [vmem:[#allocation4 + $0x30] sm:$0xff] %v5979_v0  ;;  %310 = vst [vmem:[#allocation4 + $0x38] sm:$0xff] %v5979_v0 }
  0x3a   : > { %311 = vst [vmem:[#allocation4 + $0x40] sm:$0xff] %v5979_v0  ;;  %312 = vst [vmem:[#allocation4 + $0x48] sm:$0xff] %v5979_v0 }
  0x3b   : > { %313 = vst [vmem:[#allocation4 + $0x50] sm:$0xff] %v5979_v0  ;;  %314 = vst [vmem:[#allocation4 + $0x58] sm:$0xff] %v5979_v0 }
  0x3c   : > { %315 = vst [vmem:[#allocation4 + $0x60] sm:$0xff] %v5979_v0  ;;  %316 = vst [vmem:[#allocation4 + $0x68] sm:$0xff] %v5979_v0 }
  0x3d   : > { %317 = vst [vmem:[#allocation4 + $0x70] sm:$0xff] %v5979_v0  ;;  %318 = vst [vmem:[#allocation4 + $0x78] sm:$0xff] %v5979_v0 }
  0x3e   : > { %319 = vst [vmem:[#allocation4 + $0x80] sm:$0xff] %v5979_v0  ;;  %320 = vst [vmem:[#allocation4 + $0x88] sm:$0xff] %v5979_v0 }
  0x3f   : > { %321 = vst [vmem:[#allocation4 + $0x90] sm:$0xff] %v5979_v0  ;;  %322 = vst [vmem:[#allocation4 + $0x98] sm:$0xff] %v5979_v0 }
  0x40   : > { %323 = vst [vmem:[#allocation4 + $0xa0] sm:$0xff] %v5979_v0  ;;  %324 = vst [vmem:[#allocation4 + $0xa8] sm:$0xff] %v5979_v0 }
  0x41   : > { %325 = vst [vmem:[#allocation4 + $0xb0] sm:$0xff] %v5979_v0  ;;  %326 = vst [vmem:[#allocation4 + $0xb8] sm:$0xff] %v5979_v0 }
  0x42   : > { %327 = vst [vmem:[#allocation4 + $0xc0] sm:$0xff] %v5979_v0  ;;  %328 = vst [vmem:[#allocation4 + $0xc8] sm:$0xff] %v5979_v0 }
  0x43   : > { %329 = vst [vmem:[#allocation4 + $0xd0] sm:$0xff] %v5979_v0  ;;  %330 = vst [vmem:[#allocation4 + $0xd8] sm:$0xff] %v5979_v0 }
  0x44   : > { %331 = vst [vmem:[#allocation4 + $0xe0] sm:$0xff] %v5979_v0  ;;  %332 = vst [vmem:[#allocation4 + $0xe8] sm:$0xff] %v5979_v0 }
  0x45   : > { %333 = vst [vmem:[#allocation4 + $0xf0] sm:$0xff] %v5979_v0  ;;  %334 = vst [vmem:[#allocation4 + $0xf8] sm:$0xff] %v5979_v0 }
  0x46   : > { %335 = vst [vmem:[#allocation4 + $0x100] sm:$0xff] %v5979_v0  ;;  %336 = vst [vmem:[#allocation4 + $0x108] sm:$0xff] %v5979_v0 }
  0x47   : > { %337 = vst [vmem:[#allocation4 + $0x110] sm:$0xff] %v5979_v0  ;;  %338 = vst [vmem:[#allocation4 + $0x118] sm:$0xff] %v5979_v0 }
  0x48   : > { %339 = vst [vmem:[#allocation4 + $0x120] sm:$0xff] %v5979_v0  ;;  %340 = vst [vmem:[#allocation4 + $0x128] sm:$0xff] %v5979_v0 }
  0x49   : > { %341 = vst [vmem:[#allocation4 + $0x130] sm:$0xff] %v5979_v0  ;;  %342 = vst [vmem:[#allocation4 + $0x138] sm:$0xff] %v5979_v0 }
  0x4a   : > { %343 = vst [vmem:[#allocation4 + $0x140] sm:$0xff] %v5979_v0  ;;  %344 = vst [vmem:[#allocation4 + $0x148] sm:$0xff] %v5979_v0 }
  0x4b   : > { %345 = vst [vmem:[#allocation4 + $0x150] sm:$0xff] %v5979_v0  ;;  %346 = vst [vmem:[#allocation4 + $0x158] sm:$0xff] %v5979_v0 }
  0x4c   : > { %347 = vst [vmem:[#allocation4 + $0x160] sm:$0xff] %v5979_v0  ;;  %348 = vst [vmem:[#allocation4 + $0x168] sm:$0xff] %v5979_v0 }
  0x4d   : > { %349 = vst [vmem:[#allocation4 + $0x170] sm:$0xff] %v5979_v0  ;;  %350 = vst [vmem:[#allocation4 + $0x178] sm:$0xff] %v5979_v0 }
  0x4e   : > { %351 = vst [vmem:[#allocation4 + $0x180] sm:$0xff] %v5979_v0  ;;  %352 = vst [vmem:[#allocation4 + $0x188] sm:$0xff] %v5979_v0 }
  0x4f   : > { %353 = vst [vmem:[#allocation4 + $0x190] sm:$0xff] %v5979_v0  ;;  %354 = vst [vmem:[#allocation4 + $0x198] sm:$0xff] %v5979_v0 }
  0x50   : > { %355 = vst [vmem:[#allocation4 + $0x1a0] sm:$0xff] %v5979_v0  ;;  %356 = vst [vmem:[#allocation4 + $0x1a8] sm:$0xff] %v5979_v0 }
  0x51   : > { %357 = vst [vmem:[#allocation4 + $0x1b0] sm:$0xff] %v5979_v0  ;;  %358 = vst [vmem:[#allocation4 + $0x1b8] sm:$0xff] %v5979_v0 }
  0x52   : > { %359 = vst [vmem:[#allocation4 + $0x1c0] sm:$0xff] %v5979_v0  ;;  %360 = vst [vmem:[#allocation4 + $0x1c8] sm:$0xff] %v5979_v0 }
  0x53   : > { %361 = vst [vmem:[#allocation4 + $0x1d0] sm:$0xff] %v5979_v0  ;;  %362 = vst [vmem:[#allocation4 + $0x1d8] sm:$0xff] %v5979_v0 }
  0x54   : > { %363 = vst [vmem:[#allocation4 + $0x1e0] sm:$0xff] %v5979_v0  ;;  %364 = vst [vmem:[#allocation4 + $0x1e8] sm:$0xff] %v5979_v0 }
  0x55   : > { %365 = vst [vmem:[#allocation4 + $0x1f0] sm:$0xff] %v5979_v0  ;;  %366 = vst [vmem:[#allocation4 + $0x1f8] sm:$0xff] %v5979_v0 }
  0x56   : > { %367 = vst [vmem:[#allocation4 + $0x200] sm:$0xff] %v5979_v0  ;;  %368 = vst [vmem:[#allocation4 + $0x208] sm:$0xff] %v5979_v0 }
  0x57   : > { %369 = vst [vmem:[#allocation4 + $0x210] sm:$0xff] %v5979_v0  ;;  %370 = vst [vmem:[#allocation4 + $0x218] sm:$0xff] %v5979_v0 }
  0x58   : > { %371 = vst [vmem:[#allocation4 + $0x220] sm:$0xff] %v5979_v0  ;;  %372 = vst [vmem:[#allocation4 + $0x228] sm:$0xff] %v5979_v0 }
  0x59   : > { %373 = vst [vmem:[#allocation4 + $0x230] sm:$0xff] %v5979_v0  ;;  %374 = vst [vmem:[#allocation4 + $0x238] sm:$0xff] %v5979_v0 }
  0x5a PF: > { %v666_v1 = vld [vmem:[#allocation2 + $0x8] sm:$0xff]  ;;  %v667_v2 = vld [vmem:[#allocation2 + $0x10] sm:$0xff]  ;;  %v5445_v6 = vld [vmem:[%s6024_s25] sm:$0xff]   ;;  %vm440_vm1 = vcmask 261120   ;;  %s5980_s29 = smov 32   ;;  %s5981_s30 = smov 64  }
  0x5b   : > { %v924_v3 = vld [vmem:[#allocation2 + $0x11] sm:$0xff]  ;;  %v5188_v4 = vpack.c.bf16 %v666_v1, %v666_v1  ;;  %v5508_v7 = vld [vmem:[%s6024_s25 + $0x8] sm:$0xff]   ;;  %v5189_v8 = vpack.c.bf16 %v667_v2, %v667_v2  ;;  %v5446_v10 = vunpack.c.l.bf16 %v5445_v6  ;;  %v5447_v11 = vunpack.c.h.bf16 %v5445_v6  ;;  %v5511_v15 = vld [vmem:[%s6024_s25 + $0x20] sm:$0xff]   ;;  %s5982_s21 = smov 96  }
  0x5c   : > { %v5221_v5 = vpack.c.bf16 %v924_v3, %v924_v3  ;;  %v923_v9 = vld [vmem:[#allocation2 + $0x9] sm:$0xff]  ;;  %v5450_v12 = vunpack.c.l.bf16 %v5508_v7  ;;  %v5510_v14 = vld [vmem:[%s6024_s25 + $0x18] sm:$0xff]   ;;  %v5451_v16 = vunpack.c.h.bf16 %v5508_v7  ;;  %v5462_v24 = vunpack.c.l.bf16 %v5511_v15  ;;  %v5773_v37 = vld [vmem:[%s8242_s1 + $0x60] sm:$0xff]  }
  0x5d   : > { %v5509_v13 = vld [vmem:[%s6024_s25 + $0x10] sm:$0xff]   ;;  %794 = vrot.lane.b32.xlu0 %v5188_v4, %s5980_s29  ;;  %v5458_v19 = vunpack.c.l.bf16 %v5510_v14  ;;  %v5512_v20 = vld [vmem:[%s6024_s25 + $0x28] sm:$0xff]   ;;  %441 = vst.msk [vmem:[#allocation2 + $0x28] sm:$0xff] %vm440_vm1, %v5446_v10  ;;  %442 = vst.msk [vmem:[#allocation2 + $0x30] sm:$0xff] %vm440_vm1, %v5447_v11  ;;  %v5459_v23 = vunpack.c.h.bf16 %v5510_v14  ;;  %v5463_v25 = vunpack.c.h.bf16 %v5511_v15  ;;  %vm633_vm2 = vcmask 257024  }
  0x5e   : > { %1053 = vrot.lane.b32.xlu1 %v5221_v5, %s5981_s30  ;;  %v5454_v17 = vunpack.c.l.bf16 %v5509_v13  ;;  %v5455_v18 = vunpack.c.h.bf16 %v5509_v13  ;;  %v473_v21 = vld [vmem:[#allocation2 + $0x7] sm:$0xff]  ;;  %v474_v22 = vld [vmem:[#allocation2 + $0xf] sm:$0xff]  ;;  %443 = vst.msk [vmem:[#allocation2 + $0x48] sm:$0xff] %vm440_vm1, %v5450_v12  ;;  %v5466_v26 = vunpack.c.l.bf16 %v5512_v20  ;;  %v5767_v27 = vld [vmem:[%s8242_s1 + $0x78] sm:$0xff]   ;;  %v5467_v28 = vunpack.c.h.bf16 %v5512_v20 }
  0x5f   : > { %444 = vst.msk [vmem:[#allocation2 + $0x50] sm:$0xff] %vm440_vm1, %v5451_v16  ;;  %447 = vst.msk [vmem:[#allocation2 + $0x88] sm:$0xff] %vm440_vm1, %v5458_v19  ;;  %v5156_v29 = vpack.c.bf16 %v473_v21, %v473_v21  ;;  %v5157_v30 = vpack.c.bf16 %v474_v22, %v474_v22  ;;  %v5768_v31 = vld [vmem:[%s8242_s1 + $0x38] sm:$0xff]   ;;  %5523 = vmatprep.subr.bf16.mxu0 %v5767_v27  ;;  %v5769_v32 = vld [vmem:[%s8242_s1 + $0x70] sm:$0xff]   ;;  %v5220_v33 = vpack.c.bf16 %v923_v9, %v923_v9  ;;  %vm890_vm3 = vcmask 519424  }
  0x60   : > { %445 = vst.msk [vmem:[#allocation2 + $0x68] sm:$0xff] %vm440_vm1, %v5454_v17  ;;  %446 = vst.msk [vmem:[#allocation2 + $0x70] sm:$0xff] %vm440_vm1, %v5455_v18  ;;  %5524 = vmatpush3.bf16.msra.mxu0 %v5768_v31  ;;  %v5770_v34 = vld [vmem:[%s8242_s1 + $0x30] sm:$0xff]   ;;  %v5771_v35 = vld [vmem:[%s8242_s1 + $0x68] sm:$0xff]   ;;  %vm1147_vm4 = vcmask 781824   ;;  %vm1404_vm5 = vcmask 1044224  }
  0x61   : > { %448 = vst.msk [vmem:[#allocation2 + $0x90] sm:$0xff] %vm440_vm1, %v5459_v23  ;;  %449 = vst.msk [vmem:[#allocation2 + $0xa8] sm:$0xff] %vm440_vm1, %v5462_v24  ;;  %796 = vrot.lane.b32.xlu0 %v5189_v8, %s5980_s29  ;;  %5525 = vmatprep.subr.bf16.mxu0 %v5769_v32  ;;  %v5772_v36 = vld [vmem:[%s8242_s1 + $0x28] sm:$0xff]   ;;  %v5513_v27 = vld [vmem:[%s6024_s25 + $0x30] sm:$0xff]   ;;  %vm3518_vm6 = vcmask 785408  }
  0x62   : > { %450 = vst.msk [vmem:[#allocation2 + $0xb0] sm:$0xff] %vm440_vm1, %v5463_v25  ;;  %451 = vst.msk [vmem:[#allocation2 + $0xc8] sm:$0xff] %vm440_vm1, %v5466_v26  ;;  %v5774_v26 = vld [vmem:[%s8242_s1 + $0x20] sm:$0xff]   ;;  %v5776_v31 = vld [vmem:[%s8242_s1 + $0x18] sm:$0xff]  }
  0x63   : > { %452 = vst.msk [vmem:[#allocation2 + $0xd0] sm:$0xff] %vm440_vm1, %v5467_v28  ;;  %v5470_v28 = vunpack.c.l.bf16 %v5513_v27  ;;  %v5777_v32 = vld [vmem:[%s8242_s1 + $0x50] sm:$0xff]  }
  0x64   : > { %634 = vst.msk [vmem:[#allocation3] sm:$0xf] %vm633_vm2, %v5156_v29  ;;  %635 = vst.msk [vmem:[#allocation3 + $0xc] sm:$0xf] %vm633_vm2, %v5157_v30  ;;  %v1629_v38 = vld [vmem:[#allocation2 + $0x29] sm:$0xff]  ;;  %v1630_v40 = vld [vmem:[#allocation2 + $0x31] sm:$0xff]  ;;  %5526 = vmatpush3.bf16.msra.mxu0 %v5770_v34  ;;  %v5471_v30 = vunpack.c.h.bf16 %v5513_v27 }
  0x65   : > { %1051 = vrot.lane.b32.xlu0 %v5220_v33, %s5981_s30  ;;  %v1886_v39 = vld [vmem:[#allocation2 + $0x47] sm:$0xff]  ;;  %v6292_v41 = vpack.c.bf16 %v1629_v38, %v1629_v38  ;;  %v1181_v45 = vld [vmem:[#allocation2 + $0x2f] sm:$0xff]  ;;  %5527 = vmatprep.subr.bf16.mxu0 %v5771_v35  ;;  %v6302_v52 = vpack.c.bf16 %v1630_v40, %v1630_v40  ;;  %v5775_v29 = vld [vmem:[%s8242_s1 + $0x58] sm:$0xff]   ;;  %453 = vst.msk [vmem:[#allocation2 + $0xe8] sm:$0xff] %vm440_vm1, %v5470_v28 }
  0x66   : > { %v6294_v42 = vpack.c.bf16 %v1886_v39, %v1886_v39  ;;  %v1887_v43 = vld [vmem:[#allocation2 + $0x4f] sm:$0xff]  ;;  %v1180_v44 = vld [vmem:[#allocation2 + $0x27] sm:$0xff]  ;;  %v6298_v48 = vpack.c.bf16 %v1181_v45, %v1181_v45  ;;  %454 = vst.msk [vmem:[#allocation2 + $0xf0] sm:$0xff] %vm440_vm1, %v5471_v30 }
  0x67   : > { %v6296_v46 = vpack.c.bf16 %v1887_v43, %v1887_v43  ;;  %v5252_v47 = vpack.c.bf16 %v1180_v44, %v1180_v44  ;;  %v2142_v49 = vld [vmem:[#allocation2 + $0x48] sm:$0xff]  ;;  %v2143_v50 = vld [vmem:[#allocation2 + $0x50] sm:$0xff]  ;;  %1757 = vrot.lane.b32.xlu1 %v6292_v41, %s5980_s29  ;;  %v5781_v38 = vld [vmem:[%s8242_s1 + $0x40] sm:$0xff]  }
  0x68   : > { %v668_v51 = vld [vmem:[#allocation2 + $0x28] sm:$0xff]  ;;  %v6304_v53 = vpack.c.bf16 %v2142_v49, %v2142_v49  ;;  %v6306_v54 = vpack.c.bf16 %v2143_v50, %v2143_v50  ;;  %v669_v56 = vld [vmem:[#allocation2 + $0x30] sm:$0xff]  ;;  %638 = vst.msk [vmem:[#allocation3 + $0x30] sm:$0xf] %vm633_vm2, %v6294_v42  ;;  %5528 = vmatpush3.bf16.msra.mxu0 %v5772_v36  ;;  %637 = vst.msk [vmem:[#allocation3 + $0x24] sm:$0xf] %vm633_vm2, %v6298_v48 }
  0x69   : > { %v6308_v55 = vpack.c.bf16 %v668_v51, %v668_v51  ;;  %v1631_v57 = vld [vmem:[#allocation2 + $0x49] sm:$0xff]  ;;  %v1632_v58 = vld [vmem:[#allocation2 + $0x51] sm:$0xff]  ;;  %2014 = vrot.lane.b32.xlu0 %v6294_v42, %s5981_s30  ;;  %v6314_v59 = vpack.c.bf16 %v669_v56, %v669_v56  ;;  %636 = vst.msk [vmem:[#allocation3 + $0x18] sm:$0xf] %vm633_vm2, %v5252_v47  ;;  %639 = vst.msk [vmem:[#allocation3 + $0x3c] sm:$0xf] %vm633_vm2, %v6296_v46  ;;  %5529 = vmatprep.subr.bf16.mxu0 %v5773_v37 }
  0x6a   : > { %v6316_v60 = vpack.c.bf16 %v1631_v57, %v1631_v57  ;;  %v6318_v61 = vpack.c.bf16 %v1632_v58, %v1632_v58  ;;  %v1888_v62 = vld [vmem:[#allocation2 + $0x67] sm:$0xff]  ;;  %v1889_v63 = vld [vmem:[#allocation2 + $0x6f] sm:$0xff]  ;;  %1599 = vst.msk [vmem:[#allocation3 + $0x1c] sm:$0xf] %vm633_vm2, %v6304_v53  ;;  %1600 = vst.msk [vmem:[#allocation3 + $0x28] sm:$0xf] %vm633_vm2, %v6306_v54 }
  0x6b   : > { %v2144_v0 = vld [vmem:[#allocation2 + $0x68] sm:$0xff]  ;;  %v6325_v1 = vpack.c.bf16 %v1888_v62, %v1888_v62  ;;  %v6327_v2 = vpack.c.bf16 %v1889_v63, %v1889_v63  ;;  %v2145_v4 = vld [vmem:[#allocation2 + $0x70] sm:$0xff]  ;;  %1597 = vst.msk [vmem:[#allocation3 + $0x4] sm:$0xf] %vm633_vm2, %v6308_v55  ;;  %1598 = vst.msk [vmem:[#allocation3 + $0x10] sm:$0xf] %vm633_vm2, %v6314_v59  ;;  %1759 = vrot.lane.b32.xlu1 %v6302_v52, %s5980_s29 }
  0x6c   : > { %v6329_v3 = vpack.c.bf16 %v2144_v0, %v2144_v0  ;;  %v1633_v5 = vld [vmem:[#allocation2 + $0x69] sm:$0xff]  ;;  %v1634_v6 = vld [vmem:[#allocation2 + $0x71] sm:$0xff]  ;;  %v6337_v7 = vpack.c.bf16 %v2145_v4, %v2145_v4  ;;  %2558 = vst.msk [vmem:[#allocation3 + $0x8] sm:$0xf] %vm633_vm2, %v6316_v60  ;;  %2559 = vst.msk [vmem:[#allocation3 + $0x14] sm:$0xf] %vm633_vm2, %v6318_v61  ;;  %5530 = vmatpush3.bf16.msra.mxu0 %v5774_v26 }
  0x6d   : > { %v6339_v8 = vpack.c.bf16 %v1633_v5, %v1633_v5  ;;  %v6341_v9 = vpack.c.bf16 %v1634_v6, %v1634_v6  ;;  %v2146_v10 = vld [vmem:[#allocation2 + $0x88] sm:$0xff]  ;;  %v2147_v12 = vld [vmem:[#allocation2 + $0x90] sm:$0xff]  ;;  %640 = vst.msk [vmem:[#allocation3 + $0x48] sm:$0xf] %vm633_vm2, %v6325_v1  ;;  %641 = vst.msk [vmem:[#allocation3 + $0x54] sm:$0xf] %vm633_vm2, %v6327_v2  ;;  %1308 = vrot.lane.b32.xlu0 %v5252_v47, %s5982_s21  ;;  %5531 = vmatprep.subr.bf16.mxu0 %v5775_v29 }
  0x6e   : > { %v6351_v11 = vpack.c.bf16 %v2146_v10, %v2146_v10  ;;  %v1635_v13 = vld [vmem:[#allocation2 + $0x89] sm:$0xff]  ;;  %v1636_v14 = vld [vmem:[#allocation2 + $0x91] sm:$0xff]  ;;  %1601 = vst.msk [vmem:[#allocation3 + $0x34] sm:$0xf] %vm633_vm2, %v6329_v3  ;;  %v6360_v15 = vpack.c.bf16 %v2147_v12, %v2147_v12  ;;  %1602 = vst.msk [vmem:[#allocation3 + $0x40] sm:$0xf] %vm633_vm2, %v6337_v7 }
  0x6f   : > { %v6362_v16 = vpack.c.bf16 %v1635_v13, %v1635_v13  ;;  %v6364_v17 = vpack.c.bf16 %v1636_v14, %v1636_v14  ;;  %v2148_v18 = vld [vmem:[#allocation2 + $0xa8] sm:$0xff]  ;;  %2560 = vst.msk [vmem:[#allocation3 + $0x20] sm:$0xf] %vm633_vm2, %v6339_v8  ;;  %2561 = vst.msk [vmem:[#allocation3 + $0x2c] sm:$0xf] %vm633_vm2, %v6341_v9  ;;  %v2149_v20 = vld [vmem:[#allocation2 + $0xb0] sm:$0xff]  ;;  %2016 = vrot.lane.b32.xlu1 %v6296_v46, %s5981_s30 }
  0x70   : > { %v6372_v19 = vpack.c.bf16 %v2148_v18, %v2148_v18  ;;  %v1637_v21 = vld [vmem:[#allocation2 + $0xa9] sm:$0xff]  ;;  %v1638_v22 = vld [vmem:[#allocation2 + $0xb1] sm:$0xff]  ;;  %1603 = vst.msk [vmem:[#allocation3 + $0x4c] sm:$0xf] %vm633_vm2, %v6351_v11  ;;  %v6376_v23 = vpack.c.bf16 %v2149_v20, %v2149_v20  ;;  %1604 = vst.msk [vmem:[#allocation3 + $0x58] sm:$0xf] %vm633_vm2, %v6360_v15  ;;  %5532 = vmatpush3.bf16.msra.mxu0 %v5776_v31 }
  0x71   : > { %v6378_v24 = vpack.c.bf16 %v1637_v21, %v1637_v21  ;;  %v6380_v25 = vpack.c.bf16 %v1638_v22, %v1638_v22  ;;  %2562 = vst.msk [vmem:[#allocation3 + $0x38] sm:$0xf] %vm633_vm2, %v6362_v16  ;;  %2563 = vst.msk [vmem:[#allocation3 + $0x44] sm:$0xf] %vm633_vm2, %v6364_v17  ;;  %2270 = vrot.lane.b32.xlu0 %v6304_v53, %s5982_s21  ;;  %v5778_v33 = vld [vmem:[%s8242_s1 + $0x10] sm:$0xff]   ;;  %5533 = vmatprep.subr.bf16.mxu0 %v5777_v32  ;;  %v5779_v34 = vld [vmem:[%s8242_s1 + $0x48] sm:$0xff]  }
  0x72   : > { %1605 = vst.msk [vmem:[#allocation3 + $0x64] sm:$0xf] %vm633_vm2, %v6372_v19  ;;  %1606 = vst.msk [vmem:[#allocation3 + $0x70] sm:$0xf] %vm633_vm2, %v6376_v23  ;;  %v5782_v35 = vld [vmem:[%s8242_s1 + $0x88] sm:$0xff]   ;;  %v2153_v40 = vld [vmem:[#allocation2 + $0xf0] sm:$0xff] }
  0x73   : > { %2564 = vst.msk [vmem:[#allocation3 + $0x50] sm:$0xf] %vm633_vm2, %v6378_v24  ;;  %2565 = vst.msk [vmem:[#allocation3 + $0x5c] sm:$0xf] %vm633_vm2, %v6380_v25  ;;  %1310 = vrot.lane.b32.xlu1 %v6298_v48, %s5982_s21  ;;  %v5780_v36 = vld [vmem:[%s8242_s1 + $0x8] sm:$0xff]   ;;  %5675 = vmatprep.subr.bf16.mxu1 %v5782_v35  ;;  %v5783_v43 = vld [vmem:[%s8242_s1] sm:$0xff]   ;;  %v6450_v47 = vpack.c.bf16 %v2153_v40, %v2153_v40 }
  0x74   : > { %5534 = vmatpush3.bf16.msra.mxu0 %v5778_v33  ;;  %v2152_v37 = vld [vmem:[#allocation2 + $0xe8] sm:$0xff]  ;;  %v5787_v45 = vld [vmem:[%s8242_s1 + $0x80] sm:$0xff]   ;;  %5676 = vmatpush3.bf16.msra.mxu1 %v5782_v35 }
  0x75   : > { %798 = vrot.lane.b32.xlu0 %v6308_v55, %s5980_s29  ;;  %5535 = vmatprep.subr.bf16.mxu0 %v5779_v34  ;;  %v6442_v39 = vpack.c.bf16 %v2152_v37, %v2152_v37  ;;  %v1641_v44 = vld [vmem:[#allocation2 + $0xe9] sm:$0xff]  ;;  %v5514_v55 = vld [vmem:[%s6024_s25 + $0x38] sm:$0xff]   ;;  %1610 = vst.msk [vmem:[#allocation3 + $0xa0] sm:$0xf] %vm633_vm2, %v6450_v47  ;;  %v5515_v58 = vld [vmem:[%s6024_s25 + $0x40] sm:$0xff]  }
  0x76   : > { %v6452_v48 = vpack.c.bf16 %v1641_v44, %v1641_v44  ;;  %5677 = vmatprep.subr.bf16.mxu1 %v5787_v45  ;;  %v5788_v50 = vld [vmem:[#allocation3 + $0x8] ss:$12 sps:$4 sm:$0xff]   ;;  %v5789_v51 = vld [vmem:[#allocation3 + $0x20] ss:$12 sps:$4 sm:$0xff]   ;;  %v5474_v56 = vunpack.c.l.bf16 %v5514_v55  ;;  %v5475_v57 = vunpack.c.h.bf16 %v5514_v55  ;;  %v5479_v5 = vunpack.c.h.bf16 %v5515_v58 }
  0x77   : > { %2272 = vrot.lane.b32.xlu1 %v6306_v54, %s5982_s21  ;;  %1609 = vst.msk [vmem:[#allocation3 + $0x94] sm:$0xf] %vm633_vm2, %v6442_v39  ;;  %5679 = vmatprep.mubr.msk.bf16.mxu1 %vm440_vm1, %v5788_v50  ;;  %v1891_v12 = vld [vmem:[#allocation2 + $0x8f] sm:$0xff]  ;;  %v481_v33 = vld [vmem:[#allocation2 + $0x87] sm:$0xff] }
  0x78   : > { %5536 = vmatpush3.bf16.msra.mxu0 %v5780_v36  ;;  %2568 = vst.msk [vmem:[#allocation3 + $0x80] sm:$0xf] %vm633_vm2, %v6452_v48  ;;  %5678 = vmatpush3.bf16.msra.mxu1 %v5787_v45  ;;  %v5353_v18 = vpack.c.bf16 %v1891_v12, %v1891_v12  ;;  %v5516_v20 = vld [vmem:[%s6024_s25 + $0x48] sm:$0xff]   ;;  %v5794_v28 = vld [vmem:[#allocation3 + $0x38] ss:$12 sps:$4 sm:$0xff]   ;;  %v5164_v35 = vpack.c.bf16 %v481_v33, %v481_v33 }
  0x79   : > { %1761 = vrot.lane.b32.xlu0 %v6316_v60, %s5980_s29  ;;  %5537 = vmatprep.subr.bf16.mxu0 %v5781_v38  ;;  %455 = vst.msk [vmem:[#allocation2 + $0x108] sm:$0xff] %vm440_vm1, %v5474_v56  ;;  %456 = vst.msk [vmem:[#allocation2 + $0x110] sm:$0xff] %vm440_vm1, %v5475_v57  ;;  %v5482_v21 = vunpack.c.l.bf16 %v5516_v20  ;;  %v1893_v30 = vld [vmem:[#allocation2 + $0xaf] sm:$0xff]  ;;  %v1894_v50 = vld [vmem:[#allocation2 + $0xc7] sm:$0xff] }
  0x7a   : > { %458 = vst.msk [vmem:[#allocation2 + $0x130] sm:$0xff] %vm440_vm1, %v5479_v5  ;;  %v5795_v29 = vld [vmem:[#allocation3 + $0x50] ss:$12 sps:$4 sm:$0xff]   ;;  %v2150_v55 = vld [vmem:[#allocation2 + $0xc8] sm:$0xff] }
  0x7b   : > { %800 = vrot.lane.b32.xlu1 %v6314_v59, %s5980_s29  ;;  %5680 = vmatmul.mubr.msk.bf16.vlgmr.msra.gmra.mxu1 %vm440_vm1, %v5789_v51  ;;  %v5478_v59 = vunpack.c.l.bf16 %v5515_v58  ;;  %459 = vst.msk [vmem:[#allocation2 + $0x148] sm:$0xff] %vm440_vm1, %v5482_v21  ;;  %v482_v34 = vld [vmem:[#allocation2 + $0x8f] sm:$0xff]  ;;  %v483_v56 = vld [vmem:[#allocation2 + $0xa7] sm:$0xff] }
  0x7c   : > { %5538 = vmatpush3.bf16.msra.mxu0 %v5783_v43  ;;  %5683 = vmatprep.mubr.msk.bf16.mxu1 %vm440_vm1, %v5794_v28  ;;  %642 = vst.msk [vmem:[#allocation3 + $0x60] sm:$0xf] %vm633_vm2, %v5164_v35  ;;  %v5517_v38 = vld [vmem:[%s6024_s25 + $0x50] sm:$0xff]   ;;  %v1896_v35 = vld [vmem:[#allocation2 + $0xe7] sm:$0xff] }
  0x7d   : > { %1055 = vrot.lane.b32.xlu0 %v6292_v41, %s5981_s30  ;;  %v1642_v41 = vld [vmem:[#allocation2 + $0xf1] sm:$0xff]  ;;  %457 = vst.msk [vmem:[#allocation2 + $0x128] sm:$0xff] %vm440_vm1, %v5478_v59  ;;  %v5487_v44 = vunpack.c.h.bf16 %v5517_v38  ;;  %v2406_v59 = vld [vmem:[#allocation2 + $0xc9] sm:$0xff] }
  0x7e   : > { %v6454_v49 = vpack.c.bf16 %v1642_v41, %v1642_v41  ;;  %v1895_v51 = vld [vmem:[#allocation2 + $0xcf] sm:$0xff] }
  0x7f   : > { %1763 = vrot.lane.b32.xlu1 %v6318_v61, %s5980_s29  ;;  %462 = vst.msk [vmem:[#allocation2 + $0x170] sm:$0xff] %vm440_vm1, %v5487_v44  ;;  %v484_v57 = vld [vmem:[#allocation2 + $0xaf] sm:$0xff]  ;;  %v6607_v58 = vpack.c.bf16 %v1895_v51, %v1895_v51 }
  0x80   : > { %2569 = vst.msk [vmem:[#allocation3 + $0x8c] sm:$0xf] %vm633_vm2, %v6454_v49  ;;  %v2154_v62 = vld [vmem:[#allocation2 + $0x108] sm:$0xff]  ;;  %v2155_v0 = vld [vmem:[#allocation2 + $0x110] sm:$0xff] }
  0x81   : > { %2018 = vrot.lane.b32.xlu0 %v6325_v1, %s5981_s30  ;;  %v6483_v63 = vpack.c.bf16 %v2154_v62, %v2154_v62  ;;  %v1644_v6 = vld [vmem:[#allocation2 + $0x111] sm:$0xff] }
  0x82   : > { %v6495_v10 = vpack.c.bf16 %v1644_v6, %v1644_v6  ;;  %v1646_v26 = vld [vmem:[#allocation2 + $0x131] sm:$0xff]  ;;  %v2158_v31 = vld [vmem:[#allocation2 + $0x148] sm:$0xff] }
  0x83   : > { %1057 = vrot.lane.b32.xlu1 %v6302_v52, %s5981_s30  ;;  %v1643_v52 = vld [vmem:[#allocation2 + $0x109] sm:$0xff]  ;;  %1611 = vst.msk [vmem:[#allocation3 + $0xac] sm:$0xf] %vm633_vm2, %v6483_v63  ;;  %v6540_v27 = vpack.c.bf16 %v1646_v26, %v1646_v26  ;;  %5684 = vmatmul.mubr.msk.bf16.gmra.mxu1 %vm440_vm1, %v5795_v29  ;;  %v6558_v32 = vpack.c.bf16 %v2158_v31, %v2158_v31  ;;  %v2407_v62 = vld [vmem:[#allocation2 + $0xd1] sm:$0xff] }
  0x84   : > { %v6489_v4 = vpack.c.bf16 %v1643_v52, %v1643_v52  ;;  %2571 = vst.msk [vmem:[#allocation3 + $0xa4] sm:$0xf] %vm633_vm2, %v6495_v10  ;;  %v2156_v13 = vld [vmem:[#allocation2 + $0x128] sm:$0xff]  ;;  %v5420_v52 = vpack.c.bf16 %v2406_v59, %v2406_v59  ;;  %v5421_v5 = vpack.c.bf16 %v2407_v62, %v2407_v62 }
  0x85   : > { %1312 = vrot.lane.b32.xlu0 %v6294_v42, %s5982_s21  ;;  %v6487_v42 = vpack.c.bf16 %v2155_v0, %v2155_v0  ;;  %v6515_v14 = vpack.c.bf16 %v2156_v13, %v2156_v13  ;;  %2573 = vst.msk [vmem:[#allocation3 + $0xbc] sm:$0xf] %vm633_vm2, %v6540_v27  ;;  %1615 = vst.msk [vmem:[#allocation3 + $0xdc] sm:$0xf] %vm633_vm2, %v6558_v32  ;;  %v6610_v0 = vpack.c.bf16 %v2150_v55, %v2150_v55 }
  0x86   : > { %2570 = vst.msk [vmem:[#allocation3 + $0x98] sm:$0xf] %vm633_vm2, %v6489_v4  ;;  %2566 = vst.msk [vmem:[#allocation3 + $0x68] sm:$0xf] %vm633_vm2, %v5420_v52 }
  0x87   : > { %2020 = vrot.lane.b32.xlu1 %v6327_v2, %s5981_s30  ;;  %1612 = vst.msk [vmem:[#allocation3 + $0xb8] sm:$0xf] %vm633_vm2, %v6487_v42  ;;  %1613 = vst.msk [vmem:[#allocation3 + $0xc4] sm:$0xf] %vm633_vm2, %v6515_v14 }
  0x88   : > { %2567 = vst.msk [vmem:[#allocation3 + $0x74] sm:$0xf] %vm633_vm2, %v5421_v5 }
  0x89   : > { %2274 = vrot.lane.b32.xlu0 %v6329_v3, %s5982_s21 }
  0x8b   : > { %1314 = vrot.lane.b32.xlu1 %v6296_v46, %s5982_s21  ;;  %v1890_v46 = vld [vmem:[#allocation2 + $0x87] sm:$0xff] }
  0x8d   : > { %802 = vrot.lane.b32.xlu0 %v6304_v53, %s5980_s29  ;;  %v5352_v53 = vpack.c.bf16 %v1890_v46, %v1890_v46  ;;  %v1448_v46 = vld [vmem:[#allocation2 + $0xd0] sm:$0xff] }
  0x8e   : > { %v5295_v13 = vpack.c.bf16 %v1448_v46, %v1448_v46 }
  0x8f   : > { %2276 = vrot.lane.b32.xlu1 %v6337_v7, %s5982_s21  ;;  %v5800_v31 = vld [vmem:[#allocation3 + $0x68] ss:$12 sps:$4 sm:$0xff]  }
  0x90   : > { %1608 = vst.msk [vmem:[#allocation3 + $0x88] sm:$0xf] %vm633_vm2, %v5295_v13  ;;  %5687 = vmatprep.mubr.msk.bf16.mxu1 %vm440_vm1, %v5800_v31 }
  0x91   : > { %1765 = vrot.lane.b32.xlu0 %v6339_v8, %s5980_s29 }
  0x93   : > { %804 = vrot.lane.b32.xlu1 %v6306_v54, %s5980_s29  ;;  %v2157_v54 = vld [vmem:[#allocation2 + $0x130] sm:$0xff] }
  0x95   : > { %1059 = vrot.lane.b32.xlu0 %v6316_v60, %s5981_s30  ;;  %v6523_v60 = vpack.c.bf16 %v2157_v54, %v2157_v54  ;;  %v2151_v54 = vld [vmem:[#allocation2 + $0xd0] sm:$0xff] }
  0x96   : > { %v6630_v28 = vpack.c.bf16 %v2151_v54, %v2151_v54 }
  0x97   : > { %1767 = vrot.lane.b32.xlu1 %v6341_v9, %s5980_s29  ;;  %1614 = vst.msk [vmem:[#allocation3 + $0xd0] sm:$0xf] %vm633_vm2, %v6523_v60 }
  0x99   : > { %2022 = vrot.lane.b32.xlu0 %v5352_v53, %s5981_s30 }
  0x9b   : > { %1061 = vrot.lane.b32.xlu1 %v6318_v61, %s5981_s30  ;;  %v1645_v61 = vld [vmem:[#allocation2 + $0x129] sm:$0xff] }
  0x9c   : > { %v6531_v22 = vpack.c.bf16 %v1645_v61, %v1645_v61  ;;  %v1639_v61 = vld [vmem:[#allocation2 + $0xc9] sm:$0xff] }
  0x9d   : > { %1316 = vrot.lane.b32.xlu0 %v6325_v1, %s5982_s21  ;;  %v5483_v1 = vunpack.c.h.bf16 %v5516_v20 }
  0x9e   : > { %2572 = vst.msk [vmem:[#allocation3 + $0xb0] sm:$0xf] %vm633_vm2, %v6531_v22 }
  0x9f   : > { %2024 = vrot.lane.b32.xlu1 %v5353_v18, %s5981_s30  ;;  %460 = vst.msk [vmem:[#allocation2 + $0x150] sm:$0xff] %vm440_vm1, %v5483_v1 }
  0xa1   : > { %2278 = vrot.lane.b32.xlu0 %v6351_v11, %s5982_s21 }
  0xa3   : > { %1318 = vrot.lane.b32.xlu1 %v6327_v2, %s5982_s21  ;;  %v1892_v2 = vld [vmem:[#allocation2 + $0xa7] sm:$0xff] }
  0xa5   : > { %806 = vrot.lane.b32.xlu0 %v6329_v3, %s5980_s29  ;;  %v5354_v3 = vpack.c.bf16 %v1892_v2, %v1892_v2  ;;  %v6637_v2 = vpack.c.bf16 %v1639_v61, %v1639_v61  ;;  %v1899_v61 = vld [vmem:[#allocation2 + $0x10f] sm:$0xff] }
  0xa6   : > { %v2159_v36 = vld [vmem:[#allocation2 + $0x150] sm:$0xff] }
  0xa7   : > { %2280 = vrot.lane.b32.xlu1 %v6360_v15, %s5982_s21  ;;  %v6569_v37 = vpack.c.bf16 %v2159_v36, %v2159_v36  ;;  %v1647_v40 = vld [vmem:[#allocation2 + $0x149] sm:$0xff]  ;;  %v1648_v45 = vld [vmem:[#allocation2 + $0x151] sm:$0xff] }
  0xa8   : > { %v6578_v43 = vpack.c.bf16 %v1647_v40, %v1647_v40  ;;  %v6586_v41 = vpack.c.bf16 %v1648_v45, %v1648_v45  ;;  %v485_v45 = vld [vmem:[#allocation2 + $0xc7] sm:$0xff] }
  0xa9   : > { %1769 = vrot.lane.b32.xlu0 %v6362_v16, %s5980_s29  ;;  %1616 = vst.msk [vmem:[#allocation3 + $0xe8] sm:$0xf] %vm633_vm2, %v6569_v37  ;;  %v5168_v55 = vpack.c.bf16 %v485_v45, %v485_v45  ;;  %v5806_v45 = vld [vmem:[#allocation3 + $0x98] ss:$12 sps:$4 sm:$0xff]  }
  0xaa   : > { %2574 = vst.msk [vmem:[#allocation3 + $0xc8] sm:$0xf] %vm633_vm2, %v6578_v43  ;;  %2575 = vst.msk [vmem:[#allocation3 + $0xd4] sm:$0xf] %vm633_vm2, %v6586_v41 }
  0xab   : > { %808 = vrot.lane.b32.xlu1 %v6337_v7, %s5980_s29  ;;  %v6562_v7 = vpack.c.bf16 %v1893_v30, %v1893_v30  ;;  %646 = vst.msk [vmem:[#allocation3 + $0x90] sm:$0xf] %vm633_vm2, %v5168_v55 }
  0xad   : > { %1063 = vrot.lane.b32.xlu0 %v6339_v8, %s5981_s30  ;;  %v5165_v8 = vpack.c.bf16 %v482_v34, %v482_v34  ;;  %v5801_v34 = vld [vmem:[#allocation3 + $0x80] ss:$12 sps:$4 sm:$0xff]  }
  0xae   : > { %5688 = vmatmul.mubr.msk.bf16.gmra.mxu1 %vm440_vm1, %v5801_v34 }
  0xaf   : > { %1771 = vrot.lane.b32.xlu1 %v6364_v17, %s5980_s29  ;;  %643 = vst.msk [vmem:[#allocation3 + $0x6c] sm:$0xf] %vm633_vm2, %v5165_v8  ;;  %5691 = vmatprep.mubr.msk.bf16.mxu1 %vm440_vm1, %v5806_v45 }
  0xb1   : > { %2026 = vrot.lane.b32.xlu0 %v5354_v3, %s5981_s30 }
  0xb3   : > { %1065 = vrot.lane.b32.xlu1 %v6341_v9, %s5981_s30  ;;  %v5486_v9 = vunpack.c.l.bf16 %v5517_v38  ;;  %v6659_v38 = vpack.c.bf16 %v1896_v35, %v1896_v35 }
  0xb5   : > { %1320 = vrot.lane.b32.xlu0 %v5352_v53, %s5982_s21  ;;  %461 = vst.msk [vmem:[#allocation2 + $0x168] sm:$0xff] %vm440_vm1, %v5486_v9  ;;  %v5518_v53 = vld [vmem:[%s6024_s25 + $0x58] sm:$0xff]  }
  0xb6   : > { %v5491_v29 = vunpack.c.h.bf16 %v5518_v53 }
  0xb7   : > { %2028 = vrot.lane.b32.xlu1 %v6562_v7, %s5981_s30 }
  0xb8   : > { %464 = vst.msk [vmem:[#allocation2 + $0x190] sm:$0xff] %vm440_vm1, %v5491_v29  ;;  %v487_v29 = vld [vmem:[#allocation2 + $0xe7] sm:$0xff] }
  0xb9   : > { %2282 = vrot.lane.b32.xlu0 %v6372_v19, %s5982_s21  ;;  %v5170_v31 = vpack.c.bf16 %v487_v29, %v487_v29 }
  0xbb   : > { %1322 = vrot.lane.b32.xlu1 %v5353_v18, %s5982_s21  ;;  %v5490_v18 = vunpack.c.l.bf16 %v5518_v53  ;;  %648 = vst.msk [vmem:[#allocation3 + $0xa8] sm:$0xf] %vm633_vm2, %v5170_v31 }
  0xbc   : > { %v1649_v20 = vld [vmem:[#allocation2 + $0x169] sm:$0xff] }
  0xbd   : > { %810 = vrot.lane.b32.xlu0 %v6351_v11, %s5980_s29  ;;  %v6599_v11 = vpack.c.bf16 %v1894_v50, %v1894_v50  ;;  %v6624_v1 = vpack.c.bf16 %v1649_v20, %v1649_v20  ;;  %463 = vst.msk [vmem:[#allocation2 + $0x188] sm:$0xff] %vm440_vm1, %v5490_v18  ;;  %v486_v50 = vld [vmem:[#allocation2 + $0xcf] sm:$0xff] }
  0xbf   : > { %2284 = vrot.lane.b32.xlu1 %v6376_v23, %s5982_s21  ;;  %2576 = vst.msk [vmem:[#allocation3 + $0xe0] sm:$0xf] %vm633_vm2, %v6624_v1 }
  0xc1   : > { %1773 = vrot.lane.b32.xlu0 %v6378_v24, %s5980_s29 }
  0xc3   : > { %812 = vrot.lane.b32.xlu1 %v6360_v15, %s5980_s29  ;;  %v5166_v15 = vpack.c.bf16 %v483_v56, %v483_v56  ;;  %v5169_v56 = vpack.c.bf16 %v486_v50, %v486_v50 }
  0xc4   : > { %v1651_v59 = vld [vmem:[#allocation2 + $0x189] sm:$0xff] }
  0xc5   : > { %1067 = vrot.lane.b32.xlu0 %v6362_v16, %s5981_s30  ;;  %v5167_v16 = vpack.c.bf16 %v484_v57, %v484_v57  ;;  %644 = vst.msk [vmem:[#allocation3 + $0x78] sm:$0xf] %vm633_vm2, %v5166_v15  ;;  %647 = vst.msk [vmem:[#allocation3 + $0x9c] sm:$0xf] %vm633_vm2, %v5169_v56  ;;  %v6684_v62 = vpack.c.bf16 %v1651_v59, %v1651_v59 }
  0xc7   : > { %1775 = vrot.lane.b32.xlu1 %v6380_v25, %s5980_s29  ;;  %645 = vst.msk [vmem:[#allocation3 + $0x84] sm:$0xf] %vm633_vm2, %v5167_v16  ;;  %v5519_v16 = vld [vmem:[%s6024_s25 + $0x60] sm:$0xff]   ;;  %2578 = vst.msk [vmem:[#allocation3 + $0xf8] sm:$0xf] %vm633_vm2, %v6684_v62 }
  0xc8   : > { %v5495_v5 = vunpack.c.h.bf16 %v5519_v16 }
  0xc9   : > { %2030 = vrot.lane.b32.xlu0 %v6599_v11, %s5981_s30 }
  0xca   : > { %466 = vst.msk [vmem:[#allocation2 + $0x1b0] sm:$0xff] %vm440_vm1, %v5495_v5 }
  0xcb   : > { %1069 = vrot.lane.b32.xlu1 %v6364_v17, %s5981_s30  ;;  %v1447_v17 = vld [vmem:[#allocation2 + $0xc8] sm:$0xff] }
  0xcc   : > { %v5294_v12 = vpack.c.bf16 %v1447_v17, %v1447_v17 }
  0xcd   : > { %1324 = vrot.lane.b32.xlu0 %v5354_v3, %s5982_s21  ;;  %v1650_v3 = vld [vmem:[#allocation2 + $0x171] sm:$0xff] }
  0xce   : > { %1607 = vst.msk [vmem:[#allocation3 + $0x7c] sm:$0xf] %vm633_vm2, %v5294_v12  ;;  %v6639_v30 = vpack.c.bf16 %v1650_v3, %v1650_v3  ;;  %v6724_v3 = vpack.c.bf16 %v1899_v61, %v1899_v61 }
  0xcf   : > { %v795_v6 = vpop.permute.xlu0 %794  ;;  %2032 = vrot.lane.b32.xlu1 %v6607_v58, %s5981_s30 }
  0xd0   : > { %891 = vst.msk [vmem:[#allocation3] sm:$0xf] %vm890_vm3, %v795_v6  ;;  %v1054_v21 = vpop.permute.xlu1 %1053  ;;  %v1652_v6 = vld [vmem:[#allocation2 + $0x191] sm:$0xff] }
  0xd1   : > { %2286 = vrot.lane.b32.xlu0 %v6610_v0, %s5982_s21  ;;  %2577 = vst.msk [vmem:[#allocation3 + $0xec] sm:$0xf] %vm633_vm2, %v6639_v30  ;;  %v6695_v46 = vpack.c.bf16 %v1652_v6, %v1652_v6 }
  0xd3   : > { %v797_v26 = vpop.permute.xlu0 %796  ;;  %1326 = vrot.lane.b32.xlu1 %v6562_v7, %s5982_s21  ;;  %2579 = vst.msk [vmem:[#allocation3 + $0x104] sm:$0xf] %vm633_vm2, %v6695_v46 }
  0xd4   : > { %892 = vst.msk [vmem:[#allocation3 + $0xc] sm:$0xf] %vm890_vm3, %v797_v26 }
  0xd5   : > { %1149 = vst.msk [vmem:[#allocation3 + $0xc] sm:$0xf] %vm1147_vm4, %v1054_v21  ;;  %814 = vrot.lane.b32.xlu0 %v6372_v19, %s5980_s29  ;;  %v1640_v19 = vld [vmem:[#allocation2 + $0xd1] sm:$0xff] }
  0xd6   : > { %v6655_v36 = vpack.c.bf16 %v1640_v19, %v1640_v19 }
  0xd7   : > { %v1052_v33 = vpop.permute.xlu0 %1051  ;;  %2288 = vrot.lane.b32.xlu1 %v6630_v28, %s5982_s21 }
  0xd8   : > { %1148 = vst.msk [vmem:[#allocation3] sm:$0xf] %vm1147_vm4, %v1052_v33 }
  0xd9   : > { %1777 = vrot.lane.b32.xlu0 %v6637_v2, %s5980_s29  ;;  %v1758_v7 = vpop.permute.xlu1 %1757 }
  0xda   : > { %1853 = vst.msk [vmem:[#allocation3 + $0x4] sm:$0xf] %vm890_vm3, %v1758_v7  ;;  %v5520_v7 = vld [vmem:[%s6024_s25 + $0x68] sm:$0xff]  }
  0xdb   : > { %v2015_v8 = vpop.permute.xlu0 %2014  ;;  %816 = vrot.lane.b32.xlu1 %v6376_v23, %s5980_s29  ;;  %v1897_v23 = vld [vmem:[#allocation2 + $0xef] sm:$0xff]  ;;  %v5498_v35 = vunpack.c.l.bf16 %v5520_v7 }
  0xdc   : > { %2110 = vst.msk [vmem:[#allocation3 + $0x4] sm:$0xf] %vm1147_vm4, %v2015_v8  ;;  %v6671_v51 = vpack.c.bf16 %v1897_v23, %v1897_v23  ;;  %v1654_v23 = vld [vmem:[#allocation2 + $0x1b1] sm:$0xff] }
  0xdd   : > { %1071 = vrot.lane.b32.xlu0 %v6378_v24, %s5981_s30  ;;  %v1760_v9 = vpop.permute.xlu1 %1759  ;;  %467 = vst.msk [vmem:[#allocation2 + $0x1c8] sm:$0xff] %vm440_vm1, %v5498_v35 }
  0xde   : > { %1854 = vst.msk [vmem:[#allocation3 + $0x10] sm:$0xf] %vm890_vm3, %v1760_v9 }
  0xdf   : > { %v1309_v40 = vpop.permute.xlu0 %1308  ;;  %1779 = vrot.lane.b32.xlu1 %v6655_v36, %s5980_s29 }
  0xe0   : > { %1405 = vst.msk [vmem:[#allocation3] sm:$0xf] %vm1404_vm5, %v1309_v40  ;;  %v5499_v40 = vunpack.c.h.bf16 %v5520_v7 }
  0xe1   : > { %2034 = vrot.lane.b32.xlu0 %v6659_v38, %s5981_s30  ;;  %v2017_v44 = vpop.permute.xlu1 %2016 }
  0xe2   : > { %2111 = vst.msk [vmem:[#allocation3 + $0x10] sm:$0xf] %vm1147_vm4, %v2017_v44 }
  0xe3   : > { %v2271_v24 = vpop.permute.xlu0 %2270  ;;  %1073 = vrot.lane.b32.xlu1 %v6380_v25, %s5981_s30  ;;  %v5494_v25 = vunpack.c.l.bf16 %v5519_v16  ;;  %468 = vst.msk [vmem:[#allocation2 + $0x1d0] sm:$0xff] %vm440_vm1, %v5499_v40 }
  0xe4   : > { %2366 = vst.msk [vmem:[#allocation3 + $0x4] sm:$0xf] %vm1404_vm5, %v2271_v24  ;;  %v6748_v24 = vpack.c.bf16 %v1654_v23, %v1654_v23 }
  0xe5   : > { %1328 = vrot.lane.b32.xlu0 %v6599_v11, %s5982_s21  ;;  %v1311_v57 = vpop.permute.xlu1 %1310  ;;  %465 = vst.msk [vmem:[#allocation2 + $0x1a8] sm:$0xff] %vm440_vm1, %v5494_v25 }
  0xe6   : > { %1406 = vst.msk [vmem:[#allocation3 + $0xc] sm:$0xf] %vm1404_vm5, %v1311_v57 }
  0xe7   : > { %v799_v15 = vpop.permute.xlu0 %798  ;;  %2036 = vrot.lane.b32.xlu1 %v6671_v51, %s5981_s30  ;;  %2581 = vst.msk [vmem:[#allocation3 + $0x11c] sm:$0xf] %vm633_vm2, %v6748_v24 }
  0xe8   : > { %893 = vst.msk [vmem:[#allocation3 + $0x18] sm:$0xf] %vm890_vm3, %v799_v15 }
  0xe9   : > { %2290 = vrot.lane.b32.xlu0 %v6442_v39, %s5982_s21  ;;  %v2273_v11 = vpop.permute.xlu1 %2272 }
  0xea   : > { %2367 = vst.msk [vmem:[#allocation3 + $0x10] sm:$0xf] %vm1404_vm5, %v2273_v11 }
  0xeb   : > { %v1762_v52 = vpop.permute.xlu0 %1761  ;;  %1330 = vrot.lane.b32.xlu1 %v6607_v58, %s5982_s21  ;;  %v1898_v58 = vld [vmem:[#allocation2 + $0x107] sm:$0xff] }
  0xec   : > { %1855 = vst.msk [vmem:[#allocation3 + $0x1c] sm:$0xf] %vm890_vm3, %v1762_v52  ;;  %v6712_v54 = vpack.c.bf16 %v1898_v58, %v1898_v58  ;;  %v1653_v8 = vld [vmem:[#allocation2 + $0x1a9] sm:$0xff] }
  0xed   : > { %818 = vrot.lane.b32.xlu0 %v6610_v0, %s5980_s29  ;;  %v801_v17 = vpop.permute.xlu1 %800  ;;  %v5784_v12 = vld [vmem:[#allocation3] ss:$12 sps:$4 sm:$0xff]  }
  0xee   : > { %894 = vst.msk [vmem:[#allocation3 + $0x24] sm:$0xf] %vm890_vm3, %v801_v17  ;;  %v490_v17 = vld [vmem:[#allocation2 + $0x10f] sm:$0xff] }
  0xef   : > { %v1056_v53 = vpop.permute.xlu0 %1055  ;;  %2292 = vrot.lane.b32.xlu1 %v6450_v47, %s5982_s21 }
  0xf0   : > { %1150 = vst.msk [vmem:[#allocation3 + $0x18] sm:$0xf] %vm1147_vm4, %v1056_v53 }
  0xf1   : > { %1781 = vrot.lane.b32.xlu0 %v6452_v48, %s5980_s29  ;;  %v1764_v0 = vpop.permute.xlu1 %1763  ;;  %v5786_v13 = vld [vmem:[#allocation3 + $0x4] ss:$12 sps:$4 sm:$0xff]  }
  0xf2   : > { %1856 = vst.msk [vmem:[#allocation3 + $0x28] sm:$0xf] %vm890_vm3, %v1764_v0  ;;  %3125 = vmatprep.mubr.bf16.mxu0 %v5786_v13  ;;  %v5173_v0 = vpack.c.bf16 %v490_v17, %v490_v17 }
  0xf3   : > { %v2019_v18 = vpop.permute.xlu0 %2018  ;;  %820 = vrot.lane.b32.xlu1 %v6630_v28, %s5980_s29  ;;  %3126 = vmatmul.mubr.bf16.vlgmr.msra.gmra.mxu0 %v5784_v12  ;;  %v2167_v12 = vld [vmem:[#allocation2 + $0x1d0] sm:$0xff] }
  0xf4   : > { %2112 = vst.msk [vmem:[#allocation3 + $0x1c] sm:$0xf] %vm1147_vm4, %v2019_v18  ;;  %v6785_v18 = vpack.c.bf16 %v2167_v12, %v2167_v12 }
  0xf5   : > { %1075 = vrot.lane.b32.xlu0 %v6637_v2, %s5981_s30  ;;  %v1058_v20 = vpop.permute.xlu1 %1057  ;;  %v488_v2 = vld [vmem:[#allocation2 + $0xef] sm:$0xff]  ;;  %651 = vst.msk [vmem:[#allocation3 + $0xcc] sm:$0xf] %vm633_vm2, %v5173_v0  ;;  %v5814_v0 = vld [vmem:[#allocation3 + $0xf8] ss:$12 sps:$4 sm:$0xff]  }
  0xf6   : > { %1151 = vst.msk [vmem:[#allocation3 + $0x24] sm:$0xf] %vm1147_vm4, %v1058_v20  ;;  %v5171_v33 = vpack.c.bf16 %v488_v2, %v488_v2  ;;  %v5521_v20 = vld [vmem:[%s6024_s25 + $0x70] sm:$0xff]  }
  0xf7   : > { %v1313_v21 = vpop.permute.xlu0 %1312  ;;  %1783 = vrot.lane.b32.xlu1 %v6454_v49, %s5980_s29  ;;  %1624 = vst.msk [vmem:[#allocation3 + $0x148] sm:$0xf] %vm633_vm2, %v6785_v18  ;;  %v5503_v29 = vunpack.c.h.bf16 %v5521_v20  ;;  %v1656_v2 = vld [vmem:[#allocation2 + $0x1d1] sm:$0xff] }
  0xf8   : > { %1407 = vst.msk [vmem:[#allocation3 + $0x18] sm:$0xf] %vm1404_vm5, %v1313_v21  ;;  %v5502_v21 = vunpack.c.l.bf16 %v5521_v20 }
  0xf9   : > { %2038 = vrot.lane.b32.xlu0 %v6712_v54, %s5981_s30  ;;  %v2021_v26 = vpop.permute.xlu1 %2020  ;;  %649 = vst.msk [vmem:[#allocation3 + $0xb4] sm:$0xf] %vm633_vm2, %v5171_v33  ;;  %v6807_v33 = vpack.c.bf16 %v1656_v2, %v1656_v2  ;;  %v2428_v2 = vld [vmem:[#allocation2 + $0x229] sm:$0xff] }
  0xfa   : > { %2113 = vst.msk [vmem:[#allocation3 + $0x28] sm:$0xf] %vm1147_vm4, %v2021_v26 }
  0xfb   : > { %v2275_v28 = vpop.permute.xlu0 %2274  ;;  %1077 = vrot.lane.b32.xlu1 %v6655_v36, %s5981_s30  ;;  %469 = vst.msk [vmem:[#allocation2 + $0x1e8] sm:$0xff] %vm440_vm1, %v5502_v21  ;;  %470 = vst.msk [vmem:[#allocation2 + $0x1f0] sm:$0xff] %vm440_vm1, %v5503_v29 }
  0xfc   : > { %2368 = vst.msk [vmem:[#allocation3 + $0x1c] sm:$0xf] %vm1404_vm5, %v2275_v28 }
  0xfd   : > { %1332 = vrot.lane.b32.xlu0 %v6659_v38, %s5982_s21  ;;  %v1315_v34 = vpop.permute.xlu1 %1314  ;;  %v6737_v38 = vpack.c.bf16 %v1653_v8, %v1653_v8  ;;  %2583 = vst.msk [vmem:[#allocation3 + $0x134] sm:$0xf] %vm633_vm2, %v6807_v33 }
  0xfe   : > { %1408 = vst.msk [vmem:[#allocation3 + $0x24] sm:$0xf] %vm1404_vm5, %v1315_v34 }
  0xff   : > { %v803_v19 = vpop.permute.xlu0 %802  ;;  %2040 = vrot.lane.b32.xlu1 %v6724_v3, %s5981_s30  ;;  %2580 = vst.msk [vmem:[#allocation3 + $0x110] sm:$0xf] %vm633_vm2, %v6737_v38 }
 0x100   : > { %895 = vst.msk [vmem:[#allocation3 + $0x30] sm:$0xf] %vm890_vm3, %v803_v19 }
 0x101   : > { %2294 = vrot.lane.b32.xlu0 %v6483_v63, %s5982_s21  ;;  %v2277_v36 = vpop.permute.xlu1 %2276 }
 0x102   : > { %2369 = vst.msk [vmem:[#allocation3 + $0x28] sm:$0xf] %vm1404_vm5, %v2277_v36 }
 0x103   : > { %v1766_v9 = vpop.permute.xlu0 %1765  ;;  %1334 = vrot.lane.b32.xlu1 %v6671_v51, %s5982_s21  ;;  %v5807_v51 = vld [vmem:[#allocation3 + $0xb0] ss:$12 sps:$4 sm:$0xff]  }
 0x104   : > { %1857 = vst.msk [vmem:[#allocation3 + $0x34] sm:$0xf] %vm890_vm3, %v1766_v9  ;;  %5692 = vmatmul.mubr.msk.bf16.gmra.mxu1 %vm440_vm1, %v5807_v51  ;;  %v2594_v56 = vld [vmem:[#allocation3 + $0x18] sm:$0xff] }
 0x105   : > { %822 = vrot.lane.b32.xlu0 %v6442_v39, %s5980_s29  ;;  %v805_v44 = vpop.permute.xlu1 %804  ;;  %v1900_v39 = vld [vmem:[#allocation2 + $0x127] sm:$0xff] }
 0x106   : > { %896 = vst.msk [vmem:[#allocation3 + $0x3c] sm:$0xf] %vm890_vm3, %v805_v44  ;;  %v6767_v59 = vpack.c.bf16 %v1900_v39, %v1900_v39  ;;  %v2168_v44 = vld [vmem:[#allocation2 + $0x1e8] sm:$0xff] }
 0x107   : > { %v1060_v50 = vpop.permute.xlu0 %1059  ;;  %2296 = vrot.lane.b32.xlu1 %v6487_v42, %s5982_s21  ;;  %v491_v39 = vld [vmem:[#allocation2 + $0x127] sm:$0xff] }
 0x108   : > { %1152 = vst.msk [vmem:[#allocation3 + $0x30] sm:$0xf] %vm1147_vm4, %v1060_v50  ;;  %v6832_v50 = vpack.c.bf16 %v2168_v44, %v2168_v44 }
 0x109   : > { %1785 = vrot.lane.b32.xlu0 %v6489_v4, %s5980_s29  ;;  %v1768_v55 = vpop.permute.xlu1 %1767  ;;  %v2596_v57 = vld [vmem:[#allocation3 + $0x24] sm:$0xff] }
 0x10a   : > { %v5790_v15 = vld [vmem:[#allocation3 + $0x1c] ss:$12 sps:$4 sm:$0xff]   ;;  %1858 = vst.msk [vmem:[#allocation3 + $0x40] sm:$0xf] %vm890_vm3, %v1768_v55  ;;  %v5018_v25 = vcombine.low %v2594_v56, %v2596_v57  ;;  %v5811_v55 = vld [vmem:[#allocation3 + $0xe0] ss:$12 sps:$4 sm:$0xff]  }
 0x10b   : > { %v2023_v16 = vpop.permute.xlu0 %2022  ;;  %824 = vrot.lane.b32.xlu1 %v6450_v47, %s5980_s29  ;;  %3133 = vmatprep.mubr.bf16.mxu0 %v5790_v15  ;;  %v1901_v47 = vld [vmem:[#allocation2 + $0x12f] sm:$0xff]  ;;  %v5174_v15 = vpack.c.bf16 %v491_v39, %v491_v39  ;;  %1625 = vst.msk [vmem:[#allocation3 + $0x154] sm:$0xf] %vm633_vm2, %v6832_v50 }
 0x10c   : > { %2114 = vst.msk [vmem:[#allocation3 + $0x34] sm:$0xf] %vm1147_vm4, %v2023_v16  ;;  %3134 = vmatmul.mubr.bf16.gmra.mxu0 %v5018_v25  ;;  %v6779_v53 = vpack.c.bf16 %v1901_v47, %v1901_v47  ;;  %v492_v56 = vld [vmem:[#allocation2 + $0x12f] sm:$0xff] }
 0x10d   : > { %1079 = vrot.lane.b32.xlu0 %v6452_v48, %s5981_s30  ;;  %v1062_v11 = vpop.permute.xlu1 %1061  ;;  %v489_v48 = vld [vmem:[#allocation2 + $0x107] sm:$0xff]  ;;  %v5175_v16 = vpack.c.bf16 %v492_v56, %v492_v56  ;;  %v2169_v25 = vld [vmem:[#allocation2 + $0x1f0] sm:$0xff]  ;;  %652 = vst.msk [vmem:[#allocation3 + $0xd8] sm:$0xf] %vm633_vm2, %v5174_v15 }
 0x10e   : > { %1153 = vst.msk [vmem:[#allocation3 + $0x3c] sm:$0xf] %vm1147_vm4, %v1062_v11  ;;  %v5172_v58 = vpack.c.bf16 %v489_v48, %v489_v48  ;;  %v1658_v48 = vld [vmem:[#allocation2 + $0x1f1] sm:$0xff]  ;;  %v493_v56 = vld [vmem:[#allocation2 + $0x147] sm:$0xff] }
 0x10f   : > { %v1317_v52 = vpop.permute.xlu0 %1316  ;;  %1787 = vrot.lane.b32.xlu1 %v6495_v10, %s5980_s29  ;;  %653 = vst.msk [vmem:[#allocation3 + $0xe4] sm:$0xf] %vm633_vm2, %v5175_v16  ;;  %v6863_v12 = vpack.c.bf16 %v1658_v48, %v1658_v48  ;;  %v494_v15 = vld [vmem:[#allocation2 + $0x14f] sm:$0xff] }
 0x110   : > { %1409 = vst.msk [vmem:[#allocation3 + $0x30] sm:$0xf] %vm1404_vm5, %v1317_v52  ;;  %v5522_v52 = vld [vmem:[%s6024_s25 + $0x78] sm:$0xff]  }
 0x111   : > { %2042 = vrot.lane.b32.xlu0 %v6767_v59, %s5981_s30  ;;  %v2025_v5 = vpop.permute.xlu1 %2024  ;;  %650 = vst.msk [vmem:[#allocation3 + $0xc0] sm:$0xf] %vm633_vm2, %v5172_v58  ;;  %2585 = vst.msk [vmem:[#allocation3 + $0x14c] sm:$0xf] %vm633_vm2, %v6863_v12 }
 0x112   : > { %2115 = vst.msk [vmem:[#allocation3 + $0x40] sm:$0xf] %vm1147_vm4, %v2025_v5  ;;  %v5506_v5 = vunpack.c.l.bf16 %v5522_v52 }
 0x113   : > { %v2279_v6 = vpop.permute.xlu0 %2278  ;;  %1081 = vrot.lane.b32.xlu1 %v6454_v49, %s5981_s30 }
 0x114   : > { %2370 = vst.msk [vmem:[#allocation3 + $0x34] sm:$0xf] %vm1404_vm5, %v2279_v6  ;;  %v5507_v6 = vunpack.c.h.bf16 %v5522_v52  ;;  %v5820_v52 = vld [vmem:[%s8244_s3 + $0x28] sm:$0xff]  }
 0x115   : > { %1336 = vrot.lane.b32.xlu0 %v6712_v54, %s5982_s21  ;;  %v1319_v13 = vpop.permute.xlu1 %1318  ;;  %v1655_v54 = vld [vmem:[#allocation2 + $0x1c9] sm:$0xff]  ;;  %471 = vst.msk [vmem:[#allocation2 + $0x208] sm:$0xff] %vm440_vm1, %v5506_v5  ;;  %5711 = vmatprep.subr.bf16.mxu1 %v5820_v52 }
 0x116   : > { %1410 = vst.msk [vmem:[#allocation3 + $0x3c] sm:$0xf] %vm1404_vm5, %v1319_v13  ;;  %v6796_v26 = vpack.c.bf16 %v1655_v54, %v1655_v54  ;;  %5712 = vmatpush3.bf16.msra.mxu1 %v5820_v52 }
 0x117   : > { %v807_v49 = vpop.permute.xlu0 %806  ;;  %2044 = vrot.lane.b32.xlu1 %v6779_v53, %s5981_s30  ;;  %472 = vst.msk [vmem:[#allocation2 + $0x210] sm:$0xff] %vm440_vm1, %v5507_v6 }
 0x118   : > { %897 = vst.msk [vmem:[#allocation3 + $0x48] sm:$0xf] %vm890_vm3, %v807_v49  ;;  %v5815_v49 = vld [vmem:[#allocation3 + $0x110] ss:$12 sps:$4 sm:$0xff]  }
 0x119   : > { %2298 = vrot.lane.b32.xlu0 %v6515_v14, %s5982_s21  ;;  %v2281_v61 = vpop.permute.xlu1 %2280  ;;  %2582 = vst.msk [vmem:[#allocation3 + $0x128] sm:$0xf] %vm633_vm2, %v6796_v26 }
 0x11a   : > { %2371 = vst.msk [vmem:[#allocation3 + $0x40] sm:$0xf] %vm1404_vm5, %v2281_v61 }
 0x11b   : > { %v1770_v28 = vpop.permute.xlu0 %1769  ;;  %1338 = vrot.lane.b32.xlu1 %v6724_v3, %s5982_s21  ;;  %v2598_v19 = vld [vmem:[#allocation3 + $0x30] sm:$0xff] }
 0x11c   : > { %1859 = vst.msk [vmem:[#allocation3 + $0x4c] sm:$0xf] %vm890_vm3, %v1770_v28  ;;  %v1904_v28 = vld [vmem:[#allocation2 + $0x167] sm:$0xff] }
 0x11d   : > { %826 = vrot.lane.b32.xlu0 %v6483_v63, %s5980_s29  ;;  %v809_v31 = vpop.permute.xlu1 %808  ;;  %v1902_v63 = vld [vmem:[#allocation2 + $0x147] sm:$0xff] }
 0x11e   : > { %898 = vst.msk [vmem:[#allocation3 + $0x54] sm:$0xf] %vm890_vm3, %v809_v31  ;;  %v6824_v9 = vpack.c.bf16 %v1902_v63, %v1902_v63  ;;  %v2427_v54 = vld [vmem:[#allocation2 + $0x211] sm:$0xff] }
 0x11f   : > { %v1064_v34 = vpop.permute.xlu0 %1063  ;;  %2300 = vrot.lane.b32.xlu1 %v6523_v60, %s5982_s21 }
 0x120   : > { %1154 = vst.msk [vmem:[#allocation3 + $0x48] sm:$0xf] %vm1147_vm4, %v1064_v34 }
 0x121   : > { %1789 = vrot.lane.b32.xlu0 %v6531_v22, %s5980_s29  ;;  %v1772_v3 = vpop.permute.xlu1 %1771  ;;  %v2600_v7 = vld [vmem:[#allocation3 + $0x3c] sm:$0xff] }
 0x122   : > { %v5792_v35 = vld [vmem:[#allocation3 + $0x34] ss:$12 sps:$4 sm:$0xff]   ;;  %1860 = vst.msk [vmem:[#allocation3 + $0x58] sm:$0xf] %vm890_vm3, %v1772_v3  ;;  %v5021_v36 = vcombine.low %v2598_v19, %v2600_v7  ;;  %v5442_v19 = vpack.c.bf16 %v2428_v2, %v2428_v2 }
 0x123   : > { %v2027_v8 = vpop.permute.xlu0 %2026  ;;  %828 = vrot.lane.b32.xlu1 %v6487_v42, %s5980_s29  ;;  %3141 = vmatprep.mubr.bf16.mxu0 %v5792_v35  ;;  %v1903_v42 = vld [vmem:[#allocation2 + $0x14f] sm:$0xff] }
 0x124   : > { %2116 = vst.msk [vmem:[#allocation3 + $0x4c] sm:$0xf] %vm1147_vm4, %v2027_v8  ;;  %3142 = vmatmul.mubr.bf16.gmra.mxu0 %v5021_v36  ;;  %v6838_v57 = vpack.c.bf16 %v1903_v42, %v1903_v42  ;;  %v5816_v3 = vld [vmem:[#allocation3 + $0x128] ss:$12 sps:$4 sm:$0xff]  }
 0x125   : > { %1083 = vrot.lane.b32.xlu0 %v6489_v4, %s5981_s30  ;;  %v1066_v40 = vpop.permute.xlu1 %1065  ;;  %v5810_v4 = vld [vmem:[#allocation3 + $0xc8] ss:$12 sps:$4 sm:$0xff]   ;;  %2588 = vst.msk [vmem:[#allocation3 + $0x170] sm:$0xf] %vm633_vm2, %v5442_v19 }
 0x126   : > { %1155 = vst.msk [vmem:[#allocation3 + $0x54] sm:$0xf] %vm1147_vm4, %v1066_v40  ;;  %5695 = vmatprep.mubr.msk.bf16.mxu1 %vm440_vm1, %v5810_v4  ;;  %v2429_v36 = vld [vmem:[#allocation2 + $0x231] sm:$0xff]  ;;  %v6898_v40 = vpack.c.bf16 %v1904_v28, %v1904_v28 }
 0x127   : > { %v1321_v23 = vpop.permute.xlu0 %1320  ;;  %1791 = vrot.lane.b32.xlu1 %v6540_v27, %s5980_s29  ;;  %5696 = vmatmul.mubr.msk.bf16.gmra.mxu1 %vm440_vm1, %v5811_v55 }
 0x128   : > { %1411 = vst.msk [vmem:[#allocation3 + $0x48] sm:$0xf] %vm1404_vm5, %v1321_v23  ;;  %5699 = vmatprep.mubr.msk.bf16.mxu1 %vm440_vm1, %v5814_v0  ;;  %v5443_v23 = vpack.c.bf16 %v2429_v36, %v2429_v36  ;;  %v1458_v0 = vld [vmem:[#allocation2 + $0x170] sm:$0xff] }
 0x129   : > { %2046 = vrot.lane.b32.xlu0 %v6824_v9, %s5981_s30  ;;  %v2029_v45 = vpop.permute.xlu1 %2028 }
 0x12a   : > { %2117 = vst.msk [vmem:[#allocation3 + $0x58] sm:$0xf] %vm1147_vm4, %v2029_v45  ;;  %v2170_v45 = vld [vmem:[#allocation2 + $0x208] sm:$0xff] }
 0x12b   : > { %v2283_v51 = vpop.permute.xlu0 %2282  ;;  %1085 = vrot.lane.b32.xlu1 %v6495_v10, %s5981_s30  ;;  %v6848_v10 = vpack.c.bf16 %v2169_v25, %v2169_v25  ;;  %2589 = vst.msk [vmem:[#allocation3 + $0x17c] sm:$0xf] %vm633_vm2, %v5443_v23  ;;  %v5176_v25 = vpack.c.bf16 %v493_v56, %v493_v56 }
 0x12c   : > { %2372 = vst.msk [vmem:[#allocation3 + $0x4c] sm:$0xf] %vm1404_vm5, %v2283_v51  ;;  %v6909_v51 = vpack.c.bf16 %v2170_v45, %v2170_v45  ;;  %v496_v45 = vld [vmem:[#allocation2 + $0x16f] sm:$0xff] }
 0x12d   : > { %1340 = vrot.lane.b32.xlu0 %v6767_v59, %s5982_s21  ;;  %v1323_v11 = vpop.permute.xlu1 %1322  ;;  %1626 = vst.msk [vmem:[#allocation3 + $0x160] sm:$0xf] %vm633_vm2, %v6848_v10  ;;  %v1657_v59 = vld [vmem:[#allocation2 + $0x1e9] sm:$0xff]  ;;  %654 = vst.msk [vmem:[#allocation3 + $0xf0] sm:$0xf] %vm633_vm2, %v5176_v25 }
 0x12e   : > { %1412 = vst.msk [vmem:[#allocation3 + $0x54] sm:$0xf] %vm1404_vm5, %v1323_v11  ;;  %v6861_v58 = vpack.c.bf16 %v1657_v59, %v1657_v59  ;;  %v5177_v11 = vpack.c.bf16 %v494_v15, %v494_v15 }
 0x12f   : > { %v811_v47 = vpop.permute.xlu0 %810  ;;  %2048 = vrot.lane.b32.xlu1 %v6838_v57, %s5981_s30  ;;  %5700 = vmatmul.mubr.msk.bf16.gmra.mxu1 %vm440_vm1, %v5815_v49  ;;  %1627 = vst.msk [vmem:[#allocation3 + $0x16c] sm:$0xf] %vm633_vm2, %v6909_v51  ;;  %v5821_v49 = vld [vmem:[%s8244_s3 + $0x20] sm:$0xff]  }
 0x130   : > { %899 = vst.msk [vmem:[#allocation3 + $0x60] sm:$0xf] %vm890_vm3, %v811_v47  ;;  %5703 = vmatprep.mubr.msk.bf16.mxu1 %vm440_vm1, %v5816_v3  ;;  %5713 = vmatprep.subr.bf16.mxu1 %v5821_v49 }
 0x131   : > { %2302 = vrot.lane.b32.xlu0 %v6558_v32, %s5982_s21  ;;  %v2285_v17 = vpop.permute.xlu1 %2284  ;;  %2584 = vst.msk [vmem:[#allocation3 + $0x140] sm:$0xf] %vm633_vm2, %v6861_v58  ;;  %655 = vst.msk [vmem:[#allocation3 + $0xfc] sm:$0xf] %vm633_vm2, %v5177_v11  ;;  %5714 = vmatpush3.bf16.msra.mxu1 %v5821_v49  ;;  %v1460_v11 = vld [vmem:[#allocation2 + $0x190] sm:$0xff] }
 0x132   : > { %2373 = vst.msk [vmem:[#allocation3 + $0x58] sm:$0xf] %vm1404_vm5, %v2285_v17  ;;  %v5819_v6 = vld [vmem:[#allocation3 + $0x170] ss:$12 sps:$4 sm:$0xff]   ;;  %v1457_v17 = vld [vmem:[#allocation2 + $0x168] sm:$0xff] }
 0x133   : > { %v1774_v13 = vpop.permute.xlu0 %1773  ;;  %1342 = vrot.lane.b32.xlu1 %v6779_v53, %s5982_s21  ;;  %v2426_v53 = vld [vmem:[#allocation2 + $0x209] sm:$0xff] }
 0x134   : > { %1861 = vst.msk [vmem:[#allocation3 + $0x64] sm:$0xf] %vm890_vm3, %v1774_v13  ;;  %v2602_v61 = vld [vmem:[#allocation3 + $0x48] sm:$0xff]  ;;  %v6883_v29 = vpack.c.bf16 %v2426_v53, %v2426_v53  ;;  %v5305_v13 = vpack.c.bf16 %v1458_v0, %v1458_v0 }
 0x135   : > { %830 = vrot.lane.b32.xlu0 %v6515_v14, %s5980_s29  ;;  %v813_v20 = vpop.permute.xlu1 %812  ;;  %v6885_v14 = vpack.c.bf16 %v2427_v54, %v2427_v54 }
 0x136   : > { %900 = vst.msk [vmem:[#allocation3 + $0x6c] sm:$0xf] %vm890_vm3, %v813_v20  ;;  %v2161_v20 = vld [vmem:[#allocation2 + $0x170] sm:$0xff] }
 0x137   : > { %v1068_v21 = vpop.permute.xlu0 %1067  ;;  %2304 = vrot.lane.b32.xlu1 %v6569_v37, %s5982_s21  ;;  %2586 = vst.msk [vmem:[#allocation3 + $0x158] sm:$0xf] %vm633_vm2, %v6883_v29  ;;  %2587 = vst.msk [vmem:[#allocation3 + $0x164] sm:$0xf] %vm633_vm2, %v6885_v14  ;;  %v6949_v54 = vpack.c.bf16 %v2161_v20, %v2161_v20 }
 0x138   : > { %1156 = vst.msk [vmem:[#allocation3 + $0x60] sm:$0xf] %vm1147_vm4, %v1068_v21  ;;  %v5817_v8 = vld [vmem:[#allocation3 + $0x140] ss:$12 sps:$4 sm:$0xff]  }
 0x139   : > { %1793 = vrot.lane.b32.xlu0 %v6578_v43, %s5980_s29  ;;  %v1776_v31 = vpop.permute.xlu1 %1775  ;;  %v2604_v34 = vld [vmem:[#allocation3 + $0x54] sm:$0xff]  ;;  %5704 = vmatmul.mubr.msk.bf16.gmra.mxu1 %vm440_vm1, %v5817_v8  ;;  %1618 = vst.msk [vmem:[#allocation3 + $0x100] sm:$0xf] %vm633_vm2, %v5305_v13 }
 0x13a   : > { %v5796_v63 = vld [vmem:[#allocation3 + $0x4c] ss:$12 sps:$4 sm:$0xff]   ;;  %1862 = vst.msk [vmem:[#allocation3 + $0x70] sm:$0xf] %vm890_vm3, %v1776_v31  ;;  %v5024_v35 = vcombine.low %v2602_v61, %v2604_v34 }
 0x13b   : > { %v2031_v7 = vpop.permute.xlu0 %2030  ;;  %832 = vrot.lane.b32.xlu1 %v6523_v60, %s5980_s29  ;;  %3149 = vmatprep.mubr.bf16.mxu0 %v5796_v63  ;;  %v1905_v60 = vld [vmem:[#allocation2 + $0x16f] sm:$0xff]  ;;  %v5824_v61 = vld [vmem:[%s8244_s3 + $0x18] sm:$0xff]   ;;  %v1906_v31 = vld [vmem:[#allocation2 + $0x187] sm:$0xff] }
 0x13c   : > { %2118 = vst.msk [vmem:[#allocation3 + $0x64] sm:$0xf] %vm1147_vm4, %v2031_v7  ;;  %3150 = vmatmul.mubr.bf16.gmra.mxu0 %v5024_v35  ;;  %v6915_v16 = vpack.c.bf16 %v1905_v60, %v1905_v60  ;;  %5715 = vmatprep.subr.bf16.mxu1 %v5824_v61  ;;  %v5826_v35 = vld [vmem:[%s8244_s3 + $0x8] sm:$0xff]   ;;  %v6974_v8 = vpack.c.bf16 %v1906_v31, %v1906_v31 }
 0x13d   : > { %1087 = vrot.lane.b32.xlu0 %v6531_v22, %s5981_s30  ;;  %v1070_v42 = vpop.permute.xlu1 %1069  ;;  %v2160_v22 = vld [vmem:[#allocation2 + $0x168] sm:$0xff]  ;;  %5716 = vmatpush3.bf16.msra.mxu1 %v5824_v61 }
 0x13e   : > { %1157 = vst.msk [vmem:[#allocation3 + $0x6c] sm:$0xf] %vm1147_vm4, %v1070_v42  ;;  %v5818_v39 = vld [vmem:[#allocation3 + $0x158] ss:$12 sps:$4 sm:$0xff]   ;;  %v6925_v47 = vpack.c.bf16 %v2160_v22, %v2160_v22 }
 0x13f   : > { %v1325_v44 = vpop.permute.xlu0 %1324  ;;  %1795 = vrot.lane.b32.xlu1 %v6586_v41, %s5980_s29  ;;  %5707 = vmatprep.mubr.msk.bf16.mxu1 %vm440_vm1, %v5818_v39  ;;  %v495_v22 = vld [vmem:[#allocation2 + $0x167] sm:$0xff] }
 0x140   : > { %1413 = vst.msk [vmem:[#allocation3 + $0x60] sm:$0xf] %vm1404_vm5, %v1325_v44  ;;  %v2162_v44 = vld [vmem:[#allocation2 + $0x188] sm:$0xff]  ;;  %v5178_v39 = vpack.c.bf16 %v495_v22, %v495_v22 }
 0x141   : > { %2050 = vrot.lane.b32.xlu0 %v6898_v40, %s5981_s30  ;;  %v2033_v4 = vpop.permute.xlu1 %2032  ;;  %5708 = vmatmul.mubr.msk.bf16.gmra.mxu1 %vm440_vm1, %v5819_v6  ;;  %v6993_v56 = vpack.c.bf16 %v2162_v44, %v2162_v44  ;;  %v497_v31 = vld [vmem:[#allocation2 + $0x187] sm:$0xff] }
 0x142   : > { %2119 = vst.msk [vmem:[#allocation3 + $0x70] sm:$0xf] %vm1147_vm4, %v2033_v4 }
 0x143   : > { %v2287_v55 = vpop.permute.xlu0 %2286  ;;  %1089 = vrot.lane.b32.xlu1 %v6540_v27, %s5981_s30  ;;  %v2171_v27 = vld [vmem:[#allocation2 + $0x210] sm:$0xff]  ;;  %656 = vst.msk [vmem:[#allocation3 + $0x108] sm:$0xf] %vm633_vm2, %v5178_v39 }
 0x144   : > { %2374 = vst.msk [vmem:[#allocation3 + $0x64] sm:$0xf] %vm1404_vm5, %v2287_v55  ;;  %v6929_v59 = vpack.c.bf16 %v2171_v27, %v2171_v27  ;;  %v5179_v55 = vpack.c.bf16 %v496_v45, %v496_v45  ;;  %v5307_v27 = vpack.c.bf16 %v1460_v11, %v1460_v11  ;;  %v1910_v45 = vld [vmem:[#allocation2 + $0x1c7] sm:$0xff] }
 0x145   : > { %1344 = vrot.lane.b32.xlu0 %v6824_v9, %s5982_s21  ;;  %v1327_v5 = vpop.permute.xlu1 %1326  ;;  %v5304_v9 = vpack.c.bf16 %v1457_v17, %v1457_v17 }
 0x146   : > { %1414 = vst.msk [vmem:[#allocation3 + $0x6c] sm:$0xf] %vm1404_vm5, %v1327_v5 }
 0x147   : > { %v815_v48 = vpop.permute.xlu0 %814  ;;  %2052 = vrot.lane.b32.xlu1 %v6915_v16, %s5981_s30  ;;  %1628 = vst.msk [vmem:[#allocation3 + $0x178] sm:$0xf] %vm633_vm2, %v6929_v59  ;;  %1617 = vst.msk [vmem:[#allocation3 + $0xf4] sm:$0xf] %vm633_vm2, %v5304_v9 }
 0x148   : > { %901 = vst.msk [vmem:[#allocation3 + $0x78] sm:$0xf] %vm890_vm3, %v815_v48 }
 0x149   : > { %2306 = vrot.lane.b32.xlu0 %v6925_v47, %s5982_s21  ;;  %v2289_v21 = vpop.permute.xlu1 %2288  ;;  %657 = vst.msk [vmem:[#allocation3 + $0x114] sm:$0xf] %vm633_vm2, %v5179_v55  ;;  %1620 = vst.msk [vmem:[#allocation3 + $0x118] sm:$0xf] %vm633_vm2, %v5307_v27  ;;  %v1911_v27 = vld [vmem:[#allocation2 + $0x1cf] sm:$0xff] }
 0x14a   : > { %2375 = vst.msk [vmem:[#allocation3 + $0x70] sm:$0xf] %vm1404_vm5, %v2289_v21 }
 0x14b   : > { %v1778_v53 = vpop.permute.xlu0 %1777  ;;  %1346 = vrot.lane.b32.xlu1 %v6838_v57, %s5982_s21  ;;  %v5825_v57 = vld [vmem:[%s8244_s3 + $0x10] sm:$0xff]   ;;  %v2606_v34 = vld [vmem:[#allocation3 + $0x60] sm:$0xff] }
 0x14c   : > { %1863 = vst.msk [vmem:[#allocation3 + $0x7c] sm:$0xf] %vm890_vm3, %v1778_v53  ;;  %5717 = vmatprep.subr.bf16.mxu1 %v5825_v57 }
 0x14d   : > { %834 = vrot.lane.b32.xlu0 %v6558_v32, %s5980_s29  ;;  %v817_v28 = vpop.permute.xlu1 %816  ;;  %5718 = vmatpush3.bf16.msra.mxu1 %v5825_v57  ;;  %v2164_v57 = vld [vmem:[#allocation2 + $0x1a8] sm:$0xff] }
 0x14e   : > { %902 = vst.msk [vmem:[#allocation3 + $0x84] sm:$0xf] %vm890_vm3, %v817_v28  ;;  %5719 = vmatprep.subr.bf16.mxu1 %v5826_v35 }
 0x14f   : > { %v1072_v2 = vpop.permute.xlu0 %1071  ;;  %2308 = vrot.lane.b32.xlu1 %v6949_v54, %s5982_s21 }
 0x150   : > { %1158 = vst.msk [vmem:[#allocation3 + $0x78] sm:$0xf] %vm1147_vm4, %v1072_v2 }
 0x151   : > { %1797 = vrot.lane.b32.xlu0 %v6624_v1, %s5980_s29  ;;  %v1780_v32 = vpop.permute.xlu1 %1779  ;;  %v2608_v63 = vld [vmem:[#allocation3 + $0x6c] sm:$0xff]  ;;  %5720 = vmatpush3.bf16.msra.mxu1 %v5826_v35 }
 0x152   : > { %v5798_v3 = vld [vmem:[#allocation3 + $0x64] ss:$12 sps:$4 sm:$0xff]   ;;  %1864 = vst.msk [vmem:[#allocation3 + $0x88] sm:$0xf] %vm890_vm3, %v1780_v32  ;;  %v5027_v7 = vcombine.low %v2606_v34, %v2608_v63  ;;  %v5180_v63 = vpack.c.bf16 %v497_v31, %v497_v31 }
 0x153   : > { %v2035_v19 = vpop.permute.xlu0 %2034  ;;  %836 = vrot.lane.b32.xlu1 %v6569_v37, %s5980_s29  ;;  %3157 = vmatprep.mubr.bf16.mxu0 %v5798_v3  ;;  %v5827_v37 = vld [vmem:[%s8244_s3] sm:$0xff]   ;;  %v498_v32 = vld [vmem:[#allocation2 + $0x18f] sm:$0xff] }
 0x154   : > { %2120 = vst.msk [vmem:[#allocation3 + $0x7c] sm:$0xf] %vm1147_vm4, %v2035_v19  ;;  %3158 = vmatmul.mubr.bf16.gmra.mxu0 %v5027_v7  ;;  %5721 = vmatprep.subr.bf16.mxu1 %v5827_v37  ;;  %v5181_v3 = vpack.c.bf16 %v498_v32, %v498_v32  ;;  %v7041_v19 = vpack.c.bf16 %v2164_v57, %v2164_v57 }
 0x155   : > { %1091 = vrot.lane.b32.xlu0 %v6578_v43, %s5981_s30  ;;  %v1074_v36 = vpop.permute.xlu1 %1073  ;;  %v1907_v43 = vld [vmem:[#allocation2 + $0x18f] sm:$0xff]  ;;  %5722 = vmatpush3.bf16.msra.mxu1 %v5827_v37  ;;  %658 = vst.msk [vmem:[#allocation3 + $0x120] sm:$0xf] %vm633_vm2, %v5180_v63 }
 0x156   : > { %1159 = vst.msk [vmem:[#allocation3 + $0x84] sm:$0xf] %vm1147_vm4, %v1074_v36  ;;  %v6989_v4 = vpack.c.bf16 %v1907_v43, %v1907_v43  ;;  %v1462_v36 = vld [vmem:[#allocation2 + $0x1b0] sm:$0xff] }
 0x157   : > { %v1329_v23 = vpop.permute.xlu0 %1328  ;;  %1799 = vrot.lane.b32.xlu1 %v6639_v30, %s5980_s29  ;;  %659 = vst.msk [vmem:[#allocation3 + $0x12c] sm:$0xf] %vm633_vm2, %v5181_v3  ;;  %v5309_v37 = vpack.c.bf16 %v1462_v36, %v1462_v36 }
 0x158   : > { %1415 = vst.msk [vmem:[#allocation3 + $0x78] sm:$0xf] %vm1404_vm5, %v1329_v23 }
 0x159   : > { %2054 = vrot.lane.b32.xlu0 %v6974_v8, %s5981_s30  ;;  %v2037_v42 = vpop.permute.xlu1 %2036  ;;  %1622 = vst.msk [vmem:[#allocation3 + $0x130] sm:$0xf] %vm633_vm2, %v5309_v37 }
 0x15a   : > { %2121 = vst.msk [vmem:[#allocation3 + $0x88] sm:$0xf] %vm1147_vm4, %v2037_v42 }
 0x15b   : > { %v2291_v60 = vpop.permute.xlu0 %2290  ;;  %1093 = vrot.lane.b32.xlu1 %v6586_v41, %s5981_s30  ;;  %v1459_v41 = vld [vmem:[#allocation2 + $0x188] sm:$0xff] }
 0x15c   : > { %2376 = vst.msk [vmem:[#allocation3 + $0x7c] sm:$0xf] %vm1404_vm5, %v2291_v60  ;;  %v5306_v52 = vpack.c.bf16 %v1459_v41, %v1459_v41  ;;  %v7073_v41 = vpack.c.bf16 %v1910_v45, %v1910_v45  ;;  %v1914_v45 = vld [vmem:[#allocation2 + $0x207] sm:$0xff] }
 0x15d   : > { %1348 = vrot.lane.b32.xlu0 %v6898_v40, %s5982_s21  ;;  %v1331_v15 = vpop.permute.xlu1 %1330  ;;  %v2163_v40 = vld [vmem:[#allocation2 + $0x190] sm:$0xff] }
 0x15e   : > { %1416 = vst.msk [vmem:[#allocation3 + $0x84] sm:$0xf] %vm1404_vm5, %v1331_v15  ;;  %v7009_v48 = vpack.c.bf16 %v2163_v40, %v2163_v40 }
 0x15f   : > { %v819_v25 = vpop.permute.xlu0 %818  ;;  %2056 = vrot.lane.b32.xlu1 %v6989_v4, %s5981_s30  ;;  %1619 = vst.msk [vmem:[#allocation3 + $0x10c] sm:$0xf] %vm633_vm2, %v5306_v52 }
 0x160   : > { %903 = vst.msk [vmem:[#allocation3 + $0x90] sm:$0xf] %vm890_vm3, %v819_v25 }
 0x161   : > { %2310 = vrot.lane.b32.xlu0 %v6993_v56, %s5982_s21  ;;  %v2293_v5 = vpop.permute.xlu1 %2292 }
 0x162   : > { %2377 = vst.msk [vmem:[#allocation3 + $0x88] sm:$0xf] %vm1404_vm5, %v2293_v5  ;;  %v2166_v5 = vld [vmem:[#allocation2 + $0x1c8] sm:$0xff] }
 0x163   : > { %v1782_v6 = vpop.permute.xlu0 %1781  ;;  %1350 = vrot.lane.b32.xlu1 %v6915_v16, %s5982_s21  ;;  %v1908_v16 = vld [vmem:[#allocation2 + $0x1a7] sm:$0xff]  ;;  %v2610_v13 = vld [vmem:[#allocation3 + $0x78] sm:$0xff] }
 0x164   : > { %1865 = vst.msk [vmem:[#allocation3 + $0x94] sm:$0xf] %vm890_vm3, %v1782_v6  ;;  %v7025_v53 = vpack.c.bf16 %v1908_v16, %v1908_v16  ;;  %v499_v6 = vld [vmem:[#allocation2 + $0x1a7] sm:$0xff] }
 0x165   : > { %838 = vrot.lane.b32.xlu0 %v6925_v47, %s5980_s29  ;;  %v821_v17 = vpop.permute.xlu1 %820 }
 0x166   : > { %904 = vst.msk [vmem:[#allocation3 + $0x9c] sm:$0xf] %vm890_vm3, %v821_v17  ;;  %v7085_v17 = vpack.c.bf16 %v1911_v27, %v1911_v27 }
 0x167   : > { %v1076_v0 = vpop.permute.xlu0 %1075  ;;  %2312 = vrot.lane.b32.xlu1 %v7009_v48, %s5982_s21 }
 0x168   : > { %1160 = vst.msk [vmem:[#allocation3 + $0x90] sm:$0xf] %vm1147_vm4, %v1076_v0  ;;  %v5182_v0 = vpack.c.bf16 %v499_v6, %v499_v6 }
 0x169   : > { %1801 = vrot.lane.b32.xlu0 %v6684_v62, %s5980_s29  ;;  %v1784_v9 = vpop.permute.xlu1 %1783  ;;  %v2612_v49 = vld [vmem:[#allocation3 + $0x84] sm:$0xff] }
 0x16a   : > { %v5802_v20 = vld [vmem:[#allocation3 + $0x7c] ss:$12 sps:$4 sm:$0xff]   ;;  %1866 = vst.msk [vmem:[#allocation3 + $0xa0] sm:$0xf] %vm890_vm3, %v1784_v9  ;;  %v5030_v21 = vcombine.low %v2610_v13, %v2612_v49  ;;  %v7089_v9 = vpack.c.bf16 %v2166_v5, %v2166_v5 }
 0x16b   : > { %v2039_v47 = vpop.permute.xlu0 %2038  ;;  %840 = vrot.lane.b32.xlu1 %v6949_v54, %s5980_s29  ;;  %3165 = vmatprep.mubr.bf16.mxu0 %v5802_v20  ;;  %v1909_v54 = vld [vmem:[#allocation2 + $0x1af] sm:$0xff]  ;;  %660 = vst.msk [vmem:[#allocation3 + $0x138] sm:$0xf] %vm633_vm2, %v5182_v0 }
 0x16c   : > { %2122 = vst.msk [vmem:[#allocation3 + $0x94] sm:$0xf] %vm1147_vm4, %v2039_v47  ;;  %3166 = vmatmul.mubr.bf16.gmra.mxu0 %v5030_v21  ;;  %v7037_v34 = vpack.c.bf16 %v1909_v54, %v1909_v54 }
 0x16d   : > { %1095 = vrot.lane.b32.xlu0 %v6624_v1, %s5981_s30  ;;  %v1078_v61 = vpop.permute.xlu1 %1077 }
 0x16e   : > { %1161 = vst.msk [vmem:[#allocation3 + $0x9c] sm:$0xf] %vm1147_vm4, %v1078_v61 }
 0x16f   : > { %v1333_v28 = vpop.permute.xlu0 %1332  ;;  %1803 = vrot.lane.b32.xlu1 %v6695_v46, %s5980_s29 }
 0x170   : > { %1417 = vst.msk [vmem:[#allocation3 + $0x90] sm:$0xf] %vm1404_vm5, %v1333_v28  ;;  %v1912_v28 = vld [vmem:[#allocation2 + $0x1e7] sm:$0xff] }
 0x171   : > { %2058 = vrot.lane.b32.xlu0 %v7025_v53, %s5981_s30  ;;  %v2041_v2 = vpop.permute.xlu1 %2040 }
 0x172   : > { %2123 = vst.msk [vmem:[#allocation3 + $0xa0] sm:$0xf] %vm1147_vm4, %v2041_v2 }
 0x173   : > { %v2295_v1 = vpop.permute.xlu0 %2294  ;;  %1097 = vrot.lane.b32.xlu1 %v6639_v30, %s5981_s30  ;;  %v1461_v30 = vld [vmem:[#allocation2 + $0x1a8] sm:$0xff] }
 0x174   : > { %2378 = vst.msk [vmem:[#allocation3 + $0x94] sm:$0xf] %vm1404_vm5, %v2295_v1  ;;  %v5308_v23 = vpack.c.bf16 %v1461_v30, %v1461_v30  ;;  %v502_v30 = vld [vmem:[#allocation2 + $0x1cf] sm:$0xff] }
 0x175   : > { %1352 = vrot.lane.b32.xlu0 %v6974_v8, %s5982_s21  ;;  %v1335_v7 = vpop.permute.xlu1 %1334  ;;  %v2165_v8 = vld [vmem:[#allocation2 + $0x1b0] sm:$0xff]  ;;  %v5185_v37 = vpack.c.bf16 %v502_v30, %v502_v30 }
 0x176   : > { %1418 = vst.msk [vmem:[#allocation3 + $0x9c] sm:$0xf] %vm1404_vm5, %v1335_v7  ;;  %v7057_v44 = vpack.c.bf16 %v2165_v8, %v2165_v8 }
 0x177   : > { %v823_v35 = vpop.permute.xlu0 %822  ;;  %2060 = vrot.lane.b32.xlu1 %v7037_v34, %s5981_s30  ;;  %1621 = vst.msk [vmem:[#allocation3 + $0x124] sm:$0xf] %vm633_vm2, %v5308_v23  ;;  %663 = vst.msk [vmem:[#allocation3 + $0x15c] sm:$0xf] %vm633_vm2, %v5185_v37 }
 0x178   : > { %905 = vst.msk [vmem:[#allocation3 + $0xa8] sm:$0xf] %vm890_vm3, %v823_v35 }
 0x179   : > { %2314 = vrot.lane.b32.xlu0 %v7041_v19, %s5982_s21  ;;  %v2297_v43 = vpop.permute.xlu1 %2296 }
 0x17a   : > { %2379 = vst.msk [vmem:[#allocation3 + $0xa0] sm:$0xf] %vm1404_vm5, %v2297_v43 }
 0x17b   : > { %v1786_v42 = vpop.permute.xlu0 %1785  ;;  %1354 = vrot.lane.b32.xlu1 %v6989_v4, %s5982_s21  ;;  %v2614_v39 = vld [vmem:[#allocation3 + $0x90] sm:$0xff] }
 0x17c   : > { %1867 = vst.msk [vmem:[#allocation3 + $0xac] sm:$0xf] %vm890_vm3, %v1786_v42 }
 0x17d   : > { %842 = vrot.lane.b32.xlu0 %v6993_v56, %s5980_s29  ;;  %v825_v60 = vpop.permute.xlu1 %824 }
 0x17e   : > { %906 = vst.msk [vmem:[#allocation3 + $0xb4] sm:$0xf] %vm890_vm3, %v825_v60 }
 0x17f   : > { %v1080_v22 = vpop.permute.xlu0 %1079  ;;  %2316 = vrot.lane.b32.xlu1 %v7057_v44, %s5982_s21 }
 0x180   : > { %1162 = vst.msk [vmem:[#allocation3 + $0xa8] sm:$0xf] %vm1147_vm4, %v1080_v22  ;;  %v7154_v22 = vpop.f32.mrf.mxu1 }
 0x181   : > { %1805 = vrot.lane.b32.xlu0 %v6737_v38, %s5980_s29  ;;  %v1788_v4 = vpop.permute.xlu1 %1787  ;;  %v2616_v55 = vld [vmem:[#allocation3 + $0x9c] sm:$0xff] }
 0x182   : > { %v5804_v15 = vld [vmem:[#allocation3 + $0x94] ss:$12 sps:$4 sm:$0xff]   ;;  %1868 = vst.msk [vmem:[#allocation3 + $0xb8] sm:$0xf] %vm890_vm3, %v1788_v4  ;;  %v5033_v25 = vcombine.low %v2614_v39, %v2616_v55 }
 0x183   : > { %v2043_v56 = vpop.permute.xlu0 %2042  ;;  %844 = vrot.lane.b32.xlu1 %v7009_v48, %s5980_s29  ;;  %3173 = vmatprep.mubr.bf16.mxu0 %v5804_v15  ;;  %v500_v48 = vld [vmem:[#allocation2 + $0x1af] sm:$0xff] }
 0x184   : > { %2124 = vst.msk [vmem:[#allocation3 + $0xac] sm:$0xf] %vm1147_vm4, %v2043_v56  ;;  %3174 = vmatmul.mubr.bf16.gmra.mxu0 %v5033_v25  ;;  %v5183_v16 = vpack.c.bf16 %v500_v48, %v500_v48  ;;  %v1915_v48 = vld [vmem:[#allocation2 + $0x20f] sm:$0xff] }
 0x185   : > { %1099 = vrot.lane.b32.xlu0 %v6684_v62, %s5981_s30  ;;  %v1082_v11 = vpop.permute.xlu1 %1081 }
 0x186   : > { %1163 = vst.msk [vmem:[#allocation3 + $0xb4] sm:$0xf] %vm1147_vm4, %v1082_v11  ;;  %v3288_v11 = vpop.f32.mrf.mxu1 }
 0x187   : > { %v1337_v52 = vpop.permute.xlu0 %1336  ;;  %1807 = vrot.lane.b32.xlu1 %v6748_v24, %s5980_s29  ;;  %661 = vst.msk [vmem:[#allocation3 + $0x144] sm:$0xf] %vm633_vm2, %v5183_v16 }
 0x188   : > { %1419 = vst.msk [vmem:[#allocation3 + $0xa8] sm:$0xf] %vm1404_vm5, %v1337_v52  ;;  %v7162_v52 = vpack.c.bf16 %v1914_v45, %v1914_v45  ;;  %v7175_v6 = vpop.f32.mrf.mxu1 }
 0x189   : > { %2062 = vrot.lane.b32.xlu0 %v7073_v41, %s5981_s30  ;;  %v2045_v40 = vpop.permute.xlu1 %2044 }
 0x18a   : > { %2125 = vst.msk [vmem:[#allocation3 + $0xb8] sm:$0xf] %vm1147_vm4, %v2045_v40 }
 0x18b   : > { %v2299_v62 = vpop.permute.xlu0 %2298  ;;  %1101 = vrot.lane.b32.xlu1 %v6695_v46, %s5981_s30  ;;  %v1463_v46 = vld [vmem:[#allocation2 + $0x1c8] sm:$0xff] }
 0x18c   : > { %2380 = vst.msk [vmem:[#allocation3 + $0xac] sm:$0xf] %vm1404_vm5, %v2299_v62  ;;  %v5310_v20 = vpack.c.bf16 %v1463_v46, %v1463_v46 }
 0x18d   : > { %1356 = vrot.lane.b32.xlu0 %v7025_v53, %s5982_s21  ;;  %v1339_v13 = vpop.permute.xlu1 %1338 }
 0x18e   : > { %1420 = vst.msk [vmem:[#allocation3 + $0xb4] sm:$0xf] %vm1404_vm5, %v1339_v13  ;;  %v503_v13 = vld [vmem:[#allocation2 + $0x1e7] sm:$0xff] }
 0x18f   : > { %v827_v49 = vpop.permute.xlu0 %826  ;;  %2064 = vrot.lane.b32.xlu1 %v7085_v17, %s5981_s30  ;;  %1623 = vst.msk [vmem:[#allocation3 + $0x13c] sm:$0xf] %vm633_vm2, %v5310_v20  ;;  %v7182_v20 = vpack.c.bf16 %v1915_v48, %v1915_v48 }
 0x190   : > { %907 = vst.msk [vmem:[#allocation3 + $0xc0] sm:$0xf] %vm890_vm3, %v827_v49  ;;  %v504_v49 = vld [vmem:[#allocation2 + $0x1ef] sm:$0xff] }
 0x191   : > { %2318 = vrot.lane.b32.xlu0 %v7089_v9, %s5982_s21  ;;  %v2301_v47 = vpop.permute.xlu1 %2300 }
 0x192   : > { %2381 = vst.msk [vmem:[#allocation3 + $0xb8] sm:$0xf] %vm1404_vm5, %v2301_v47  ;;  %v5186_v47 = vpack.c.bf16 %v503_v13, %v503_v13 }
 0x193   : > { %v1790_v21 = vpop.permute.xlu0 %1789  ;;  %1358 = vrot.lane.b32.xlu1 %v7037_v34, %s5982_s21  ;;  %v2618_v2 = vld [vmem:[#allocation3 + $0xa8] sm:$0xff]  ;;  %v7118_v34 = vpack.c.bf16 %v1912_v28, %v1912_v28 }
 0x194   : > { %1869 = vst.msk [vmem:[#allocation3 + $0xc4] sm:$0xf] %vm890_vm3, %v1790_v21  ;;  %v5187_v21 = vpack.c.bf16 %v504_v49, %v504_v49 }
 0x195   : > { %846 = vrot.lane.b32.xlu0 %v7041_v19, %s5980_s29  ;;  %v829_v53 = vpop.permute.xlu1 %828  ;;  %v1913_v19 = vld [vmem:[#allocation2 + $0x1ef] sm:$0xff]  ;;  %664 = vst.msk [vmem:[#allocation3 + $0x168] sm:$0xf] %vm633_vm2, %v5186_v47 }
 0x196   : > { %908 = vst.msk [vmem:[#allocation3 + $0xcc] sm:$0xf] %vm890_vm3, %v829_v53  ;;  %v7130_v36 = vpack.c.bf16 %v1913_v19, %v1913_v19  ;;  %v3291_v53 = vpop.f32.mrf.mxu1 }
 0x197   : > { %v1084_v61 = vpop.permute.xlu0 %1083  ;;  %2320 = vrot.lane.b32.xlu1 %v6785_v18, %s5982_s21  ;;  %665 = vst.msk [vmem:[#allocation3 + $0x174] sm:$0xf] %vm633_vm2, %v5187_v21 }
 0x198   : > { %1164 = vst.msk [vmem:[#allocation3 + $0xc0] sm:$0xf] %vm1147_vm4, %v1084_v61 }
 0x199   : > { %1809 = vrot.lane.b32.xlu0 %v6796_v26, %s5980_s29  ;;  %v1792_v54 = vpop.permute.xlu1 %1791  ;;  %v2620_v57 = vld [vmem:[#allocation3 + $0xb4] sm:$0xff] }
 0x19a   : > { %v5808_v1 = vld [vmem:[#allocation3 + $0xac] ss:$12 sps:$4 sm:$0xff]   ;;  %1870 = vst.msk [vmem:[#allocation3 + $0xd0] sm:$0xf] %vm890_vm3, %v1792_v54  ;;  %v5036_v32 = vcombine.low %v2618_v2, %v2620_v57 }
 0x19b   : > { %v2047_v31 = vpop.permute.xlu0 %2046  ;;  %848 = vrot.lane.b32.xlu1 %v7057_v44, %s5980_s29  ;;  %3181 = vmatprep.mubr.bf16.mxu0 %v5808_v1 }
 0x19c   : > { %2126 = vst.msk [vmem:[#allocation3 + $0xc4] sm:$0xf] %vm1147_vm4, %v2047_v31  ;;  %3182 = vmatmul.mubr.bf16.gmra.mxu0 %v5036_v32 }
 0x19d   : > { %1103 = vrot.lane.b32.xlu0 %v6737_v38, %s5981_s30  ;;  %v1086_v63 = vpop.permute.xlu1 %1085  ;;  %v501_v38 = vld [vmem:[#allocation2 + $0x1c7] sm:$0xff] }
 0x19e   : > { %1165 = vst.msk [vmem:[#allocation3 + $0xcc] sm:$0xf] %vm1147_vm4, %v1086_v63  ;;  %v5184_v23 = vpack.c.bf16 %v501_v38, %v501_v38 }
 0x19f   : > { %v1341_v3 = vpop.permute.xlu0 %1340  ;;  %1811 = vrot.lane.b32.xlu1 %v6807_v33, %s5980_s29 }
 0x1a0   : > { %1421 = vst.msk [vmem:[#allocation3 + $0xc0] sm:$0xf] %vm1404_vm5, %v1341_v3  ;;  %v1916_v3 = vld [vmem:[#allocation2 + $0x227] sm:$0xff] }
 0x1a1   : > { %2066 = vrot.lane.b32.xlu0 %v7118_v34, %s5981_s30  ;;  %v2049_v7 = vpop.permute.xlu1 %2048  ;;  %662 = vst.msk [vmem:[#allocation3 + $0x150] sm:$0xf] %vm633_vm2, %v5184_v23 }
 0x1a2   : > { %2127 = vst.msk [vmem:[#allocation3 + $0xd0] sm:$0xf] %vm1147_vm4, %v2049_v7 }
 0x1a3   : > { %v2303_v35 = vpop.permute.xlu0 %2302  ;;  %1105 = vrot.lane.b32.xlu1 %v6748_v24, %s5981_s30 }
 0x1a4   : > { %2382 = vst.msk [vmem:[#allocation3 + $0xc4] sm:$0xf] %vm1404_vm5, %v2303_v35 }
 0x1a5   : > { %1360 = vrot.lane.b32.xlu0 %v7073_v41, %s5982_s21  ;;  %v1343_v8 = vpop.permute.xlu1 %1342 }
 0x1a6   : > { %1422 = vst.msk [vmem:[#allocation3 + $0xcc] sm:$0xf] %vm1404_vm5, %v1343_v8 }
 0x1a7   : > { %v831_v43 = vpop.permute.xlu0 %830  ;;  %2068 = vrot.lane.b32.xlu1 %v7130_v36, %s5981_s30 }
 0x1a8   : > { %909 = vst.msk [vmem:[#allocation3 + $0xd8] sm:$0xf] %vm890_vm3, %v831_v43  ;;  %v1917_v43 = vld [vmem:[#allocation2 + $0x22f] sm:$0xff] }
 0x1a9   : > { %2322 = vrot.lane.b32.xlu0 %v6832_v50, %s5982_s21  ;;  %v2305_v24 = vpop.permute.xlu1 %2304 }
 0x1aa   : > { %2383 = vst.msk [vmem:[#allocation3 + $0xd0] sm:$0xf] %vm1404_vm5, %v2305_v24 }
 0x1ab   : > { %v1794_v42 = vpop.permute.xlu0 %1793  ;;  %1362 = vrot.lane.b32.xlu1 %v7085_v17, %s5982_s21  ;;  %v2622_v39 = vld [vmem:[#allocation3 + $0xc0] sm:$0xff] }
 0x1ac   : > { %1871 = vst.msk [vmem:[#allocation3 + $0xdc] sm:$0xf] %vm890_vm3, %v1794_v42 }
 0x1ad   : > { %850 = vrot.lane.b32.xlu0 %v7089_v9, %s5980_s29  ;;  %v833_v44 = vpop.permute.xlu1 %832 }
 0x1ae   : > { %910 = vst.msk [vmem:[#allocation3 + $0xe4] sm:$0xf] %vm890_vm3, %v833_v44 }
 0x1af   : > { %v1088_v60 = vpop.permute.xlu0 %1087  ;;  %2324 = vrot.lane.b32.xlu1 %v6848_v10, %s5982_s21 }
 0x1b0   : > { %1166 = vst.msk [vmem:[#allocation3 + $0xd8] sm:$0xf] %vm1147_vm4, %v1088_v60 }
 0x1b1   : > { %1813 = vrot.lane.b32.xlu0 %v6861_v58, %s5980_s29  ;;  %v1796_v4 = vpop.permute.xlu1 %1795  ;;  %v2624_v55 = vld [vmem:[#allocation3 + $0xcc] sm:$0xff] }
 0x1b2   : > { %v5812_v15 = vld [vmem:[#allocation3 + $0xc4] ss:$12 sps:$4 sm:$0xff]   ;;  %1872 = vst.msk [vmem:[#allocation3 + $0xe8] sm:$0xf] %vm890_vm3, %v1796_v4  ;;  %v5039_v25 = vcombine.low %v2622_v39, %v2624_v55 }
 0x1b3   : > { %v2051_v56 = vpop.permute.xlu0 %2050  ;;  %852 = vrot.lane.b32.xlu1 %v6785_v18, %s5980_s29  ;;  %3189 = vmatprep.mubr.bf16.mxu0 %v5812_v15  ;;  %v5539_v41 = vpop.f32.mrf.mxu0  ;;  %v7168_v18 = vld [vmem:[%s8243_s2] ss:$0 sm:$0xff] }
 0x1b4   : > { %2128 = vst.msk [vmem:[#allocation3 + $0xdc] sm:$0xf] %vm1147_vm4, %v2051_v56  ;;  %3190 = vmatmul.mubr.bf16.gmra.mxu0 %v5039_v25 }
 0x1b5   : > { %1107 = vrot.lane.b32.xlu0 %v6796_v26, %s5981_s30  ;;  %v1090_v27 = vpop.permute.xlu1 %1089  ;;  %v5540_v40 = vpop.f32.mrf.mxu0 }
 0x1b6   : > { %1167 = vst.msk [vmem:[#allocation3 + $0xe4] sm:$0xf] %vm1147_vm4, %v1090_v27  ;;  %v5541_v62 = vadd.f32 %v5540_v40, %v5539_v41 }
 0x1b7   : > { %v1345_v5 = vpop.permute.xlu0 %1344  ;;  %1815 = vrot.lane.b32.xlu1 %v6863_v12, %s5980_s29  ;;  %v5542_v26 = vpop.f32.mrf.mxu0 }
 0x1b8   : > { %1423 = vst.msk [vmem:[#allocation3 + $0xd8] sm:$0xf] %vm1404_vm5, %v1345_v5  ;;  %v3128_v0 = vadd.f32 %v5541_v62, %v7168_v18 }
 0x1b9   : > { %2070 = vrot.lane.b32.xlu0 %v7162_v52, %s5981_s30  ;;  %v2053_v17 = vpop.permute.xlu1 %2052  ;;  %v5543_v16 = vpop.f32.mrf.mxu0 }
 0x1ba   : > { %2129 = vst.msk [vmem:[#allocation3 + $0xe8] sm:$0xf] %vm1147_vm4, %v2053_v17  ;;  %v5544_v46 = vadd.f32 %v5543_v16, %v5542_v26  ;;  %v3289_v61 = vadd.f32 %v3288_v11, %v3128_v0  ;;  %v7241_v26 = vpop.f32.mrf.mxu1 }
 0x1bb   : > { %v2307_v9 = vpop.permute.xlu0 %2306  ;;  %1109 = vrot.lane.b32.xlu1 %v6807_v33, %s5981_s30 }
 0x1bc   : > { %2384 = vst.msk [vmem:[#allocation3 + $0xdc] sm:$0xf] %vm1404_vm5, %v2307_v9  ;;  %v3131_v54 = vadd.f32 %v5544_v46, %v7168_v18  ;;  %v3415_v57 = vmax.f32 %v3289_v61, 0.0  ;;  %v3304_v49 = vpop.f32.mrf.mxu1 }
 0x1bd   : > { %1364 = vrot.lane.b32.xlu0 %v7118_v34, %s5982_s21  ;;  %v1347_v28 = vpop.permute.xlu1 %1346 }
 0x1be   : > { %1424 = vst.msk [vmem:[#allocation3 + $0xe4] sm:$0xf] %vm1404_vm5, %v1347_v28  ;;  %v3292_v2 = vadd.f32 %v3291_v53, %v3131_v54  ;;  %v5686_v61 = vpop.f32.mrf.mxu1 }
 0x1bf   : > { %v835_v33 = vpop.permute.xlu0 %834  ;;  %2072 = vrot.lane.b32.xlu1 %v7182_v20, %s5981_s30 }
 0x1c0   : > { %911 = vst.msk [vmem:[#allocation3 + $0xf0] sm:$0xf] %vm890_vm3, %v835_v33  ;;  %v3416_v1 = vmax.f32 %v3292_v2, 0.0 }
 0x1c1   : > { %2326 = vrot.lane.b32.xlu0 %v6909_v51, %s5982_s21  ;;  %v2309_v31 = vpop.permute.xlu1 %2308 }
 0x1c2   : > { %2385 = vst.msk [vmem:[#allocation3 + $0xe8] sm:$0xf] %vm1404_vm5, %v2309_v31  ;;  %v3447_v34 = vpack.c.bf16 %v3416_v1, %v3415_v57  ;;  %v3307_v1 = vpop.f32.mrf.mxu1 }
 0x1c3   : > { %v1798_v32 = vpop.permute.xlu0 %1797  ;;  %1366 = vrot.lane.b32.xlu1 %v7130_v36, %s5982_s21  ;;  %v2626_v7 = vld [vmem:[#allocation3 + $0xd8] sm:$0xff] }
 0x1c4   : > { %1873 = vst.msk [vmem:[#allocation3 + $0xf4] sm:$0xf] %vm890_vm3, %v1798_v32  ;;  %5723 = vmatprep.mubr.msk.bf16.mxu1 %vm3518_vm6, %v3447_v34 }
 0x1c5   : > { %854 = vrot.lane.b32.xlu0 %v6832_v50, %s5980_s29  ;;  %v837_v63 = vpop.permute.xlu1 %836 }
 0x1c6   : > { %912 = vst.msk [vmem:[#allocation3 + $0xfc] sm:$0xf] %vm890_vm3, %v837_v63 }
 0x1c7   : > { %v1092_v51 = vpop.permute.xlu0 %1091  ;;  %2328 = vrot.lane.b32.xlu1 %v6929_v59, %s5982_s21 }
 0x1c8   : > { %1168 = vst.msk [vmem:[#allocation3 + $0xf0] sm:$0xf] %vm1147_vm4, %v1092_v51 }
 0x1c9   : > { %1817 = vrot.lane.b32.xlu0 %v6883_v29, %s5980_s29  ;;  %v1800_v19 = vpop.permute.xlu1 %1799  ;;  %v2628_v35 = vld [vmem:[#allocation3 + $0xe4] sm:$0xff]  ;;  %v5378_v29 = vpack.c.bf16 %v1916_v3, %v1916_v3 }
 0x1ca   : > { %v5822_v38 = vld [vmem:[#allocation3 + $0xdc] ss:$12 sps:$4 sm:$0xff]   ;;  %1874 = vst.msk [vmem:[#allocation3 + $0x100] sm:$0xf] %vm890_vm3, %v1800_v19  ;;  %v5042_v30 = vcombine.low %v2626_v7, %v2628_v35 }
 0x1cb   : > { %v2055_v50 = vpop.permute.xlu0 %2054  ;;  %856 = vrot.lane.b32.xlu1 %v6848_v10, %s5980_s29  ;;  %3197 = vmatprep.mubr.bf16.mxu0 %v5822_v38 }
 0x1cc   : > { %2130 = vst.msk [vmem:[#allocation3 + $0xf4] sm:$0xf] %vm1147_vm4, %v2055_v50  ;;  %v5545_v59 = vpop.f32.mrf.mxu0  ;;  %3198 = vmatmul.mubr.bf16.gmra.mxu0 %v5042_v30 }
 0x1cd   : > { %1111 = vrot.lane.b32.xlu0 %v6861_v58, %s5981_s30  ;;  %v1094_v36 = vpop.permute.xlu1 %1093  ;;  %v2172_v58 = vld [vmem:[#allocation2 + $0x228] sm:$0xff] }
 0x1ce   : > { %1169 = vst.msk [vmem:[#allocation3 + $0xfc] sm:$0xf] %vm1147_vm4, %v1094_v36  ;;  %v5546_v23 = vpop.f32.mrf.mxu0  ;;  %v5410_v4 = vpack.c.bf16 %v2172_v58, %v2172_v58 }
 0x1cf   : > { %v1349_v37 = vpop.permute.xlu0 %1348  ;;  %1819 = vrot.lane.b32.xlu1 %v6885_v14, %s5980_s29  ;;  %v5547_v8 = vadd.f32 %v5546_v23, %v5545_v59  ;;  %v5379_v14 = vpack.c.bf16 %v1917_v43, %v1917_v43 }
 0x1d0   : > { %1425 = vst.msk [vmem:[#allocation3 + $0xf0] sm:$0xf] %vm1404_vm5, %v1349_v37  ;;  %v5548_v10 = vpop.f32.mrf.mxu0 }
 0x1d1   : > { %2074 = vrot.lane.b32.xlu0 %v5378_v29, %s5981_s30  ;;  %v3136_v24 = vadd.f32 %v5547_v8, %v7168_v18  ;;  %v2057_v42 = vpop.permute.xlu1 %2056 }
 0x1d2   : > { %2131 = vst.msk [vmem:[#allocation3 + $0x100] sm:$0xf] %vm1147_vm4, %v2057_v42  ;;  %v5549_v44 = vpop.f32.mrf.mxu0 }
 0x1d3   : > { %v2311_v60 = vpop.permute.xlu0 %2310  ;;  %1113 = vrot.lane.b32.xlu1 %v6863_v12, %s5981_s30  ;;  %v5550_v45 = vadd.f32 %v5549_v44, %v5548_v10  ;;  %v3297_v39 = vadd.f32 %v7154_v22, %v3136_v24  ;;  %v2173_v12 = vld [vmem:[#allocation2 + $0x230] sm:$0xff] }
 0x1d4   : > { %2386 = vst.msk [vmem:[#allocation3 + $0xf4] sm:$0xf] %vm1404_vm5, %v2311_v60  ;;  %v5411_v40 = vpack.c.bf16 %v2173_v12, %v2173_v12 }
 0x1d5   : > { %1368 = vrot.lane.b32.xlu0 %v7162_v52, %s5982_s21  ;;  %v3139_v55 = vadd.f32 %v5550_v45, %v7168_v18  ;;  %v1351_v15 = vpop.permute.xlu1 %1350  ;;  %v3417_v41 = vmax.f32 %v3297_v39, 0.0 }
 0x1d6   : > { %1426 = vst.msk [vmem:[#allocation3 + $0xfc] sm:$0xf] %vm1404_vm5, %v1351_v15 }
 0x1d7   : > { %v839_v56 = vpop.permute.xlu0 %838  ;;  %v3300_v25 = vadd.f32 %v7175_v6, %v3139_v55  ;;  %2076 = vrot.lane.b32.xlu1 %v5379_v14, %s5981_s30 }
 0x1d8   : > { %913 = vst.msk [vmem:[#allocation3 + $0x108] sm:$0xf] %vm890_vm3, %v839_v56 }
 0x1d9   : > { %2330 = vrot.lane.b32.xlu0 %v5410_v4, %s5982_s21  ;;  %v3418_v11 = vmax.f32 %v3300_v25, 0.0  ;;  %v2313_v52 = vpop.permute.xlu1 %2312 }
 0x1da   : > { %2387 = vst.msk [vmem:[#allocation3 + $0x100] sm:$0xf] %vm1404_vm5, %v2313_v52 }
 0x1db   : > { %v1802_v22 = vpop.permute.xlu0 %1801  ;;  %v3448_v27 = vpack.c.bf16 %v3418_v11, %v3417_v41  ;;  %1370 = vrot.lane.b32.xlu1 %v7182_v20, %s5982_s21  ;;  %v2630_v48 = vld [vmem:[#allocation3 + $0xf0] sm:$0xff] }
 0x1dc   : > { %1875 = vst.msk [vmem:[#allocation3 + $0x10c] sm:$0xf] %vm890_vm3, %v1802_v22 }
 0x1dd   : > { %v841_v5 = vpop.permute.xlu1 %840  ;;  %5724 = vmatmul.mubr.msk.bf16.vlgmr.msra.gmra.mxu1 %vm3518_vm6, %v3448_v27 }
 0x1de   : > { %914 = vst.msk [vmem:[#allocation3 + $0x114] sm:$0xf] %vm890_vm3, %v841_v5 }
 0x1df   : > { %v1096_v62 = vpop.permute.xlu0 %1095  ;;  %2332 = vrot.lane.b32.xlu1 %v5411_v40, %s5982_s21 }
 0x1e0   : > { %1170 = vst.msk [vmem:[#allocation3 + $0x108] sm:$0xf] %vm1147_vm4, %v1096_v62  ;;  %v7274_v62 = vpop.f32.mrf.mxu1 }
 0x1e1   : > { %v1804_v6 = vpop.permute.xlu1 %1803  ;;  %v2632_v17 = vld [vmem:[#allocation3 + $0xfc] sm:$0xff] }
 0x1e2   : > { %v5828_v0 = vld [vmem:[#allocation3 + $0xf4] ss:$12 sps:$4 sm:$0xff]   ;;  %1876 = vst.msk [vmem:[#allocation3 + $0x118] sm:$0xf] %vm890_vm3, %v1804_v6  ;;  %v5045_v9 = vcombine.low %v2630_v48, %v2632_v17 }
 0x1e3   : > { %v2059_v16 = vpop.permute.xlu0 %2058  ;;  %3205 = vmatprep.mubr.bf16.mxu0 %v5828_v0 }
 0x1e4   : > { %2132 = vst.msk [vmem:[#allocation3 + $0x10c] sm:$0xf] %vm1147_vm4, %v2059_v16  ;;  %v5551_v13 = vpop.f32.mrf.mxu0  ;;  %3206 = vmatmul.mubr.bf16.gmra.mxu0 %v5045_v9 }
 0x1e5   : > { %v1098_v46 = vpop.permute.xlu1 %1097 }
 0x1e6   : > { %1171 = vst.msk [vmem:[#allocation3 + $0x114] sm:$0xf] %vm1147_vm4, %v1098_v46  ;;  %v5552_v20 = vpop.f32.mrf.mxu0 }
 0x1e7   : > { %v1353_v47 = vpop.permute.xlu0 %1352  ;;  %v5553_v21 = vadd.f32 %v5552_v20, %v5551_v13  ;;  %v3320_v13 = vpop.f32.mrf.mxu1 }
 0x1e8   : > { %1427 = vst.msk [vmem:[#allocation3 + $0x108] sm:$0xf] %vm1404_vm5, %v1353_v47  ;;  %v5554_v53 = vpop.f32.mrf.mxu0 }
 0x1e9   : > { %v2061_v28 = vpop.permute.xlu1 %2060  ;;  %v3144_v54 = vadd.f32 %v5553_v21, %v7168_v18 }
 0x1ea   : > { %2133 = vst.msk [vmem:[#allocation3 + $0x118] sm:$0xf] %vm1147_vm4, %v2061_v28  ;;  %v5555_v33 = vpop.f32.mrf.mxu0 }
 0x1eb   : > { %v2315_v2 = vpop.permute.xlu0 %2314  ;;  %v5556_v57 = vadd.f32 %v5555_v33, %v5554_v53  ;;  %v3305_v31 = vadd.f32 %v3304_v49, %v3144_v54  ;;  %v5690_v53 = vpop.f32.mrf.mxu1 }
 0x1ec   : > { %2388 = vst.msk [vmem:[#allocation3 + $0x10c] sm:$0xf] %vm1404_vm5, %v2315_v2 }
 0x1ed   : > { %v1355_v32 = vpop.permute.xlu1 %1354  ;;  %v3147_v34 = vadd.f32 %v5556_v57, %v7168_v18  ;;  %v3419_v3 = vmax.f32 %v3305_v31, 0.0  ;;  %v3323_v57 = vpop.f32.mrf.mxu1 }
 0x1ee   : > { %1428 = vst.msk [vmem:[#allocation3 + $0x114] sm:$0xf] %vm1404_vm5, %v1355_v32 }
 0x1ef   : > { %v843_v63 = vpop.permute.xlu0 %842  ;;  %v3308_v51 = vadd.f32 %v3307_v1, %v3147_v34 }
 0x1f0   : > { %915 = vst.msk [vmem:[#allocation3 + $0x120] sm:$0xf] %vm890_vm3, %v843_v63 }
 0x1f1   : > { %v3420_v19 = vmax.f32 %v3308_v51, 0.0  ;;  %v2317_v7 = vpop.permute.xlu1 %2316 }
 0x1f2   : > { %2389 = vst.msk [vmem:[#allocation3 + $0x118] sm:$0xf] %vm1404_vm5, %v2317_v7 }
 0x1f3   : > { %v1806_v35 = vpop.permute.xlu0 %1805  ;;  %v3449_v38 = vpack.c.bf16 %v3420_v19, %v3419_v3  ;;  %v2634_v29 = vld [vmem:[#allocation3 + $0x108] sm:$0xff] }
 0x1f4   : > { %1877 = vst.msk [vmem:[#allocation3 + $0x124] sm:$0xf] %vm890_vm3, %v1806_v35 }
 0x1f5   : > { %v845_v50 = vpop.permute.xlu1 %844  ;;  %5727 = vmatprep.mubr.msk.bf16.mxu1 %vm3518_vm6, %v3449_v38 }
 0x1f6   : > { %916 = vst.msk [vmem:[#allocation3 + $0x12c] sm:$0xf] %vm890_vm3, %v845_v50 }
 0x1f7   : > { %v1100_v30 = vpop.permute.xlu0 %1099 }
 0x1f8   : > { %1172 = vst.msk [vmem:[#allocation3 + $0x120] sm:$0xf] %vm1147_vm4, %v1100_v30 }
 0x1f9   : > { %v1808_v59 = vpop.permute.xlu1 %1807  ;;  %v2636_v36 = vld [vmem:[#allocation3 + $0x114] sm:$0xff] }
 0x1fa   : > { %v5830_v23 = vld [vmem:[#allocation3 + $0x10c] ss:$12 sps:$4 sm:$0xff]   ;;  %1878 = vst.msk [vmem:[#allocation3 + $0x130] sm:$0xf] %vm890_vm3, %v1808_v59  ;;  %v5048_v8 = vcombine.low %v2634_v29, %v2636_v36 }
 0x1fb   : > { %v2063_v37 = vpop.permute.xlu0 %2062  ;;  %3213 = vmatprep.mubr.bf16.mxu0 %v5830_v23 }
 0x1fc   : > { %2134 = vst.msk [vmem:[#allocation3 + $0x124] sm:$0xf] %vm1147_vm4, %v2063_v37  ;;  %v5557_v10 = vpop.f32.mrf.mxu0  ;;  %3214 = vmatmul.mubr.bf16.gmra.mxu0 %v5048_v8 }
 0x1fd   : > { %v1102_v43 = vpop.permute.xlu1 %1101 }
 0x1fe   : > { %1173 = vst.msk [vmem:[#allocation3 + $0x12c] sm:$0xf] %vm1147_vm4, %v1102_v43  ;;  %v5558_v24 = vpop.f32.mrf.mxu0 }
 0x1ff   : > { %v1357_v42 = vpop.permute.xlu0 %1356  ;;  %v5559_v58 = vadd.f32 %v5558_v24, %v5557_v10 }
 0x200   : > { %1429 = vst.msk [vmem:[#allocation3 + $0x120] sm:$0xf] %vm1404_vm5, %v1357_v42  ;;  %v5560_v44 = vpop.f32.mrf.mxu0 }
 0x201   : > { %v3152_v60 = vadd.f32 %v5559_v58, %v7168_v18  ;;  %v2065_v45 = vpop.permute.xlu1 %2064 }
 0x202   : > { %2135 = vst.msk [vmem:[#allocation3 + $0x130] sm:$0xf] %vm1147_vm4, %v2065_v45  ;;  %v5561_v14 = vpop.f32.mrf.mxu0 }
 0x203   : > { %v2319_v4 = vpop.permute.xlu0 %2318  ;;  %v5562_v39 = vadd.f32 %v5561_v14, %v5560_v44  ;;  %v3313_v55 = vadd.f32 %v7241_v26, %v3152_v60 }
 0x204   : > { %2390 = vst.msk [vmem:[#allocation3 + $0x124] sm:$0xf] %vm1404_vm5, %v2319_v4 }
 0x205   : > { %v3155_v15 = vadd.f32 %v5562_v39, %v7168_v18  ;;  %v1359_v56 = vpop.permute.xlu1 %1358  ;;  %v3421_v41 = vmax.f32 %v3313_v55, 0.0 }
 0x206   : > { %1430 = vst.msk [vmem:[#allocation3 + $0x12c] sm:$0xf] %vm1404_vm5, %v1359_v56 }
 0x207   : > { %v847_v25 = vpop.permute.xlu0 %846  ;;  %v3316_v12 = vadd.f32 %v5686_v61, %v3155_v15 }
 0x208   : > { %917 = vst.msk [vmem:[#allocation3 + $0x138] sm:$0xf] %vm890_vm3, %v847_v25 }
 0x209   : > { %v3422_v11 = vmax.f32 %v3316_v12, 0.0  ;;  %v2321_v52 = vpop.permute.xlu1 %2320 }
 0x20a   : > { %2391 = vst.msk [vmem:[#allocation3 + $0x130] sm:$0xf] %vm1404_vm5, %v2321_v52 }
 0x20b   : > { %v1810_v22 = vpop.permute.xlu0 %1809  ;;  %v3450_v27 = vpack.c.bf16 %v3422_v11, %v3421_v41  ;;  %v2638_v6 = vld [vmem:[#allocation3 + $0x120] sm:$0xff] }
 0x20c   : > { %1879 = vst.msk [vmem:[#allocation3 + $0x13c] sm:$0xf] %vm890_vm3, %v1810_v22 }
 0x20d   : > { %v849_v40 = vpop.permute.xlu1 %848  ;;  %5728 = vmatmul.mubr.msk.bf16.gmra.mxu1 %vm3518_vm6, %v3450_v27 }
 0x20e   : > { %918 = vst.msk [vmem:[#allocation3 + $0x144] sm:$0xf] %vm890_vm3, %v849_v40 }
 0x20f   : > { %v1104_v5 = vpop.permute.xlu0 %1103 }
 0x210   : > { %1174 = vst.msk [vmem:[#allocation3 + $0x138] sm:$0xf] %vm1147_vm4, %v1104_v5  ;;  %v5693_v5 = vpop.f32.mrf.mxu1 }
 0x211   : > { %v1812_v26 = vpop.permute.xlu1 %1811  ;;  %v2640_v48 = vld [vmem:[#allocation3 + $0x12c] sm:$0xff] }
 0x212   : > { %v5832_v17 = vld [vmem:[#allocation3 + $0x124] ss:$12 sps:$4 sm:$0xff]   ;;  %1880 = vst.msk [vmem:[#allocation3 + $0x148] sm:$0xf] %vm890_vm3, %v1812_v26  ;;  %v5051_v16 = vcombine.low %v2638_v6, %v2640_v48 }
 0x213   : > { %v2067_v0 = vpop.permute.xlu0 %2066  ;;  %3221 = vmatprep.mubr.bf16.mxu0 %v5832_v17 }
 0x214   : > { %2136 = vst.msk [vmem:[#allocation3 + $0x13c] sm:$0xf] %vm1147_vm4, %v2067_v0  ;;  %v5563_v9 = vpop.f32.mrf.mxu0  ;;  %3222 = vmatmul.mubr.bf16.gmra.mxu0 %v5051_v16 }
 0x215   : > { %v1106_v49 = vpop.permute.xlu1 %1105 }
 0x216   : > { %1175 = vst.msk [vmem:[#allocation3 + $0x144] sm:$0xf] %vm1147_vm4, %v1106_v49  ;;  %v5564_v46 = vpop.f32.mrf.mxu0 }
 0x217   : > { %v1361_v20 = vpop.permute.xlu0 %1360  ;;  %v5565_v47 = vadd.f32 %v5564_v46, %v5563_v9  ;;  %v3336_v9 = vpop.f32.mrf.mxu1 }
 0x218   : > { %1431 = vst.msk [vmem:[#allocation3 + $0x138] sm:$0xf] %vm1404_vm5, %v1361_v20  ;;  %v5566_v21 = vpop.f32.mrf.mxu0 }
 0x219   : > { %v2069_v61 = vpop.permute.xlu1 %2068  ;;  %v3160_v28 = vadd.f32 %v5565_v47, %v7168_v18 }
 0x21a   : > { %2137 = vst.msk [vmem:[#allocation3 + $0x148] sm:$0xf] %vm1147_vm4, %v2069_v61  ;;  %v5567_v54 = vpop.f32.mrf.mxu0 }
 0x21b   : > { %v2323_v33 = vpop.permute.xlu0 %2322  ;;  %v5568_v2 = vadd.f32 %v5567_v54, %v5566_v21  ;;  %v3321_v1 = vadd.f32 %v3320_v13, %v3160_v28  ;;  %v5694_v21 = vpop.f32.mrf.mxu1 }
 0x21c   : > { %2392 = vst.msk [vmem:[#allocation3 + $0x13c] sm:$0xf] %vm1404_vm5, %v2323_v33 }
 0x21d   : > { %v1363_v31 = vpop.permute.xlu1 %1362  ;;  %v3163_v32 = vadd.f32 %v5568_v2, %v7168_v18  ;;  %v3423_v51 = vmax.f32 %v3321_v1, 0.0  ;;  %v3339_v2 = vpop.f32.mrf.mxu1 }
 0x21e   : > { %1432 = vst.msk [vmem:[#allocation3 + $0x144] sm:$0xf] %vm1404_vm5, %v1363_v31 }
 0x21f   : > { %v851_v34 = vpop.permute.xlu0 %850  ;;  %v3324_v63 = vadd.f32 %v3323_v57, %v3163_v32 }
 0x220   : > { %919 = vst.msk [vmem:[#allocation3 + $0x150] sm:$0xf] %vm890_vm3, %v851_v34 }
 0x221   : > { %v3424_v3 = vmax.f32 %v3324_v63, 0.0  ;;  %v2325_v19 = vpop.permute.xlu1 %2324 }
 0x222   : > { %2393 = vst.msk [vmem:[#allocation3 + $0x148] sm:$0xf] %vm1404_vm5, %v2325_v19 }
 0x223   : > { %v1814_v7 = vpop.permute.xlu0 %1813  ;;  %v3451_v35 = vpack.c.bf16 %v3424_v3, %v3423_v51  ;;  %v2642_v59 = vld [vmem:[#allocation3 + $0x138] sm:$0xff] }
 0x224   : > { %1881 = vst.msk [vmem:[#allocation3 + $0x154] sm:$0xf] %vm890_vm3, %v1814_v7 }
 0x225   : > { %v853_v38 = vpop.permute.xlu1 %852  ;;  %5731 = vmatprep.mubr.msk.bf16.mxu1 %vm3518_vm6, %v3451_v35 }
 0x226   : > { %920 = vst.msk [vmem:[#allocation3 + $0x15c] sm:$0xf] %vm890_vm3, %v853_v38 }
 0x227   : > { %v1108_v50 = vpop.permute.xlu0 %1107 }
 0x228   : > { %1176 = vst.msk [vmem:[#allocation3 + $0x150] sm:$0xf] %vm1147_vm4, %v1108_v50 }
 0x229   : > { %v1816_v30 = vpop.permute.xlu1 %1815  ;;  %v2644_v29 = vld [vmem:[#allocation3 + $0x144] sm:$0xff] }
 0x22a   : > { %v5834_v36 = vld [vmem:[#allocation3 + $0x13c] ss:$12 sps:$4 sm:$0xff]   ;;  %1882 = vst.msk [vmem:[#allocation3 + $0x160] sm:$0xf] %vm890_vm3, %v1816_v30  ;;  %v5054_v37 = vcombine.low %v2642_v59, %v2644_v29  ;;  %v5697_v30 = vpop.f32.mrf.mxu1 }
 0x22b   : > { %v2071_v23 = vpop.permute.xlu0 %2070  ;;  %3229 = vmatprep.mubr.bf16.mxu0 %v5834_v36 }
 0x22c   : > { %2138 = vst.msk [vmem:[#allocation3 + $0x154] sm:$0xf] %vm1147_vm4, %v2071_v23  ;;  %v5569_v8 = vpop.f32.mrf.mxu0  ;;  %3230 = vmatmul.mubr.bf16.gmra.mxu0 %v5054_v37  ;;  %v3352_v37 = vpop.f32.mrf.mxu1 }
 0x22d   : > { %v1110_v10 = vpop.permute.xlu1 %1109 }
 0x22e   : > { %1177 = vst.msk [vmem:[#allocation3 + $0x15c] sm:$0xf] %vm1147_vm4, %v1110_v10  ;;  %v5570_v43 = vpop.f32.mrf.mxu0 }
 0x22f   : > { %v1365_v24 = vpop.permute.xlu0 %1364  ;;  %v5571_v42 = vadd.f32 %v5570_v43, %v5569_v8 }
 0x230   : > { %1433 = vst.msk [vmem:[#allocation3 + $0x150] sm:$0xf] %vm1404_vm5, %v1365_v24  ;;  %v5572_v58 = vpop.f32.mrf.mxu0  ;;  %v5698_v24 = vpop.f32.mrf.mxu1 }
 0x231   : > { %v3168_v44 = vadd.f32 %v5571_v42, %v7168_v18  ;;  %v2073_v60 = vpop.permute.xlu1 %2072 }
 0x232   : > { %2139 = vst.msk [vmem:[#allocation3 + $0x160] sm:$0xf] %vm1147_vm4, %v2073_v60  ;;  %v5573_v45 = vpop.f32.mrf.mxu0  ;;  %v3355_v60 = vpop.f32.mrf.mxu1 }
 0x233   : > { %v2327_v14 = vpop.permute.xlu0 %2326  ;;  %v5574_v4 = vadd.f32 %v5573_v45, %v5572_v58  ;;  %v3329_v39 = vadd.f32 %v7274_v62, %v3168_v44 }
 0x234   : > { %2394 = vst.msk [vmem:[#allocation3 + $0x154] sm:$0xf] %vm1404_vm5, %v2327_v14  ;;  %v7321_v45 = vpop.f32.mrf.mxu1 }
 0x235   : > { %v3171_v55 = vadd.f32 %v5574_v4, %v7168_v18  ;;  %v1367_v15 = vpop.permute.xlu1 %1366  ;;  %v3425_v12 = vmax.f32 %v3329_v39, 0.0 }
 0x236   : > { %1434 = vst.msk [vmem:[#allocation3 + $0x15c] sm:$0xf] %vm1404_vm5, %v1367_v15  ;;  %v7323_v14 = vpop.f32.mrf.mxu1 }
 0x237   : > { %v855_v56 = vpop.permute.xlu0 %854  ;;  %v3332_v25 = vadd.f32 %v5690_v53, %v3171_v55 }
 0x238   : > { %921 = vst.msk [vmem:[#allocation3 + $0x168] sm:$0xf] %vm890_vm3, %v855_v56  ;;  %v7325_v39 = vpop.f32.mrf.mxu1 }
 0x239   : > { %v3426_v41 = vmax.f32 %v3332_v25, 0.0  ;;  %v2329_v11 = vpop.permute.xlu1 %2328 }
 0x23a   : > { %2395 = vst.msk [vmem:[#allocation3 + $0x160] sm:$0xf] %vm1404_vm5, %v2329_v11 }
 0x23b   : > { %v1818_v52 = vpop.permute.xlu0 %1817  ;;  %v3452_v22 = vpack.c.bf16 %v3426_v41, %v3425_v12  ;;  %v2646_v26 = vld [vmem:[#allocation3 + $0x150] sm:$0xff]  ;;  %v3371_v12 = vpop.f32.mrf.mxu1 }
 0x23c   : > { %1883 = vst.msk [vmem:[#allocation3 + $0x16c] sm:$0xf] %vm890_vm3, %v1818_v52 }
 0x23d   : > { %v857_v27 = vpop.permute.xlu1 %856  ;;  %5732 = vmatmul.mubr.msk.bf16.gmra.mxu1 %vm3518_vm6, %v3452_v22 }
 0x23e   : > { %922 = vst.msk [vmem:[#allocation3 + $0x174] sm:$0xf] %vm890_vm3, %v857_v27  ;;  %v7329_v27 = vpop.f32.mrf.mxu1 }
 0x23f   : > { %v1112_v40 = vpop.permute.xlu0 %1111 }
 0x240   : > { %1178 = vst.msk [vmem:[#allocation3 + $0x168] sm:$0xf] %vm1147_vm4, %v1112_v40 }
 0x241   : > { %v1820_v62 = vpop.permute.xlu1 %1819  ;;  %v2648_v6 = vld [vmem:[#allocation3 + $0x15c] sm:$0xff] }
 0x242   : > { %v5836_v48 = vld [vmem:[#allocation3 + $0x154] ss:$12 sps:$4 sm:$0xff]   ;;  %1884 = vst.msk [vmem:[#allocation3 + $0x178] sm:$0xf] %vm890_vm3, %v1820_v62  ;;  %v5057_v0 = vcombine.low %v2646_v26, %v2648_v6  ;;  %v7331_v26 = vpop.f32.mrf.mxu1 }
 0x243   : > { %v2075_v17 = vpop.permute.xlu0 %2074  ;;  %3237 = vmatprep.mubr.bf16.mxu0 %v5836_v48 }
 0x244   : > { %2140 = vst.msk [vmem:[#allocation3 + $0x16c] sm:$0xf] %vm1147_vm4, %v2075_v17  ;;  %v5575_v16 = vpop.f32.mrf.mxu0  ;;  %3238 = vmatmul.mubr.bf16.gmra.mxu0 %v5057_v0  ;;  %v7334_v48 = vpop.f32.mrf.mxu1 }
 0x245   : > { %v1114_v13 = vpop.permute.xlu1 %1113 }
 0x246   : > { %1179 = vst.msk [vmem:[#allocation3 + $0x174] sm:$0xf] %vm1147_vm4, %v1114_v13  ;;  %v5576_v49 = vpop.f32.mrf.mxu0  ;;  %v7336_v17 = vpop.f32.mrf.mxu1 }
 0x247   : > { %v1369_v46 = vpop.permute.xlu0 %1368  ;;  %v5577_v20 = vadd.f32 %v5576_v49, %v5575_v16 }
 0x248   : > { %1435 = vst.msk [vmem:[#allocation3 + $0x168] sm:$0xf] %vm1404_vm5, %v1369_v46  ;;  %v5578_v47 = vpop.f32.mrf.mxu0  ;;  %v7338_v16 = vpop.f32.mrf.mxu1 }
 0x249   : > { %v2077_v53 = vpop.permute.xlu1 %2076  ;;  %v3176_v61 = vadd.f32 %v5577_v20, %v7168_v18 }
 0x24a   : > { %2141 = vst.msk [vmem:[#allocation3 + $0x178] sm:$0xf] %vm1147_vm4, %v2077_v53  ;;  %v5579_v28 = vpop.f32.mrf.mxu0  ;;  %v7341_v20 = vpop.f32.mrf.mxu1 }
 0x24b   : > { %v2331_v54 = vpop.permute.xlu0 %2330  ;;  %v5580_v33 = vadd.f32 %v5579_v28, %v5578_v47  ;;  %v3337_v57 = vadd.f32 %v3336_v9, %v3176_v61 }
 0x24c   : > { %2396 = vst.msk [vmem:[#allocation3 + $0x16c] sm:$0xf] %vm1404_vm5, %v2331_v54  ;;  %v7344_v28 = vpop.f32.mrf.mxu1 }
 0x24d   : > { %v1371_v1 = vpop.permute.xlu1 %1370  ;;  %v3179_v31 = vadd.f32 %v5580_v33, %v7168_v18  ;;  %v3427_v34 = vmax.f32 %v3337_v57, 0.0 }
 0x24e   : > { %1436 = vst.msk [vmem:[#allocation3 + $0x174] sm:$0xf] %vm1404_vm5, %v1371_v1  ;;  %v7346_v57 = vpop.f32.mrf.mxu1 }
 0x24f   : > { %v3340_v32 = vadd.f32 %v3339_v2, %v3179_v31  ;;  %v7351_v31 = vld [vmem:[%s8245_s4] ss:$0 sm:$0xff] }
 0x251   : > { %v3428_v63 = vmax.f32 %v3340_v32, 0.0  ;;  %v2333_v51 = vpop.permute.xlu1 %2332 }
 0x252   : > { %2397 = vst.msk [vmem:[#allocation3 + $0x178] sm:$0xf] %vm1404_vm5, %v2333_v51 }
 0x253   : > { %v3453_v3 = vpack.c.bf16 %v3428_v63, %v3427_v34 }
 0x255   : > { %5735 = vmatprep.mubr.msk.bf16.mxu1 %vm3518_vm6, %v3453_v3  ;;  %v5840_v7 = vld [vmem:[#allocation3 + $0x168] ss:$12 sps:$4 sm:$0xff]  }
 0x259   : > { %v5838_v19 = vld [vmem:[#allocation3 + $0x16c] ss:$12 sps:$4 sm:$0xff]  }
 0x25a   : > { %3245 = vmatprep.mubr.bf16.mxu0 %v5838_v19 }
 0x25b   : > { %3246 = vmatmul.mubr.bf16.gmra.mxu0 %v5840_v7 }
 0x25c   : > { %v5581_v35 = vpop.f32.mrf.mxu0 }
 0x25e   : > { %v5582_v38 = vpop.f32.mrf.mxu0 }
 0x25f   : > { %v5583_v50 = vadd.f32 %v5582_v38, %v5581_v35 }
 0x260   : > { %v5584_v59 = vpop.f32.mrf.mxu0 }
 0x261   : > { %v3184_v29 = vadd.f32 %v5583_v50, %v7168_v18 }
 0x262   : > { %v5585_v36 = vpop.f32.mrf.mxu0 }
 0x263   : > { %v5586_v23 = vadd.f32 %v5585_v36, %v5584_v59  ;;  %v3345_v8 = vadd.f32 %v5693_v5, %v3184_v29 }
 0x265   : > { %v3187_v10 = vadd.f32 %v5586_v23, %v7168_v18  ;;  %v3429_v42 = vmax.f32 %v3345_v8, 0.0 }
 0x267   : > { %v3348_v43 = vadd.f32 %v5694_v21, %v3187_v10 }
 0x269   : > { %v3430_v58 = vmax.f32 %v3348_v43, 0.0 }
 0x26b   : > { %v3454_v44 = vpack.c.bf16 %v3430_v58, %v3429_v42 }
 0x26d   : > { %5736 = vmatmul.mubr.msk.bf16.gmra.mxu1 %vm3518_vm6, %v3454_v44 }
 0x274   : > { %v5587_v4 = vpop.f32.mrf.mxu0 }
 0x276   : > { %v5588_v55 = vpop.f32.mrf.mxu0 }
 0x277   : > { %v5589_v15 = vadd.f32 %v5588_v55, %v5587_v4 }
 0x278   : > { %v5590_v56 = vpop.f32.mrf.mxu0 }
 0x279   : > { %v3192_v25 = vadd.f32 %v5589_v15, %v7168_v18 }
 0x27a   : > { %v5591_v41 = vpop.f32.mrf.mxu0 }
 0x27b   : > { %v5592_v11 = vadd.f32 %v5591_v41, %v5590_v56  ;;  %v3353_v52 = vadd.f32 %v3352_v37, %v3192_v25 }
 0x27d   : > { %v3195_v22 = vadd.f32 %v5592_v11, %v7168_v18  ;;  %v3431_v5 = vmax.f32 %v3353_v52, 0.0 }
 0x27f   : > { %v3356_v40 = vadd.f32 %v3355_v60, %v3195_v22 }
 0x281   : > { %v3432_v62 = vmax.f32 %v3356_v40, 0.0 }
 0x283   : > { %v3455_v6 = vpack.c.bf16 %v3432_v62, %v3431_v5 }
 0x285   : > { %5739 = vmatprep.mubr.msk.bf16.mxu1 %vm3518_vm6, %v3455_v6 }
 0x28c   : > { %v5593_v0 = vpop.f32.mrf.mxu0 }
 0x28e   : > { %v5594_v9 = vpop.f32.mrf.mxu0 }
 0x28f   : > { %v5595_v13 = vadd.f32 %v5594_v9, %v5593_v0  ;;  %v4017_v9 = vld [vmem:[#allocation4 + $0x8] sm:$0xff] }
 0x290   : > { %v5596_v49 = vpop.f32.mrf.mxu0 }
 0x291   : > { %v3200_v46 = vadd.f32 %v5595_v13, %v7168_v18 }
 0x292   : > { %v5597_v47 = vpop.f32.mrf.mxu0 }
 0x293   : > { %v5598_v21 = vadd.f32 %v5597_v47, %v5596_v49  ;;  %v3361_v53 = vadd.f32 %v5697_v30, %v3200_v46 }
 0x295   : > { %v3203_v61 = vadd.f32 %v5598_v21, %v7168_v18  ;;  %v3433_v33 = vmax.f32 %v3361_v53, 0.0  ;;  %v3954_v21 = vld [vmem:[#allocation4 + $0xf] sm:$0xff] }
 0x297   : > { %v3364_v54 = vadd.f32 %v5698_v24, %v3203_v61 }
 0x299   : > { %v3434_v2 = vmax.f32 %v3364_v54, 0.0 }
 0x29b   : > { %v3456_v1 = vpack.c.bf16 %v3434_v2, %v3433_v33  ;;  %v4081_v33 = vld [vmem:[#allocation4 + $0x9] sm:$0xff] }
 0x29c   : > { %v4018_v2 = vld [vmem:[#allocation4 + $0x10] sm:$0xff] }
 0x29d   : > { %v5725_v32 = vpop.f32.mrf.mxu1  ;;  %5740 = vmatmul.mubr.msk.bf16.gmra.mxu1 %vm3518_vm6, %v3456_v1 }
 0x29e   : > { %v7355_v34 = vadd.f32 %v5725_v32, %v7351_v31 }
 0x29f   : > { %v3601_v63 = vpop.f32.mrf.mxu1 }
 0x2a0   : > { %v5122_v51 = vmul.f32 -1.442695, %v7355_v34  ;;  %v7359_v3 = vadd.f32 %v7351_v31, %v3601_v63 }
 0x2a1   : > { %v5726_v19 = vpop.f32.mrf.mxu1 }
 0x2a2   : > { %5841 = vpow2.f32 %v5122_v51  ;;  %v5120_v7 = vmul.f32 -1.442695, %v7359_v3  ;;  %v7363_v35 = vadd.f32 %v5726_v19, %v7351_v31 }
 0x2a3   : > { %v3604_v38 = vpop.f32.mrf.mxu1 }
 0x2a4   : > { %5843 = vpow2.f32 %v5120_v7  ;;  %v5123_v50 = vmul.f32 -1.442695, %v7363_v35  ;;  %v7367_v30 = vadd.f32 %v7351_v31, %v3604_v38  ;;  %v5599_v59 = vpop.f32.mrf.mxu0 }
 0x2a6   : > { %5845 = vpow2.f32 %v5123_v50  ;;  %v5121_v29 = vmul.f32 -1.442695, %v7367_v30  ;;  %v5600_v36 = vpop.f32.mrf.mxu0  ;;  %v4082_v50 = vld [vmem:[#allocation4 + $0x11] sm:$0xff] }
 0x2a7   : > { %v5601_v23 = vadd.f32 %v5600_v36, %v5599_v59 }
 0x2a8   : > { %5847 = vpow2.f32 %v5121_v29  ;;  %v5602_v37 = vpop.f32.mrf.mxu0 }
 0x2a9   : > { %v3208_v8 = vadd.f32 %v5601_v23, %v7168_v18 }
 0x2aa   : > { %v5603_v10 = vpop.f32.mrf.mxu0 }
 0x2ab   : > { %v5604_v43 = vadd.f32 %v5603_v10, %v5602_v37  ;;  %v3369_v24 = vadd.f32 %v7323_v14, %v3208_v8  ;;  %v4562_v10 = vlaneseq }
 0x2ad   : > { %v3211_v42 = vadd.f32 %v5604_v43, %v7168_v18  ;;  %v3435_v55 = vmax.f32 %v3369_v24, 0.0 }
 0x2af   : > { %v5842_v58 = vpop.eup %5841  ;;  %v3372_v44 = vadd.f32 %v3371_v12, %v3211_v42  ;;  %v3953_v12 = vld [vmem:[#allocation4 + $0x7] sm:$0xff] }
 0x2b0   : > { %v3826_v60 = vadd.f32 1.0, %v5842_v58 }
 0x2b1   : > { %v5844_v4 = vpop.eup %5843  ;;  %v3436_v15 = vmax.f32 %v3372_v44, 0.0 }
 0x2b2   : > { %5849 = vrcp.f32 %v3826_v60  ;;  %v3824_v56 = vadd.f32 1.0, %v5844_v4 }
 0x2b3   : > { %v5846_v25 = vpop.eup %5845  ;;  %v3457_v41 = vpack.c.bf16 %v3436_v15, %v3435_v55  ;;  %v7412_v15 = vand.u32 127, %v4562_v10 }
 0x2b4   : > { %5851 = vrcp.f32 %v3824_v56  ;;  %v3827_v11 = vadd.f32 1.0, %v5846_v25 }
 0x2b5   : > { %v5848_v52 = vpop.eup %5847  ;;  %5743 = vmatprep.mubr.msk.bf16.mxu1 %vm3518_vm6, %v3457_v41  ;;  %vm4596_vm7 = vcmp.lt.s32.totalorder %v7412_v15, 8 }
 0x2b6   : > { %5853 = vrcp.f32 %v3827_v11  ;;  %v3825_v22 = vadd.f32 1.0, %v5848_v52 }
 0x2b8   : > { %5855 = vrcp.f32 %v3825_v22 }
 0x2bc   : > { %v5605_v14 = vpop.f32.mrf.mxu0 }
 0x2be   : > { %v5606_v40 = vpop.f32.mrf.mxu0 }
 0x2bf   : > { %v7374_v5 = vpop.eup %5849  ;;  %v5607_v62 = vadd.f32 %v5606_v40, %v5605_v14 }
 0x2c0   : > { %3923 = vst [vmem:[#allocation4 + $0x48] sm:$0xff] %v7374_v5  ;;  %v5608_v6 = vpop.f32.mrf.mxu0 }
 0x2c1   : > { %v7377_v0 = vpop.eup %5851  ;;  %v3216_v13 = vadd.f32 %v5607_v62, %v7168_v18 }
 0x2c2   : > { %v3985_v49 = vmax.f32 %v7377_v0, %v3953_v12  ;;  %3921 = vst [vmem:[#allocation4 + $0x28] sm:$0xff] %v7377_v0  ;;  %v5609_v46 = vpop.f32.mrf.mxu0 }
 0x2c3   : > { %v7382_v47 = vpop.eup %5853  ;;  %v5610_v53 = vadd.f32 %v5609_v46, %v5608_v6  ;;  %v3377_v1 = vadd.f32 %v7321_v45, %v3216_v13 }
 0x2c4   : > { %v4049_v61 = vmax.f32 %v3985_v49, %v4017_v9  ;;  %3924 = vst [vmem:[#allocation4 + $0x50] sm:$0xff] %v7382_v47 }
 0x2c5   : > { %v7385_v54 = vpop.eup %5855  ;;  %v3219_v32 = vadd.f32 %v5610_v53, %v7168_v18  ;;  %v3437_v59 = vmax.f32 %v3377_v1, 0.0 }
 0x2c6   : > { %3922 = vst [vmem:[#allocation4 + $0x30] sm:$0xff] %v7385_v54  ;;  %v3986_v63 = vmax.f32 %v7385_v54, %v3954_v21  ;;  %v4113_v19 = vmax.f32 %v4049_v61, %v4081_v33 }
 0x2c7   : > { %v3380_v51 = vadd.f32 %v7325_v39, %v3219_v32  ;;  %v7403_v42 = vld [vmem:[#allocation4 + $0x47] sm:$0xff] }
 0x2c8   : > { %v4050_v7 = vmax.f32 %v3986_v63, %v4018_v2 }
 0x2c9   : > { %v7392_v38 = vld [vmem:[#allocation4 + $0x27] sm:$0xff]  ;;  %v3438_v29 = vmax.f32 %v3380_v51, 0.0 }
 0x2ca   : > { %v4177_v36 = vmax.f32 %v4113_v19, %v7392_v38  ;;  %v4114_v37 = vmax.f32 %v4050_v7, %v4082_v50  ;;  %v7449_v19 = vld [vmem:[%s8243_s2] ss:$0 sm:$0xff] }
 0x2cb   : > { %v3458_v23 = vpack.c.bf16 %v3438_v29, %v3437_v59  ;;  %v7420_v22 = vld [vmem:[#allocation4 + $0x4f] sm:$0xff] }
 0x2cc   : > { %v4241_v45 = vmax.f32 %v4177_v36, %v7377_v0  ;;  %v7422_v14 = vld [vmem:[#allocation4 + $0x49] sm:$0xff]  ;;  %v7437_v61 = vld [vmem:[#allocation4 + $0x51] sm:$0xff] }
 0x2cd   : > { %v7396_v18 = vld [vmem:[#allocation4 + $0x2f] sm:$0xff]  ;;  %v5729_v43 = vpop.f32.mrf.mxu1  ;;  %5744 = vmatmul.mubr.msk.bf16.gmra.mxu1 %vm3518_vm6, %v3458_v23 }
 0x2ce   : > { %v7398_v8 = vld [vmem:[#allocation4 + $0x29] sm:$0xff]  ;;  %v4178_v39 = vmax.f32 %v4114_v37, %v7396_v18  ;;  %v7406_v58 = vadd.f32 %v5729_v43, %v7351_v31  ;;  %v7410_v55 = vld [vmem:[#allocation4 + $0x31] sm:$0xff] }
 0x2cf   : > { %v4305_v24 = vmax.f32 %v4241_v45, %v7398_v8  ;;  %v3617_v44 = vpop.f32.mrf.mxu1 }
 0x2d0   : > { %v4242_v60 = vmax.f32 %v4178_v39, %v7385_v54  ;;  %v5126_v56 = vmul.f32 -1.442695, %v7406_v58  ;;  %v7416_v25 = vadd.f32 %v7351_v31, %v3617_v44 }
 0x2d1   : > { %v4370_v4 = vmax.f32 %v4305_v24, %v7403_v42  ;;  %v5730_v41 = vpop.f32.mrf.mxu1 }
 0x2d2   : > { %v4306_v11 = vmax.f32 %v4242_v60, %v7410_v55  ;;  %5857 = vpow2.f32 %v5126_v56  ;;  %v5124_v40 = vmul.f32 -1.442695, %v7416_v25  ;;  %v7426_v12 = vadd.f32 %v5730_v41, %v7351_v31 }
 0x2d3   : > { %v4434_v52 = vmax.f32 %v4370_v4, %v7374_v5  ;;  %v3620_v62 = vpop.f32.mrf.mxu1  ;;  %v3987_v56 = vmax.f32 %v7374_v5, %v7392_v38 }
 0x2d4   : > { %v4371_v6 = vmax.f32 %v4306_v11, %v7420_v22  ;;  %v5611_v13 = vpop.f32.mrf.mxu0  ;;  %5859 = vpow2.f32 %v5124_v40  ;;  %v5127_v49 = vmul.f32 -1.442695, %v7426_v12  ;;  %v7433_v46 = vadd.f32 %v7351_v31, %v3620_v62 }
 0x2d5   : > { %v4498_v9 = vmax.f32 %v4434_v52, %v7422_v14  ;;  %v3988_v11 = vmax.f32 %v7382_v47, %v7396_v18 }
 0x2d6   : > { %v4435_v21 = vmax.f32 %v4371_v6, %v7382_v47  ;;  %v5612_v53 = vpop.f32.mrf.mxu0  ;;  %5861 = vpow2.f32 %v5127_v49  ;;  %v5125_v2 = vmul.f32 -1.442695, %v7433_v46 }
 0x2d7   : > { %vm4530_vm8 = vcmp.le.f32.partialorder %v4498_v9, %v7377_v0  ;;  %v5613_v1 = vadd.f32 %v5612_v53, %v5611_v13  ;;  %v4052_v62 = vmax.f32 %v3988_v11, %v7385_v54 }
 0x2d8   : > { %v4564_v33 = vsel %vm4530_vm8, %v7377_v0, 0.0  ;;  %v4499_v32 = vmax.f32 %v4435_v21, %v7437_v61  ;;  %v5614_v51 = vpop.f32.mrf.mxu0  ;;  %5863 = vpow2.f32 %v5125_v2 }
 0x2d9   : > { %v4597_v63 = vsel %vm4596_vm7, %v4564_v33, %v7359_v3  ;;  %v3224_v7 = vadd.f32 %v7449_v19, %v5613_v1 }
 0x2da   : > { %4629 = vst [vmem:[%s6029_s28] sm:$0xff] %v4597_v63  ;;  %vm4531_vm9 = vcmp.le.f32.partialorder %v4499_v32, %v7385_v54  ;;  %v5615_v50 = vpop.f32.mrf.mxu0 }
 0x2db   : > { %v4565_v59 = vsel %vm4531_vm9, %v7385_v54, 0.0  ;;  %v5616_v29 = vadd.f32 %v5615_v50, %v5614_v51  ;;  %v3385_v36 = vadd.f32 %v7331_v26, %v3224_v7 }
 0x2dc   : > { %v4598_v3 = vsel %vm4596_vm7, %v4565_v59, %v7367_v30 }
 0x2dd   : > { %4630 = vst [vmem:[%s6029_s28 + $0x8] sm:$0xff] %v4598_v3  ;;  %v3227_v23 = vadd.f32 %v7449_v19, %v5616_v29  ;;  %v3439_v43 = vmax.f32 %v3385_v36, 0.0 }
 0x2df   : > { %v3388_v37 = vadd.f32 %v7336_v17, %v3227_v23  ;;  %v5858_v45 = vpop.eup %5857  ;;  %v4051_v17 = vmax.f32 %v3987_v56, %v7377_v0  ;;  %v4116_v0 = vmax.f32 %v4052_v62, %v7410_v55 }
 0x2e0   : > { %v3830_v10 = vadd.f32 1.0, %v5858_v45 }
 0x2e1   : > { %v3440_v39 = vmax.f32 %v3388_v37, 0.0  ;;  %v5860_v24 = vpop.eup %5859  ;;  %v4115_v40 = vmax.f32 %v4051_v17, %v7398_v8  ;;  %v4180_v63 = vmax.f32 %v4116_v0, %v7420_v22 }
 0x2e2   : > { %5865 = vrcp.f32 %v3830_v10  ;;  %v3828_v44 = vadd.f32 1.0, %v5860_v24 }
 0x2e3   : > { %v3459_v60 = vpack.c.bf16 %v3440_v39, %v3439_v43  ;;  %v5862_v4 = vpop.eup %5861  ;;  %v4179_v49 = vmax.f32 %v4115_v40, %v7403_v42  ;;  %v4244_v36 = vmax.f32 %v4180_v63, %v7382_v47 }
 0x2e4   : > { %5867 = vrcp.f32 %v3828_v44  ;;  %v3831_v30 = vadd.f32 1.0, %v5862_v4 }
 0x2e5   : > { %5747 = vmatprep.mubr.msk.bf16.mxu1 %vm3518_vm6, %v3459_v60  ;;  %v5864_v26 = vpop.eup %5863  ;;  %v4243_v2 = vmax.f32 %v4179_v49, %v7374_v5  ;;  %v4308_v39 = vmax.f32 %v4244_v36, %v7437_v61 }
 0x2e6   : > { %5869 = vrcp.f32 %v3831_v30  ;;  %v3829_v41 = vadd.f32 1.0, %v5864_v26 }
 0x2e7   : > { %v4307_v50 = vmax.f32 %v4243_v2, %v7422_v14 }
 0x2e8   : > { %5871 = vrcp.f32 %v3829_v41 }
 0x2ec   : > { %v5617_v52 = vpop.f32.mrf.mxu0 }
 0x2ee   : > { %v5618_v6 = vpop.f32.mrf.mxu0 }
 0x2ef   : > { %v5619_v38 = vadd.f32 %v5618_v6, %v5617_v52  ;;  %v7469_v9 = vpop.eup %5865 }
 0x2f0   : > { %v5620_v13 = vpop.f32.mrf.mxu0  ;;  %3927 = vst [vmem:[#allocation4 + $0x88] sm:$0xff] %v7469_v9 }
 0x2f1   : > { %v7473_v21 = vpop.eup %5867  ;;  %v3232_v18 = vadd.f32 %v7449_v19, %v5619_v38 }
 0x2f2   : > { %v5621_v53 = vpop.f32.mrf.mxu0  ;;  %v3989_v8 = vmax.f32 %v7473_v21, %v7403_v42  ;;  %3925 = vst [vmem:[#allocation4 + $0x68] sm:$0xff] %v7473_v21 }
 0x2f3   : > { %v5622_v54 = vadd.f32 %v5621_v53, %v5620_v13  ;;  %v7480_v33 = vpop.eup %5869  ;;  %v3393_v51 = vadd.f32 %v7329_v27, %v3232_v18 }
 0x2f4   : > { %v4053_v1 = vmax.f32 %v3989_v8, %v7374_v5  ;;  %3928 = vst [vmem:[#allocation4 + $0x90] sm:$0xff] %v7480_v33 }
 0x2f5   : > { %v3235_v32 = vadd.f32 %v7449_v19, %v5622_v54  ;;  %v7486_v55 = vpop.eup %5871  ;;  %v3441_v37 = vmax.f32 %v3393_v51, 0.0 }
 0x2f6   : > { %3926 = vst [vmem:[#allocation4 + $0x70] sm:$0xff] %v7486_v55  ;;  %v3990_v42 = vmax.f32 %v7486_v55, %v7420_v22  ;;  %v4117_v59 = vmax.f32 %v4053_v1, %v7422_v14 }
 0x2f7   : > { %v3396_v7 = vadd.f32 %v7334_v48, %v3235_v32  ;;  %v7516_v26 = vld [vmem:[#allocation4 + $0x87] sm:$0xff] }
 0x2f8   : > { %v4054_v29 = vmax.f32 %v3990_v42, %v7382_v47 }
 0x2f9   : > { %v3442_v3 = vmax.f32 %v3396_v7, 0.0  ;;  %v7498_v23 = vld [vmem:[#allocation4 + $0x67] sm:$0xff] }
 0x2fa   : > { %v4181_v27 = vmax.f32 %v4117_v59, %v7498_v23  ;;  %v4372_v45 = vmax.f32 %v4307_v50, %v7498_v23  ;;  %v4118_v22 = vmax.f32 %v4054_v29, %v7437_v61 }
 0x2fb   : > { %v3460_v10 = vpack.c.bf16 %v3442_v3, %v3441_v37  ;;  %v7537_v8 = vld [vmem:[#allocation4 + $0x8f] sm:$0xff] }
 0x2fc   : > { %v4245_v48 = vmax.f32 %v4181_v27, %v7473_v21  ;;  %v4436_v43 = vmax.f32 %v4372_v45, %v7473_v21  ;;  %v7539_v54 = vld [vmem:[#allocation4 + $0x89] sm:$0xff]  ;;  %v7562_v36 = vld [vmem:[#allocation4 + $0x91] sm:$0xff] }
 0x2fd   : > { %v5733_v14 = vpop.f32.mrf.mxu1  ;;  %v7506_v24 = vld [vmem:[#allocation4 + $0x6f] sm:$0xff]  ;;  %5748 = vmatmul.mubr.msk.bf16.gmra.mxu1 %vm3518_vm6, %v3460_v10 }
 0x2fe   : > { %v7508_v44 = vld [vmem:[#allocation4 + $0x69] sm:$0xff]  ;;  %v7511_v60 = vadd.f32 %v5733_v14, %v7351_v31  ;;  %v4182_v4 = vmax.f32 %v4118_v22, %v7506_v24  ;;  %v4373_v41 = vmax.f32 %v4308_v39, %v7506_v24  ;;  %v7526_v6 = vld [vmem:[#allocation4 + $0x71] sm:$0xff] }
 0x2ff   : > { %v4309_v56 = vmax.f32 %v4245_v48, %v7508_v44  ;;  %v3633_v30 = vpop.f32.mrf.mxu1  ;;  %v4500_v61 = vmax.f32 %v4436_v43, %v7508_v44 }
 0x300   : > { %v5130_v17 = vmul.f32 -1.442695, %v7511_v60  ;;  %v7522_v11 = vadd.f32 %v7351_v31, %v3633_v30  ;;  %v4246_v52 = vmax.f32 %v4182_v4, %v7486_v55  ;;  %v4437_v38 = vmax.f32 %v4373_v41, %v7486_v55 }
 0x301   : > { %v4374_v40 = vmax.f32 %v4309_v56, %v7516_v26  ;;  %v5734_v62 = vpop.f32.mrf.mxu1  ;;  %vm7530_vm10 = vcmp.le.f32.partialorder %v4500_v61, %v7374_v5 }
 0x302   : > { %5873 = vpow2.f32 %v5130_v17  ;;  %v5128_v49 = vmul.f32 -1.442695, %v7522_v11  ;;  %v4310_v0 = vmax.f32 %v4246_v52, %v7526_v6  ;;  %v4501_v2 = vmax.f32 %v4437_v38, %v7526_v6 }
 0x303   : > { %v4438_v18 = vmax.f32 %v4374_v40, %v7469_v9  ;;  %v3636_v53 = vpop.f32.mrf.mxu1  ;;  %v4566_v1 = vsel %vm7530_vm10, %v7374_v5, 0.0  ;;  %v7546_v32 = vadd.f32 %v5734_v62, %v7351_v31  ;;  %v3991_v38 = vmax.f32 %v7469_v9, %v7498_v23 }
 0x304   : > { %5875 = vpow2.f32 %v5128_v49  ;;  %v5623_v63 = vpop.f32.mrf.mxu0  ;;  %v4375_v51 = vmax.f32 %v4310_v0, %v7537_v8  ;;  %vm4533_vm11 = vcmp.le.f32.partialorder %v4501_v2, %v7382_v47  ;;  %v4599_v7 = vsel %vm4596_vm7, %v4566_v1, %v7355_v34 }
 0x305   : > { %v4502_v42 = vmax.f32 %v4438_v18, %v7539_v54  ;;  %v5131_v50 = vmul.f32 -1.442695, %v7546_v32  ;;  %v7556_v5 = vadd.f32 %v7351_v31, %v3636_v53  ;;  %v4567_v3 = vsel %vm4533_vm11, %v7382_v47, 0.0  ;;  %4631 = vst [vmem:[%s6029_s28 + $0x10] sm:$0xff] %v4599_v7 }
 0x306   : > { %v5624_v59 = vpop.f32.mrf.mxu0  ;;  %v4439_v29 = vmax.f32 %v4375_v51, %v7480_v33  ;;  %v4600_v34 = vsel %vm4596_vm7, %v4567_v3, %v7363_v35  ;;  %v4055_v49 = vmax.f32 %v3991_v38, %v7473_v21  ;;  %v3992_v0 = vmax.f32 %v7480_v33, %v7506_v24 }
 0x307   : > { %vm4534_vm12 = vcmp.le.f32.partialorder %v4502_v42, %v7473_v21  ;;  %5877 = vpow2.f32 %v5131_v50  ;;  %v5129_v27 = vmul.f32 -1.442695, %v7556_v5  ;;  %4632 = vst [vmem:[%s6029_s28 + $0x18] sm:$0xff] %v4600_v34  ;;  %v5625_v22 = vadd.f32 %v5624_v59, %v5623_v63 }
 0x308   : > { %v4568_v37 = vsel %vm4534_vm12, %v7473_v21, 0.0  ;;  %v5626_v45 = vpop.f32.mrf.mxu0  ;;  %v4503_v10 = vmax.f32 %v4439_v29, %v7562_v36  ;;  %v4119_v18 = vmax.f32 %v4055_v49, %v7508_v44  ;;  %v4056_v23 = vmax.f32 %v3992_v0, %v7486_v55 }
 0x309   : > { %v4601_v47 = vsel %vm4596_vm7, %v4568_v37, %v7416_v25  ;;  %5879 = vpow2.f32 %v5129_v27  ;;  %v3240_v35 = vadd.f32 %v7449_v19, %v5625_v22 }
 0x30a   : > { %4633 = vst [vmem:[%s6029_s28 + $0x20] sm:$0xff] %v4601_v47  ;;  %v5627_v48 = vpop.f32.mrf.mxu0  ;;  %vm4535_vm13 = vcmp.le.f32.partialorder %v4503_v10, %v7486_v55  ;;  %v4183_v51 = vmax.f32 %v4119_v18, %v7516_v26  ;;  %v4120_v50 = vmax.f32 %v4056_v23, %v7526_v6 }
 0x30b   : > { %v5628_v43 = vadd.f32 %v5627_v48, %v5626_v45  ;;  %v4569_v14 = vsel %vm4535_vm13, %v7486_v55, 0.0  ;;  %v3401_v4 = vadd.f32 %v7341_v20, %v3240_v35 }
 0x30c   : > { %v4602_v39 = vsel %vm4596_vm7, %v4569_v14, %v7433_v46  ;;  %v4247_v55 = vmax.f32 %v4183_v51, %v7469_v9 }
 0x30d   : > { %v3243_v25 = vadd.f32 %v7449_v19, %v5628_v43  ;;  %4634 = vst [vmem:[%s6029_s28 + $0x28] sm:$0xff] %v4602_v39  ;;  %v3443_v17 = vmax.f32 %v3401_v4, 0.0 }
 0x30e   : > { %v4311_v6 = vmax.f32 %v4247_v55, %v7539_v54 }
 0x30f   : > { %v5874_v56 = vpop.eup %5873  ;;  %v3404_v30 = vadd.f32 %v7346_v57, %v3243_v25 }
 0x310   : > { %v3834_v41 = vadd.f32 1.0, %v5874_v56 }
 0x311   : > { %v5876_v61 = vpop.eup %5875  ;;  %v3444_v52 = vmax.f32 %v3404_v30, 0.0 }
 0x312   : > { %5881 = vrcp.f32 %v3834_v41  ;;  %v3832_v40 = vadd.f32 1.0, %v5876_v61 }
 0x313   : > { %v3461_v62 = vpack.c.bf16 %v3444_v52, %v3443_v17 }
 0x314   : > { %5883 = vrcp.f32 %v3832_v40  ;;  %v5878_v46 = vpop.eup %5877 }
 0x315   : > { %5751 = vmatprep.mubr.msk.bf16.mxu1 %vm3518_vm6, %v3461_v62  ;;  %v3835_v20 = vadd.f32 1.0, %v5878_v46 }
 0x316   : > { %v5880_v13 = vpop.eup %5879 }
 0x317   : > { %5885 = vrcp.f32 %v3835_v20  ;;  %v3833_v57 = vadd.f32 1.0, %v5880_v13 }
 0x319   : > { %5887 = vrcp.f32 %v3833_v57 }
 0x31b   : > { %v5629_v53 = vpop.f32.mrf.mxu0 }
 0x31d   : > { %v5630_v2 = vpop.f32.mrf.mxu0 }
 0x31e   : > { %v5631_v63 = vadd.f32 %v5630_v2, %v5629_v53 }
 0x31f   : > { %v7592_v1 = vpop.eup %5881  ;;  %v5632_v21 = vpop.f32.mrf.mxu0 }
 0x320   : > { %3931 = vst [vmem:[#allocation4 + $0xc8] sm:$0xff] %v7592_v1  ;;  %v3248_v7 = vadd.f32 %v7449_v19, %v5631_v63 }
 0x321   : > { %v7597_v42 = vpop.eup %5883  ;;  %v5633_v44 = vpop.f32.mrf.mxu0 }
 0x322   : > { %v3993_v24 = vmax.f32 %v7597_v42, %v7516_v26  ;;  %3929 = vst [vmem:[#allocation4 + $0xa8] sm:$0xff] %v7597_v42  ;;  %v5634_v59 = vadd.f32 %v5633_v44, %v5632_v21  ;;  %v3409_v37 = vadd.f32 %v7338_v16, %v3248_v7  ;;  %v4184_v26 = vmax.f32 %v4120_v50, %v7537_v8 }
 0x324   : > { %v4057_v29 = vmax.f32 %v3993_v24, %v7469_v9  ;;  %v7606_v3 = vpop.eup %5885  ;;  %v3251_v34 = vadd.f32 %v7449_v19, %v5634_v59  ;;  %v3445_v19 = vmax.f32 %v3409_v37, 0.0 }
 0x325   : > { %3932 = vst [vmem:[#allocation4 + $0xd0] sm:$0xff] %v7606_v3 }
 0x326   : > { %v7611_v27 = vpop.eup %5887  ;;  %v3412_v45 = vadd.f32 %v7344_v28, %v3251_v34  ;;  %v4121_v10 = vmax.f32 %v4057_v29, %v7539_v54  ;;  %v4248_v28 = vmax.f32 %v4184_v26, %v7480_v33 }
 0x327   : > { %3930 = vst [vmem:[#allocation4 + $0xb0] sm:$0xff] %v7611_v27  ;;  %v3994_v47 = vmax.f32 %v7611_v27, %v7537_v8  ;;  %v7640_v40 = vld [vmem:[#allocation4 + $0xc7] sm:$0xff] }
 0x328   : > { %v3446_v22 = vmax.f32 %v3412_v45, 0.0  ;;  %v4312_v56 = vmax.f32 %v4248_v28, %v7562_v36 }
 0x329   : > { %v7620_v16 = vld [vmem:[#allocation4 + $0xa7] sm:$0xff]  ;;  %v4058_v48 = vmax.f32 %v3994_v47, %v7480_v33 }
 0x32a   : > { %v4185_v35 = vmax.f32 %v4121_v10, %v7620_v16  ;;  %v4376_v43 = vmax.f32 %v4311_v6, %v7620_v16  ;;  %v3462_v14 = vpack.c.bf16 %v3446_v22, %v3445_v19 }
 0x32b   : > { %v4122_v8 = vmax.f32 %v4058_v48, %v7562_v36 }
 0x32c   : > { %v4249_v54 = vmax.f32 %v4185_v35, %v7597_v42  ;;  %v4440_v39 = vmax.f32 %v4376_v43, %v7597_v42  ;;  %5752 = vmatmul.mubr.msk.bf16.gmra.mxu1 %vm3518_vm6, %v3462_v14  ;;  %v7661_v51 = vld [vmem:[#allocation4 + $0xcf] sm:$0xff] }
 0x32d   : > { %v5737_v4 = vpop.f32.mrf.mxu1  ;;  %v7663_v21 = vld [vmem:[#allocation4 + $0xc9] sm:$0xff]  ;;  %v7686_v26 = vld [vmem:[#allocation4 + $0xd1] sm:$0xff] }
 0x32e   : > { %v7631_v25 = vadd.f32 %v5737_v4, %v7351_v31  ;;  %v7634_v30 = vld [vmem:[#allocation4 + $0xaf] sm:$0xff] }
 0x32f   : > { %v7636_v41 = vld [vmem:[#allocation4 + $0xa9] sm:$0xff]  ;;  %v3649_v61 = vpop.f32.mrf.mxu1  ;;  %v4186_v17 = vmax.f32 %v4122_v8, %v7634_v30  ;;  %v4377_v62 = vmax.f32 %v4312_v56, %v7634_v30  ;;  %v7650_v57 = vld [vmem:[#allocation4 + $0xb1] sm:$0xff] }
 0x330   : > { %v4313_v52 = vmax.f32 %v4249_v54, %v7636_v41  ;;  %v4504_v38 = vmax.f32 %v4440_v39, %v7636_v41  ;;  %v5134_v46 = vmul.f32 -1.442695, %v7631_v25  ;;  %v7646_v20 = vadd.f32 %v7351_v31, %v3649_v61 }
 0x331   : > { %v5738_v36 = vpop.f32.mrf.mxu1  ;;  %v4250_v13 = vmax.f32 %v4186_v17, %v7611_v27  ;;  %v4441_v0 = vmax.f32 %v4377_v62, %v7611_v27 }
 0x332   : > { %v4378_v49 = vmax.f32 %v4313_v52, %v7640_v40  ;;  %vm7654_vm14 = vcmp.le.f32.partialorder %v4504_v38, %v7469_v9  ;;  %5889 = vpow2.f32 %v5134_v46  ;;  %v5132_v53 = vmul.f32 -1.442695, %v7646_v20 }
 0x333   : > { %v4314_v2 = vmax.f32 %v4250_v13, %v7650_v57  ;;  %v3652_v63 = vpop.f32.mrf.mxu1  ;;  %v4505_v7 = vmax.f32 %v4441_v0, %v7650_v57  ;;  %v4570_v24 = vsel %vm7654_vm14, %v7469_v9, 0.0  ;;  %v7670_v44 = vadd.f32 %v5738_v36, %v7351_v31 }
 0x334   : > { %v4442_v23 = vmax.f32 %v4378_v49, %v7592_v1  ;;  %5891 = vpow2.f32 %v5132_v53  ;;  %v4603_v55 = vsel %vm4596_vm7, %v4570_v24, %v7406_v58  ;;  %v7680_v9 = vadd.f32 %v7351_v31, %v3652_v63 }
 0x335   : > { %v4379_v50 = vmax.f32 %v4314_v2, %v7661_v51  ;;  %vm4537_vm15 = vcmp.le.f32.partialorder %v4505_v7, %v7480_v33  ;;  %v5135_v29 = vmul.f32 -1.442695, %v7670_v44  ;;  %4635 = vst [vmem:[%s6029_s28 + $0x30] sm:$0xff] %v4603_v55 }
 0x336   : > { %v4506_v59 = vmax.f32 %v4442_v23, %v7663_v21  ;;  %v4571_v34 = vsel %vm4537_vm15, %v7480_v33, 0.0  ;;  %v5133_v6 = vmul.f32 -1.442695, %v7680_v9 }
 0x337   : > { %v4443_v37 = vmax.f32 %v4379_v50, %v7606_v3  ;;  %v4604_v58 = vsel %vm4596_vm7, %v4571_v34, %v7426_v12  ;;  %5893 = vpow2.f32 %v5135_v29 }
 0x338   : > { %vm4538_vm0 = vcmp.le.f32.partialorder %v4506_v59, %v7597_v42  ;;  %4636 = vst [vmem:[%s6029_s28 + $0x38] sm:$0xff] %v4604_v58  ;;  %5895 = vpow2.f32 %v5133_v6 }
 0x339   : > { %v4572_v45 = vsel %vm4538_vm0, %v7597_v42, 0.0  ;;  %v4507_v10 = vmax.f32 %v4443_v37, %v7686_v26 }
 0x33a   : > { %v4605_v47 = vsel %vm4596_vm7, %v4572_v45, %v7522_v11  ;;  %v3995_v11 = vmax.f32 %v7592_v1, %v7620_v16 }
 0x33b   : > { %4637 = vst [vmem:[%s6029_s28 + $0x40] sm:$0xff] %v4605_v47  ;;  %vm4539_vm1 = vcmp.le.f32.partialorder %v4507_v10, %v7611_v27 }
 0x33c   : > { %v4573_v33 = vsel %vm4539_vm1, %v7611_v27, 0.0  ;;  %v4059_v54 = vmax.f32 %v3995_v11, %v7597_v42 }
 0x33d   : > { %v4606_v12 = vsel %vm4596_vm7, %v4573_v33, %v7556_v5  ;;  %v3996_v5 = vmax.f32 %v7606_v3, %v7634_v30 }
 0x33e   : > { %4638 = vst [vmem:[%s6029_s28 + $0x48] sm:$0xff] %v4606_v12  ;;  %v4123_v4 = vmax.f32 %v4059_v54, %v7636_v41 }
 0x33f   : > { %v5890_v19 = vpop.eup %5889  ;;  %v4060_v56 = vmax.f32 %v3996_v5, %v7611_v27 }
 0x340   : > { %v3838_v22 = vadd.f32 1.0, %v5890_v19  ;;  %v4187_v16 = vmax.f32 %v4123_v4, %v7640_v40 }
 0x341   : > { %v5892_v48 = vpop.eup %5891  ;;  %v4124_v17 = vmax.f32 %v4060_v56, %v7650_v57 }
 0x342   : > { %5897 = vrcp.f32 %v3838_v22  ;;  %v3836_v35 = vadd.f32 1.0, %v5892_v48  ;;  %v4251_v30 = vmax.f32 %v4187_v16, %v7592_v1 }
 0x343   : > { %v4188_v62 = vmax.f32 %v4124_v17, %v7661_v51 }
 0x344   : > { %5899 = vrcp.f32 %v3836_v35  ;;  %v5894_v43 = vpop.eup %5893  ;;  %v4315_v38 = vmax.f32 %v4251_v30, %v7663_v21 }
 0x345   : > { %v3839_v28 = vadd.f32 1.0, %v5894_v43  ;;  %v5896_v14 = vpop.eup %5895  ;;  %v4252_v0 = vmax.f32 %v4188_v62, %v7606_v3 }
 0x346   : > { %v3837_v39 = vadd.f32 1.0, %v5896_v14 }
 0x347   : > { %5901 = vrcp.f32 %v3839_v28 }
 0x348   : > { %5903 = vrcp.f32 %v3837_v39 }
 0x34f   : > { %v7711_v8 = vpop.eup %5897 }
 0x350   : > { %3935 = vst [vmem:[#allocation4 + $0x108] sm:$0xff] %v7711_v8 }
 0x351   : > { %v7716_v61 = vpop.eup %5899 }
 0x352   : > { %v3997_v42 = vmax.f32 %v7716_v61, %v7640_v40  ;;  %3933 = vst [vmem:[#allocation4 + $0xe8] sm:$0xff] %v7716_v61 }
 0x354   : > { %v4061_v41 = vmax.f32 %v3997_v42, %v7592_v1  ;;  %v7724_v52 = vpop.eup %5901 }
 0x355   : > { %3936 = vst [vmem:[#allocation4 + $0x110] sm:$0xff] %v7724_v52  ;;  %v7727_v27 = vpop.eup %5903 }
 0x356   : > { %v4125_v40 = vmax.f32 %v4061_v41, %v7663_v21  ;;  %3934 = vst [vmem:[#allocation4 + $0xf0] sm:$0xff] %v7727_v27  ;;  %v3998_v46 = vmax.f32 %v7727_v27, %v7661_v51  ;;  %v4316_v21 = vmax.f32 %v4252_v0, %v7686_v26 }
 0x357   : > { %v7758_v34 = vld [vmem:[#allocation4 + $0x107] sm:$0xff] }
 0x358   : > { %v4062_v13 = vmax.f32 %v3998_v46, %v7606_v3 }
 0x359   : > { %v7735_v36 = vld [vmem:[#allocation4 + $0xe7] sm:$0xff] }
 0x35a   : > { %v4189_v49 = vmax.f32 %v4125_v40, %v7735_v36  ;;  %v4380_v57 = vmax.f32 %v4315_v38, %v7735_v36  ;;  %v4126_v63 = vmax.f32 %v4062_v13, %v7686_v26  ;;  %v3999_v46 = vmax.f32 %v7711_v8, %v7735_v36 }
 0x35c   : > { %v4253_v18 = vmax.f32 %v4189_v49, %v7716_v61  ;;  %v4444_v2 = vmax.f32 %v4380_v57, %v7716_v61  ;;  %v7774_v35 = vld [vmem:[#allocation4 + $0x10f] sm:$0xff]  ;;  %v4063_v57 = vmax.f32 %v3999_v46, %v7716_v61 }
 0x35d   : > { %v5741_v53 = vpop.f32.mrf.mxu1  ;;  %v7748_v7 = vld [vmem:[#allocation4 + $0xef] sm:$0xff] }
 0x35e   : > { %v7744_v23 = vadd.f32 %v5741_v53, %v7351_v31  ;;  %v7750_v24 = vld [vmem:[#allocation4 + $0xe9] sm:$0xff]  ;;  %v4190_v55 = vmax.f32 %v4126_v63, %v7748_v7  ;;  %v4381_v45 = vmax.f32 %v4316_v21, %v7748_v7  ;;  %v7765_v33 = vld [vmem:[#allocation4 + $0xf1] sm:$0xff] }
 0x35f   : > { %v3665_v51 = vpop.f32.mrf.mxu1  ;;  %v4317_v29 = vmax.f32 %v4253_v18, %v7750_v24  ;;  %v4508_v26 = vmax.f32 %v4444_v2, %v7750_v24  ;;  %v7776_v11 = vld [vmem:[#allocation4 + $0x109] sm:$0xff]  ;;  %v4288_v16 = vld [vmem:[#allocation4 + $0x111] sm:$0xff]  ;;  %v4127_v18 = vmax.f32 %v4063_v57, %v7750_v24 }
 0x360   : > { %v5138_v50 = vmul.f32 -1.442695, %v7744_v23  ;;  %v7754_v59 = vadd.f32 %v7351_v31, %v3665_v51  ;;  %v4254_v6 = vmax.f32 %v4190_v55, %v7727_v27  ;;  %v4445_v12 = vmax.f32 %v4381_v45, %v7727_v27 }
 0x361   : > { %v5742_v37 = vpop.f32.mrf.mxu1  ;;  %v4382_v10 = vmax.f32 %v4317_v29, %v7758_v34  ;;  %vm4540_vm2 = vcmp.le.f32.partialorder %v4508_v26, %v7592_v1  ;;  %v4191_v36 = vmax.f32 %v4127_v18, %v7758_v34 }
 0x362   : > { %5905 = vpow2.f32 %v5138_v50  ;;  %v5136_v58 = vmul.f32 -1.442695, %v7754_v59  ;;  %v7770_v19 = vadd.f32 %v5742_v37, %v7351_v31  ;;  %v4318_v22 = vmax.f32 %v4254_v6, %v7765_v33 }
 0x363   : > { %v3668_v47 = vpop.f32.mrf.mxu1  ;;  %v4446_v48 = vmax.f32 %v4382_v10, %v7711_v8  ;;  %v4509_v43 = vmax.f32 %v4445_v12, %v7765_v33  ;;  %v4574_v28 = vsel %vm4540_vm2, %v7592_v1, 0.0  ;;  %v4255_v21 = vmax.f32 %v4191_v36, %v7711_v8 }
 0x364   : > { %5907 = vpow2.f32 %v5136_v58  ;;  %v5139_v14 = vmul.f32 -1.442695, %v7770_v19  ;;  %v7782_v54 = vadd.f32 %v7351_v31, %v3668_v47  ;;  %v4383_v39 = vmax.f32 %v4318_v22, %v7774_v35  ;;  %v7851_v22 = vld [vmem:[%s8245_s4] ss:$0 sm:$0xff] }
 0x365   : > { %v4510_v5 = vmax.f32 %v4446_v48, %v7776_v11  ;;  %vm4541_vm3 = vcmp.le.f32.partialorder %v4509_v43, %v7606_v3  ;;  %v4607_v4 = vsel %vm4596_vm7, %v4574_v28, %v7511_v60  ;;  %v4319_v55 = vmax.f32 %v4255_v21, %v7776_v11 }
 0x366   : > { %5909 = vpow2.f32 %v5139_v14  ;;  %v5137_v1 = vmul.f32 -1.442695, %v7782_v54  ;;  %v4447_v56 = vmax.f32 %v4383_v39, %v7724_v52  ;;  %v4575_v31 = vsel %vm4541_vm3, %v7606_v3, 0.0  ;;  %4639 = vst [vmem:[%s6029_s28 + $0x50] sm:$0xff] %v4607_v4 }
 0x367   : > { %vm4542_vm4 = vcmp.le.f32.partialorder %v4510_v5, %v7716_v61  ;;  %v4608_v17 = vsel %vm4596_vm7, %v4575_v31, %v7546_v32 }
 0x368   : > { %v4576_v42 = vsel %vm4542_vm4, %v7716_v61, 0.0  ;;  %5911 = vpow2.f32 %v5137_v1  ;;  %v4511_v60 = vmax.f32 %v4447_v56, %v4288_v16  ;;  %4640 = vst [vmem:[%s6029_s28 + $0x58] sm:$0xff] %v4608_v17 }
 0x369   : > { %v4609_v30 = vsel %vm4596_vm7, %v4576_v42, %v7646_v20 }
 0x36a   : > { %4641 = vst [vmem:[%s6029_s28 + $0x60] sm:$0xff] %v4609_v30  ;;  %vm4543_vm5 = vcmp.le.f32.partialorder %v4511_v60, %v7727_v27 }
 0x36b   : > { %v4577_v3 = vsel %vm4543_vm5, %v7727_v27, 0.0 }
 0x36c   : > { %v4610_v62 = vsel %vm4596_vm7, %v4577_v3, %v7680_v9  ;;  %v4000_v9 = vmax.f32 %v7724_v52, %v7748_v7 }
 0x36d   : > { %4642 = vst [vmem:[%s6029_s28 + $0x68] sm:$0xff] %v4610_v62 }
 0x36e   : > { %v4064_v2 = vmax.f32 %v4000_v9, %v7727_v27 }
 0x36f   : > { %v5906_v41 = vpop.eup %5905 }
 0x370   : > { %v3842_v38 = vadd.f32 1.0, %v5906_v41  ;;  %v4128_v51 = vmax.f32 %v4064_v2, %v7765_v33 }
 0x371   : > { %v5908_v32 = vpop.eup %5907 }
 0x372   : > { %5913 = vrcp.f32 %v3842_v38  ;;  %v3840_v40 = vadd.f32 1.0, %v5908_v32  ;;  %v4192_v50 = vmax.f32 %v4128_v51, %v7774_v35 }
 0x373   : > { %v5910_v20 = vpop.eup %5909 }
 0x374   : > { %5915 = vrcp.f32 %v3840_v40  ;;  %v3843_v13 = vadd.f32 1.0, %v5910_v20  ;;  %v4256_v6 = vmax.f32 %v4192_v50, %v7724_v52 }
 0x375   : > { %v5912_v49 = vpop.eup %5911 }
 0x376   : > { %5917 = vrcp.f32 %v3843_v13  ;;  %v3841_v0 = vadd.f32 1.0, %v5912_v49 }
 0x378   : > { %5919 = vrcp.f32 %v3841_v0 }
 0x37f   : > { %v7816_v53 = vpop.eup %5913 }
 0x380   : > { %3939 = vst [vmem:[#allocation4 + $0x148] sm:$0xff] %v7816_v53 }
 0x381   : > { %v7821_v63 = vpop.eup %5915 }
 0x382   : > { %v4001_v61 = vmax.f32 %v7821_v63, %v7758_v34  ;;  %3937 = vst [vmem:[#allocation4 + $0x128] sm:$0xff] %v7821_v63 }
 0x383   : > { %v7829_v24 = vpop.eup %5917 }
 0x384   : > { %v4065_v7 = vmax.f32 %v4001_v61, %v7711_v8  ;;  %3940 = vst [vmem:[#allocation4 + $0x150] sm:$0xff] %v7829_v24 }
 0x385   : > { %v7832_v27 = vpop.eup %5919 }
 0x386   : > { %v4129_v29 = vmax.f32 %v4065_v7, %v7776_v11  ;;  %3938 = vst [vmem:[#allocation4 + $0x130] sm:$0xff] %v7832_v27  ;;  %v4002_v37 = vmax.f32 %v7832_v27, %v7774_v35  ;;  %v4320_v35 = vmax.f32 %v4256_v6, %v4288_v16 }
 0x387   : > { %v7862_v5 = vld [vmem:[#allocation4 + $0x147] sm:$0xff] }
 0x388   : > { %v4066_v45 = vmax.f32 %v4002_v37, %v7724_v52 }
 0x389   : > { %v7840_v34 = vld [vmem:[#allocation4 + $0x127] sm:$0xff] }
 0x38a   : > { %v4193_v26 = vmax.f32 %v4129_v29, %v7840_v34  ;;  %v4384_v58 = vmax.f32 %v4319_v55, %v7840_v34  ;;  %v4130_v12 = vmax.f32 %v4066_v45, %v4288_v16 }
 0x38b   : > { %v7883_v40 = vld [vmem:[#allocation4 + $0x14f] sm:$0xff] }
 0x38c   : > { %v4257_v10 = vmax.f32 %v4193_v26, %v7821_v63  ;;  %v4448_v47 = vmax.f32 %v4384_v58, %v7821_v63  ;;  %v7885_v46 = vld [vmem:[#allocation4 + $0x149] sm:$0xff]  ;;  %v7908_v61 = vld [vmem:[#allocation4 + $0x151] sm:$0xff] }
 0x38d   : > { %v5745_v33 = vpop.f32.mrf.mxu1  ;;  %v7856_v11 = vld [vmem:[#allocation4 + $0x12f] sm:$0xff] }
 0x38e   : > { %v7854_v48 = vadd.f32 %v7851_v22, %v5745_v33  ;;  %v7858_v43 = vld [vmem:[#allocation4 + $0x129] sm:$0xff]  ;;  %v4194_v14 = vmax.f32 %v4130_v12, %v7856_v11  ;;  %v4385_v4 = vmax.f32 %v4320_v35, %v7856_v11  ;;  %v7872_v60 = vld [vmem:[#allocation4 + $0x131] sm:$0xff] }
 0x38f   : > { %v3681_v28 = vpop.f32.mrf.mxu1  ;;  %v4321_v39 = vmax.f32 %v4257_v10, %v7858_v43  ;;  %v4512_v1 = vmax.f32 %v4448_v47, %v7858_v43 }
 0x390   : > { %v5142_v56 = vmul.f32 -1.442695, %v7854_v48  ;;  %v7868_v31 = vadd.f32 %v7851_v22, %v3681_v28  ;;  %v4258_v42 = vmax.f32 %v4194_v14, %v7832_v27  ;;  %v4449_v30 = vmax.f32 %v4385_v4, %v7832_v27 }
 0x391   : > { %v5746_v16 = vpop.f32.mrf.mxu1  ;;  %v4386_v17 = vmax.f32 %v4321_v39, %v7862_v5  ;;  %vm7876_vm6 = vcmp.le.f32.partialorder %v4512_v1, %v7711_v8 }
 0x392   : > { %5921 = vpow2.f32 %v5142_v56  ;;  %v5140_v41 = vmul.f32 -1.442695, %v7868_v31  ;;  %v4322_v62 = vmax.f32 %v4258_v42, %v7872_v60  ;;  %v4513_v20 = vmax.f32 %v4449_v30, %v7872_v60 }
 0x393   : > { %v4450_v38 = vmax.f32 %v4386_v17, %v7816_v53  ;;  %v3684_v32 = vpop.f32.mrf.mxu1  ;;  %v4578_v13 = vsel %vm7876_vm6, %v7711_v8, 0.0  ;;  %v7892_v49 = vadd.f32 %v7851_v22, %v5746_v16 }
 0x394   : > { %5923 = vpow2.f32 %v5140_v41  ;;  %v4387_v57 = vmax.f32 %v4322_v62, %v7883_v40  ;;  %vm4545_vm8 = vcmp.le.f32.partialorder %v4513_v20, %v7724_v52  ;;  %v4611_v9 = vsel %vm4596_vm7, %v4578_v13, %v7631_v25 }
 0x395   : > { %v4514_v0 = vmax.f32 %v4450_v38, %v7885_v46  ;;  %v5143_v18 = vmul.f32 -1.442695, %v7892_v49  ;;  %v7902_v8 = vadd.f32 %v7851_v22, %v3684_v32  ;;  %v4579_v36 = vsel %vm4545_vm8, %v7724_v52, 0.0  ;;  %4643 = vst [vmem:[%s6029_s28 + $0x70] sm:$0xff] %v4611_v9 }
 0x396   : > { %v4451_v2 = vmax.f32 %v4387_v57, %v7829_v24  ;;  %v4612_v25 = vsel %vm4596_vm7, %v4579_v36, %v7670_v44 }
 0x397   : > { %vm4546_vm9 = vcmp.le.f32.partialorder %v4514_v0, %v7821_v63  ;;  %5925 = vpow2.f32 %v5143_v18  ;;  %v5141_v21 = vmul.f32 -1.442695, %v7902_v8  ;;  %4644 = vst [vmem:[%s6029_s28 + $0x78] sm:$0xff] %v4612_v25 }
 0x398   : > { %v4580_v51 = vsel %vm4546_vm9, %v7821_v63, 0.0  ;;  %v4515_v7 = vmax.f32 %v4451_v2, %v7908_v61 }
 0x399   : > { %v4613_v50 = vsel %vm4596_vm7, %v4580_v51, %v7754_v59  ;;  %5927 = vpow2.f32 %v5141_v21  ;;  %v4003_v59 = vmax.f32 %v7816_v53, %v7840_v34 }
 0x39a   : > { %4645 = vst [vmem:[%s6029_s28 + $0x80] sm:$0xff] %v4613_v50  ;;  %vm4547_vm10 = vcmp.le.f32.partialorder %v4515_v7, %v7832_v27 }
 0x39b   : > { %v4581_v52 = vsel %vm4547_vm10, %v7832_v27, 0.0  ;;  %v4067_v10 = vmax.f32 %v4003_v59, %v7821_v63 }
 0x39c   : > { %v4614_v44 = vsel %vm4596_vm7, %v4581_v52, %v7782_v54  ;;  %v4004_v54 = vmax.f32 %v7829_v24, %v7856_v11 }
 0x39d   : > { %4646 = vst [vmem:[%s6029_s28 + $0x88] sm:$0xff] %v4614_v44  ;;  %v4131_v33 = vmax.f32 %v4067_v10, %v7858_v43 }
 0x39e   : > { %v4068_v35 = vmax.f32 %v4004_v54, %v7832_v27 }
 0x39f   : > { %v5922_v55 = vpop.eup %5921  ;;  %v4195_v34 = vmax.f32 %v4131_v33, %v7862_v5 }
 0x3a0   : > { %v3846_v29 = vadd.f32 1.0, %v5922_v55  ;;  %v4132_v14 = vmax.f32 %v4068_v35, %v7872_v60 }
 0x3a1   : > { %v5924_v37 = vpop.eup %5923  ;;  %v4259_v11 = vmax.f32 %v4195_v34, %v7816_v53 }
 0x3a2   : > { %5929 = vrcp.f32 %v3846_v29  ;;  %v3844_v45 = vadd.f32 1.0, %v5924_v37  ;;  %v4196_v4 = vmax.f32 %v4132_v14, %v7883_v40 }
 0x3a3   : > { %v4323_v1 = vmax.f32 %v4259_v11, %v7885_v46 }
 0x3a4   : > { %5931 = vrcp.f32 %v3844_v45  ;;  %v5926_v26 = vpop.eup %5925  ;;  %v4260_v30 = vmax.f32 %v4196_v4, %v7829_v24 }
 0x3a5   : > { %v3847_v58 = vadd.f32 1.0, %v5926_v26 }
 0x3a6   : > { %v5928_v6 = vpop.eup %5927 }
 0x3a7   : > { %5933 = vrcp.f32 %v3847_v58  ;;  %v3845_v47 = vadd.f32 1.0, %v5928_v6 }
 0x3a9   : > { %5935 = vrcp.f32 %v3845_v47 }
 0x3af   : > { %v7933_v12 = vpop.eup %5929 }
 0x3b0   : > { %3943 = vst [vmem:[#allocation4 + $0x188] sm:$0xff] %v7933_v12 }
 0x3b1   : > { %v7938_v28 = vpop.eup %5931 }
 0x3b2   : > { %v4005_v63 = vmax.f32 %v7938_v28, %v7862_v5  ;;  %3941 = vst [vmem:[#allocation4 + $0x168] sm:$0xff] %v7938_v28 }
 0x3b4   : > { %v4069_v43 = vmax.f32 %v4005_v63, %v7816_v53  ;;  %v7946_v39 = vpop.eup %5933 }
 0x3b5   : > { %3944 = vst [vmem:[#allocation4 + $0x190] sm:$0xff] %v7946_v39 }
 0x3b6   : > { %v7949_v27 = vpop.eup %5935  ;;  %v4133_v5 = vmax.f32 %v4069_v43, %v7885_v46 }
 0x3b7   : > { %3942 = vst [vmem:[#allocation4 + $0x170] sm:$0xff] %v7949_v27  ;;  %v4006_v56 = vmax.f32 %v7949_v27, %v7883_v40  ;;  %v4324_v40 = vmax.f32 %v4260_v30, %v7908_v61  ;;  %v7976_v9 = vld [vmem:[#allocation4 + $0x187] sm:$0xff] }
 0x3b9   : > { %v7957_v16 = vld [vmem:[#allocation4 + $0x167] sm:$0xff]  ;;  %v4070_v42 = vmax.f32 %v4006_v56, %v7829_v24 }
 0x3ba   : > { %v4197_v17 = vmax.f32 %v4133_v5, %v7957_v16  ;;  %v4388_v60 = vmax.f32 %v4323_v1, %v7957_v16 }
 0x3bb   : > { %v4134_v38 = vmax.f32 %v4070_v42, %v7908_v61 }
 0x3bc   : > { %v4261_v3 = vmax.f32 %v4197_v17, %v7938_v28  ;;  %v4452_v41 = vmax.f32 %v4388_v60, %v7938_v28  ;;  %v7997_v45 = vld [vmem:[#allocation4 + $0x18f] sm:$0xff] }
 0x3bd   : > { %v5749_v62 = vpop.f32.mrf.mxu1  ;;  %v7999_v59 = vld [vmem:[#allocation4 + $0x189] sm:$0xff]  ;;  %v8022_v63 = vld [vmem:[#allocation4 + $0x191] sm:$0xff] }
 0x3be   : > { %v7967_v32 = vadd.f32 %v7851_v22, %v5749_v62  ;;  %v7970_v46 = vld [vmem:[#allocation4 + $0x16f] sm:$0xff] }
 0x3bf   : > { %v7972_v20 = vld [vmem:[#allocation4 + $0x169] sm:$0xff]  ;;  %v3697_v13 = vpop.f32.mrf.mxu1  ;;  %v4198_v57 = vmax.f32 %v4134_v38, %v7970_v46  ;;  %v4389_v18 = vmax.f32 %v4324_v40, %v7970_v46  ;;  %v7986_v7 = vld [vmem:[#allocation4 + $0x171] sm:$0xff] }
 0x3c0   : > { %v4325_v0 = vmax.f32 %v4261_v3, %v7972_v20  ;;  %v4516_v2 = vmax.f32 %v4452_v41, %v7972_v20  ;;  %v5146_v36 = vmul.f32 -1.442695, %v7967_v32  ;;  %v7982_v51 = vadd.f32 %v7851_v22, %v3697_v13 }
 0x3c1   : > { %v5750_v61 = vpop.f32.mrf.mxu1  ;;  %v4262_v25 = vmax.f32 %v4198_v57, %v7949_v27  ;;  %v4453_v50 = vmax.f32 %v4389_v18, %v7949_v27 }
 0x3c2   : > { %v4390_v21 = vmax.f32 %v4325_v0, %v7976_v9  ;;  %vm7990_vm11 = vcmp.le.f32.partialorder %v4516_v2, %v7816_v53  ;;  %5937 = vpow2.f32 %v5146_v36  ;;  %v5144_v44 = vmul.f32 -1.442695, %v7982_v51 }
 0x3c3   : > { %v4326_v55 = vmax.f32 %v4262_v25, %v7986_v7  ;;  %v3700_v37 = vpop.f32.mrf.mxu1  ;;  %v4517_v26 = vmax.f32 %v4453_v50, %v7986_v7  ;;  %v4582_v58 = vsel %vm7990_vm11, %v7816_v53, 0.0  ;;  %v8006_v6 = vadd.f32 %v7851_v22, %v5750_v61 }
 0x3c4   : > { %v4454_v29 = vmax.f32 %v4390_v21, %v7933_v12  ;;  %5939 = vpow2.f32 %v5144_v44  ;;  %v4615_v54 = vsel %vm4596_vm7, %v4582_v58, %v7744_v23  ;;  %v8016_v53 = vadd.f32 %v7851_v22, %v3700_v37 }
 0x3c5   : > { %v4391_v10 = vmax.f32 %v4326_v55, %v7997_v45  ;;  %vm4549_vm12 = vcmp.le.f32.partialorder %v4517_v26, %v7829_v24  ;;  %v5147_v33 = vmul.f32 -1.442695, %v8006_v6  ;;  %4647 = vst [vmem:[%s6029_s28 + $0x90] sm:$0xff] %v4615_v54 }
 0x3c6   : > { %v4518_v47 = vmax.f32 %v4454_v29, %v7999_v59  ;;  %v4583_v34 = vsel %vm4549_vm12, %v7829_v24, 0.0  ;;  %v5145_v11 = vmul.f32 -1.442695, %v8016_v53 }
 0x3c7   : > { %v4455_v35 = vmax.f32 %v4391_v10, %v7946_v39  ;;  %v4616_v23 = vsel %vm4596_vm7, %v4583_v34, %v7770_v19  ;;  %5941 = vpow2.f32 %v5147_v33 }
 0x3c8   : > { %vm4550_vm13 = vcmp.le.f32.partialorder %v4518_v47, %v7938_v28  ;;  %4648 = vst [vmem:[%s6029_s28 + $0x98] sm:$0xff] %v4616_v23  ;;  %5943 = vpow2.f32 %v5145_v11 }
 0x3c9   : > { %v4584_v14 = vsel %vm4550_vm13, %v7938_v28, 0.0  ;;  %v4519_v43 = vmax.f32 %v4455_v35, %v8022_v63 }
 0x3ca   : > { %v4617_v4 = vsel %vm4596_vm7, %v4584_v14, %v7868_v31  ;;  %v4007_v31 = vmax.f32 %v7933_v12, %v7957_v16 }
 0x3cb   : > { %4649 = vst [vmem:[%s6029_s28 + $0xa0] sm:$0xff] %v4617_v4  ;;  %vm4551_vm14 = vcmp.le.f32.partialorder %v4519_v43, %v7949_v27 }
 0x3cc   : > { %v4585_v24 = vsel %vm4551_vm14, %v7949_v27, 0.0  ;;  %v4071_v3 = vmax.f32 %v4007_v31, %v7938_v28 }
 0x3cd   : > { %v4618_v19 = vsel %vm4596_vm7, %v4585_v24, %v7902_v8  ;;  %v4008_v8 = vmax.f32 %v7946_v39, %v7970_v46 }
 0x3ce   : > { %4650 = vst [vmem:[%s6029_s28 + $0xa8] sm:$0xff] %v4618_v19  ;;  %v4135_v62 = vmax.f32 %v4071_v3, %v7972_v20 }
 0x3cf   : > { %v5938_v1 = vpop.eup %5937  ;;  %v4072_v40 = vmax.f32 %v4008_v8, %v7949_v27 }
 0x3d0   : > { %v3850_v5 = vadd.f32 1.0, %v5938_v1  ;;  %v4199_v16 = vmax.f32 %v4135_v62, %v7976_v9 }
 0x3d1   : > { %v5940_v56 = vpop.eup %5939  ;;  %v4136_v57 = vmax.f32 %v4072_v40, %v7986_v7 }
 0x3d2   : > { %5945 = vrcp.f32 %v3850_v5  ;;  %v3848_v42 = vadd.f32 1.0, %v5940_v56  ;;  %v4263_v46 = vmax.f32 %v4199_v16, %v7933_v12 }
 0x3d3   : > { %v4200_v18 = vmax.f32 %v4136_v57, %v7997_v45 }
 0x3d4   : > { %5947 = vrcp.f32 %v3848_v42  ;;  %v5942_v17 = vpop.eup %5941  ;;  %v4327_v2 = vmax.f32 %v4263_v46, %v7999_v59 }
 0x3d5   : > { %v3851_v60 = vadd.f32 1.0, %v5942_v17  ;;  %v5944_v30 = vpop.eup %5943  ;;  %v4264_v50 = vmax.f32 %v4200_v18, %v7946_v39 }
 0x3d6   : > { %v3849_v41 = vadd.f32 1.0, %v5944_v30 }
 0x3d7   : > { %5949 = vrcp.f32 %v3851_v60  ;;  %v4328_v26 = vmax.f32 %v4264_v50, %v8022_v63 }
 0x3d8   : > { %5951 = vrcp.f32 %v3849_v41 }
 0x3df   : > { %v8047_v38 = vpop.eup %5945 }
 0x3e0   : > { %3947 = vst [vmem:[#allocation4 + $0x1c8] sm:$0xff] %v8047_v38 }
 0x3e1   : > { %v8052_v13 = vpop.eup %5947 }
 0x3e2   : > { %v4009_v28 = vmax.f32 %v8052_v13, %v7976_v9  ;;  %3945 = vst [vmem:[#allocation4 + $0x1a8] sm:$0xff] %v8052_v13 }
 0x3e4   : > { %v4073_v20 = vmax.f32 %v4009_v28, %v7933_v12  ;;  %v8060_v0 = vpop.eup %5949 }
 0x3e5   : > { %3948 = vst [vmem:[#allocation4 + $0x1d0] sm:$0xff] %v8060_v0  ;;  %v8063_v27 = vpop.eup %5951 }
 0x3e6   : > { %v4137_v9 = vmax.f32 %v4073_v20, %v7999_v59  ;;  %3946 = vst [vmem:[#allocation4 + $0x1b0] sm:$0xff] %v8063_v27  ;;  %v4010_v36 = vmax.f32 %v8063_v27, %v7997_v45 }
 0x3e7   : > { %v8094_v34 = vld [vmem:[#allocation4 + $0x1c7] sm:$0xff] }
 0x3e8   : > { %v4074_v25 = vmax.f32 %v4010_v36, %v7946_v39 }
 0x3e9   : > { %v8071_v61 = vld [vmem:[#allocation4 + $0x1a7] sm:$0xff] }
 0x3ea   : > { %v4201_v21 = vmax.f32 %v4137_v9, %v8071_v61  ;;  %v4392_v7 = vmax.f32 %v4327_v2, %v8071_v61  ;;  %v4138_v45 = vmax.f32 %v4074_v25, %v8022_v63  ;;  %v4011_v36 = vmax.f32 %v8047_v38, %v8071_v61 }
 0x3ec   : > { %v5753_v52 = vpop.f32.mrf.mxu1  ;;  %v4265_v44 = vmax.f32 %v4201_v21, %v8052_v13  ;;  %v4456_v55 = vmax.f32 %v4392_v7, %v8052_v13  ;;  %v8110_v42 = vld [vmem:[#allocation4 + $0x1cf] sm:$0xff]  ;;  %v4075_v7 = vmax.f32 %v4011_v36, %v8052_v13  ;;  %v4368_v36 = vld [vmem:[#allocation4 + $0x227] sm:$0xff] }
 0x3ed   : > { %v8080_v29 = vadd.f32 %v7851_v22, %v5753_v52  ;;  %v8087_v58 = vld [vmem:[#allocation4 + $0x1af] sm:$0xff] }
 0x3ee   : > { %v3713_v37 = vpop.f32.mrf.mxu1  ;;  %v8089_v10 = vld [vmem:[#allocation4 + $0x1a9] sm:$0xff]  ;;  %v4202_v33 = vmax.f32 %v4138_v45, %v8087_v58  ;;  %v4393_v14 = vmax.f32 %v4328_v26, %v8087_v58  ;;  %v8101_v24 = vld [vmem:[#allocation4 + $0x1b1] sm:$0xff] }
 0x3ef   : > { %v8084_v59 = vadd.f32 %v7851_v22, %v3713_v37  ;;  %v5150_v47 = vmul.f32 -1.442695, %v8080_v29  ;;  %v4329_v35 = vmax.f32 %v4265_v44, %v8089_v10  ;;  %v4520_v23 = vmax.f32 %v4456_v55, %v8089_v10  ;;  %v8112_v31 = vld [vmem:[#allocation4 + $0x1c9] sm:$0xff]  ;;  %v4300_v16 = vld [vmem:[#allocation4 + $0x1d1] sm:$0xff] }
 0x3f0   : > { %v5754_v54 = vpop.f32.mrf.mxu1  ;;  %v4266_v11 = vmax.f32 %v4202_v33, %v8063_v27  ;;  %v4457_v19 = vmax.f32 %v4393_v14, %v8063_v27  ;;  %v4139_v52 = vmax.f32 %v4075_v7, %v8089_v10 }
 0x3f1   : > { %5953 = vpow2.f32 %v5150_v47  ;;  %v5148_v63 = vmul.f32 -1.442695, %v8084_v59  ;;  %v4394_v43 = vmax.f32 %v4329_v35, %v8094_v34  ;;  %vm4552_vm15 = vcmp.le.f32.partialorder %v4520_v23, %v7933_v12 }
 0x3f2   : > { %v3716_v4 = vpop.f32.mrf.mxu1  ;;  %v8106_v1 = vadd.f32 %v7851_v22, %v5754_v54  ;;  %v4330_v5 = vmax.f32 %v4266_v11, %v8101_v24  ;;  %v4521_v17 = vmax.f32 %v4457_v19, %v8101_v24  ;;  %v4586_v60 = vsel %vm4552_vm15, %v7933_v12, 0.0 }
 0x3f3   : > { %5955 = vpow2.f32 %v5148_v63  ;;  %v4458_v56 = vmax.f32 %v4394_v43, %v8047_v38  ;;  %v8118_v3 = vadd.f32 %v7851_v22, %v3716_v4  ;;  %v4619_v62 = vsel %vm4596_vm7, %v4586_v60, %v7854_v48 }
 0x3f4   : > { %v5151_v30 = vmul.f32 -1.442695, %v8106_v1  ;;  %v4395_v41 = vmax.f32 %v4330_v5, %v8110_v42  ;;  %vm4553_vm0 = vcmp.le.f32.partialorder %v4521_v17, %v7946_v39  ;;  %4651 = vst [vmem:[%s6029_s28 + $0xb0] sm:$0xff] %v4619_v62  ;;  %v4203_v61 = vmax.f32 %v4139_v52, %v8094_v34  ;;  %v4432_v52 = vld [vmem:[#allocation4 + $0x228] sm:$0xff] }
 0x3f5   : > { %v4522_v8 = vmax.f32 %v4458_v56, %v8112_v31  ;;  %v5149_v12 = vmul.f32 -1.442695, %v8118_v3  ;;  %v4587_v22 = vsel %vm4553_vm0, %v7946_v39, 0.0 }
 0x3f6   : > { %5957 = vpow2.f32 %v5151_v30  ;;  %v4459_v40 = vmax.f32 %v4395_v41, %v8060_v0  ;;  %v4620_v57 = vsel %vm4596_vm7, %v4587_v22, %v7892_v49  ;;  %v4267_v26 = vmax.f32 %v4203_v61, %v8047_v38 }
 0x3f7   : > { %vm4554_vm1 = vcmp.le.f32.partialorder %v4522_v8, %v8052_v13  ;;  %5959 = vpow2.f32 %v5149_v12  ;;  %4652 = vst [vmem:[%s6029_s28 + $0xb8] sm:$0xff] %v4620_v57 }
 0x3f8   : > { %v4588_v28 = vsel %vm4554_vm1, %v8052_v13, 0.0  ;;  %v4523_v48 = vmax.f32 %v4459_v40, %v4300_v16  ;;  %v4331_v54 = vmax.f32 %v4267_v26, %v8112_v31 }
 0x3f9   : > { %v4621_v46 = vsel %vm4596_vm7, %v4588_v28, %v7982_v51 }
 0x3fa   : > { %4653 = vst [vmem:[%s6029_s28 + $0xc0] sm:$0xff] %v4621_v46  ;;  %vm4555_vm2 = vcmp.le.f32.partialorder %v4523_v48, %v8063_v27 }
 0x3fb   : > { %v4589_v39 = vsel %vm4555_vm2, %v8063_v27, 0.0 }
 0x3fc   : > { %v4622_v18 = vsel %vm4596_vm7, %v4589_v39, %v8016_v53  ;;  %v4012_v53 = vmax.f32 %v8060_v0, %v8087_v58 }
 0x3fd   : > { %4654 = vst [vmem:[%s6029_s28 + $0xc8] sm:$0xff] %v4622_v18 }
 0x3fe   : > { %v5954_v20 = vpop.eup %5953  ;;  %v4076_v55 = vmax.f32 %v4012_v53, %v8063_v27 }
 0x3ff   : > { %v3854_v2 = vadd.f32 1.0, %v5954_v20 }
 0x400   : > { %v5956_v49 = vpop.eup %5955  ;;  %v4140_v45 = vmax.f32 %v4076_v55, %v8101_v24 }
 0x401   : > { %5961 = vrcp.f32 %v3854_v2  ;;  %v3852_v9 = vadd.f32 1.0, %v5956_v49 }
 0x402   : > { %v4204_v47 = vmax.f32 %v4140_v45, %v8110_v42 }
 0x403   : > { %5963 = vrcp.f32 %v3852_v9  ;;  %v5958_v51 = vpop.eup %5957 }
 0x404   : > { %v3855_v25 = vadd.f32 1.0, %v5958_v51  ;;  %v5960_v21 = vpop.eup %5959  ;;  %v4268_v43 = vmax.f32 %v4204_v47, %v8060_v0  ;;  %v4496_v47 = vld [vmem:[#allocation4 + $0x229] sm:$0xff] }
 0x405   : > { %v3853_v50 = vadd.f32 1.0, %v5960_v21 }
 0x406   : > { %5965 = vrcp.f32 %v3855_v25  ;;  %v4332_v56 = vmax.f32 %v4268_v43, %v4300_v16 }
 0x407   : > { %5967 = vrcp.f32 %v3853_v50 }
 0x40e   : > { %v8152_v44 = vpop.eup %5961 }
 0x40f   : > { %3951 = vst [vmem:[#allocation4 + $0x208] sm:$0xff] %v8152_v44 }
 0x410   : > { %v8157_v37 = vpop.eup %5963 }
 0x411   : > { %v4013_v13 = vmax.f32 %v8157_v37, %v8094_v34  ;;  %3949 = vst [vmem:[#allocation4 + $0x1e8] sm:$0xff] %v8157_v37 }
 0x413   : > { %v4077_v58 = vmax.f32 %v4013_v13, %v8047_v38  ;;  %v8165_v10 = vpop.eup %5965 }
 0x414   : > { %3952 = vst [vmem:[#allocation4 + $0x210] sm:$0xff] %v8165_v10  ;;  %v8168_v27 = vpop.eup %5967 }
 0x415   : > { %v4141_v33 = vmax.f32 %v4077_v58, %v8112_v31  ;;  %3950 = vst [vmem:[#allocation4 + $0x1f0] sm:$0xff] %v8168_v27  ;;  %v4014_v35 = vmax.f32 %v8168_v27, %v8110_v42  ;;  %v4369_v58 = vld [vmem:[#allocation4 + $0x22f] sm:$0xff] }
 0x416   : > { %v4175_v8 = vld [vmem:[#allocation4 + $0x207] sm:$0xff] }
 0x417   : > { %v4078_v23 = vmax.f32 %v4014_v35, %v8060_v0 }
 0x418   : > { %v3983_v34 = vld [vmem:[#allocation4 + $0x1e7] sm:$0xff] }
 0x419   : > { %v4015_v14 = vmax.f32 %v8152_v44, %v3983_v34  ;;  %v4205_v63 = vmax.f32 %v4141_v33, %v3983_v34  ;;  %v4396_v11 = vmax.f32 %v4331_v54, %v3983_v34  ;;  %v4142_v5 = vmax.f32 %v4078_v23, %v4300_v16  ;;  %v4433_v23 = vld [vmem:[#allocation4 + $0x230] sm:$0xff] }
 0x41b   : > { %v4079_v4 = vmax.f32 %v4015_v14, %v8157_v37  ;;  %v4269_v24 = vmax.f32 %v4205_v63, %v8157_v37  ;;  %v4460_v19 = vmax.f32 %v4396_v11, %v8157_v37  ;;  %v4176_v49 = vld [vmem:[#allocation4 + $0x20f] sm:$0xff] }
 0x41c   : > { %v3984_v31 = vld [vmem:[#allocation4 + $0x1ef] sm:$0xff] }
 0x41d   : > { %v4111_v17 = vld [vmem:[#allocation4 + $0x1e9] sm:$0xff]  ;;  %v4016_v42 = vmax.f32 %v8165_v10, %v3984_v31  ;;  %v4206_v30 = vmax.f32 %v4142_v5, %v3984_v31  ;;  %v4397_v62 = vmax.f32 %v4332_v56, %v3984_v31  ;;  %v4112_v48 = vld [vmem:[#allocation4 + $0x1f1] sm:$0xff] }
 0x41e   : > { %v4143_v60 = vmax.f32 %v4079_v4, %v4111_v17  ;;  %v4333_v41 = vmax.f32 %v4269_v24, %v4111_v17  ;;  %v4524_v12 = vmax.f32 %v4460_v19, %v4111_v17  ;;  %v4303_v9 = vld [vmem:[#allocation4 + $0x209] sm:$0xff]  ;;  %v4304_v26 = vld [vmem:[#allocation4 + $0x211] sm:$0xff] }
 0x41f   : > { %v4080_v40 = vmax.f32 %v4016_v42, %v8168_v27  ;;  %v4270_v28 = vmax.f32 %v4206_v30, %v8168_v27  ;;  %v4461_v46 = vmax.f32 %v4397_v62, %v8168_v27 }
 0x420   : > { %v4207_v22 = vmax.f32 %v4143_v60, %v4175_v8  ;;  %v4398_v57 = vmax.f32 %v4333_v41, %v4175_v8  ;;  %vm8187_vm3 = vcmp.le.f32.partialorder %v4524_v12, %v8047_v38 }
 0x421   : > { %v4144_v39 = vmax.f32 %v4080_v40, %v4112_v48  ;;  %v4334_v18 = vmax.f32 %v4270_v28, %v4112_v48  ;;  %v4525_v51 = vmax.f32 %v4461_v46, %v4112_v48  ;;  %v4590_v25 = vsel %vm8187_vm3, %v8047_v38, 0.0 }
 0x422   : > { %v4271_v20 = vmax.f32 %v4207_v22, %v8152_v44  ;;  %v4462_v2 = vmax.f32 %v4398_v57, %v8152_v44  ;;  %v4623_v61 = vsel %vm4596_vm7, %v4590_v25, %v7967_v32 }
 0x423   : > { %v4208_v21 = vmax.f32 %v4144_v39, %v4176_v49  ;;  %v4399_v50 = vmax.f32 %v4334_v18, %v4176_v49  ;;  %vm8197_vm4 = vcmp.le.f32.partialorder %v4525_v51, %v8060_v0  ;;  %4655 = vst [vmem:[%s6029_s28 + $0xd0] sm:$0xff] %v4623_v61 }
 0x424   : > { %v4335_v7 = vmax.f32 %v4271_v20, %v4303_v9  ;;  %v4526_v53 = vmax.f32 %v4462_v2, %v4303_v9  ;;  %v4591_v54 = vsel %vm8197_vm4, %v8060_v0, 0.0  ;;  %v4497_v0 = vld [vmem:[#allocation4 + $0x231] sm:$0xff] }
 0x425   : > { %v4272_v13 = vmax.f32 %v4208_v21, %v8165_v10  ;;  %v4463_v38 = vmax.f32 %v4399_v50, %v8165_v10  ;;  %v4624_v14 = vsel %vm4596_vm7, %v4591_v54, %v8006_v6 }
 0x426   : > { %v4400_v45 = vmax.f32 %v4335_v7, %v4368_v36  ;;  %vm4558_vm5 = vcmp.le.f32.partialorder %v4526_v53, %v8157_v37  ;;  %4656 = vst [vmem:[%s6029_s28 + $0xd8] sm:$0xff] %v4624_v14 }
 0x427   : > { %v4592_v33 = vsel %vm4558_vm5, %v8157_v37, 0.0  ;;  %v4336_v32 = vmax.f32 %v4272_v13, %v4304_v26  ;;  %v4527_v34 = vmax.f32 %v4463_v38, %v4304_v26 }
 0x428   : > { %v4464_v35 = vmax.f32 %v4400_v45, %v4432_v52  ;;  %v4625_v63 = vsel %vm4596_vm7, %v4592_v33, %v8084_v59 }
 0x429   : > { %v4401_v11 = vmax.f32 %v4336_v32, %v4369_v58  ;;  %vm4559_vm6 = vcmp.le.f32.partialorder %v4527_v34, %v8168_v27  ;;  %4657 = vst [vmem:[%s6029_s28 + $0xe0] sm:$0xff] %v4625_v63 }
 0x42a   : > { %v4528_v43 = vmax.f32 %v4464_v35, %v4496_v47  ;;  %v4593_v37 = vsel %vm4559_vm6, %v8168_v27, 0.0 }
 0x42b   : > { %v4465_v4 = vmax.f32 %v4401_v11, %v4433_v23  ;;  %v4626_v6 = vsel %vm4596_vm7, %v4593_v37, %v8118_v3 }
 0x42c   : > { %vm4560_vm8 = vcmp.le.f32.partialorder %v4528_v43, %v8152_v44  ;;  %4658 = vst [vmem:[%s6029_s28 + $0xe8] sm:$0xff] %v4626_v6 }
 0x42d   : > { %v4594_v24 = vsel %vm4560_vm8, %v8152_v44, 0.0  ;;  %v4529_v59 = vmax.f32 %v4465_v4, %v4497_v0 }
 0x42e   : > { %v4627_v19 = vsel %vm4596_vm7, %v4594_v24, %v8080_v29 }
 0x42f   : > { %4659 = vst [vmem:[%s6029_s28 + $0xf0] sm:$0xff] %v4627_v19  ;;  %vm4561_vm9 = vcmp.le.f32.partialorder %v4529_v59, %v8165_v10 }
 0x430   : > { %v4595_v27 = vsel %vm4561_vm9, %v8165_v10, 0.0 }
 0x431   : > { %v4628_v5 = vsel %vm4596_vm7, %v4595_v27, %v8106_v1 }
 0x432   : > { %4660 = vst [vmem:[%s6029_s28 + $0xf8] sm:$0xff] %v4628_v5 }
 0x433 PF: > { %s15_s18 = sadd.s32 1, %s5977_s18  }
 0x434   : > { %p12_p5 = scmp.ge.s32.totalorder %s15_s18, 4  }
 0x436   :  { %14 = sbr.rel (!%p12_p5) target bundleno = 1 (0x1), region = 78 }

</bundles_post_ra>
